<compile_context>
chip_gen: v7x
topology: tpu7x:2x2x1
jax: 0.10.0
libtpu: 0.0.40
codegen_flags: <defaults>
</compile_context>

<pallas_src>
from functools import partial

import jax
import jax.numpy as jnp
from jax import lax
from jax.experimental import pallas as pl
from jax.experimental.pallas import tpu as pltpu

LN_EPS = 1e-5                     # torch.nn.LayerNorm default eps
VMEM_LIMIT = 32 * 1024 * 1024     # explicit scoped-VMEM budget (safe on v5e/v6e/v7x)
PER_BLOCK_ARGS = 11               # params per transformer block passed to the kernel


def _layernorm(x, gamma, beta):
    """LayerNorm over the last axis. x: (N, E) f32, gamma/beta: (1, E) f32."""
    mu = jnp.mean(x, axis=-1, keepdims=True)
    xc = x - mu
    var = jnp.mean(xc * xc, axis=-1, keepdims=True)
    return xc * lax.rsqrt(var + LN_EPS) * gamma + beta


def _vmem_specs(n):
    return [pl.BlockSpec(memory_space=pltpu.MemorySpace.VMEM)] * n


# ---------------------------------------------------------------------------
# Single fused kernel: all blocks + final LN + LM head
# ---------------------------------------------------------------------------
def _make_model_kernel(B, T, E, H, V, num_blocks):
    Dh = E // H

    def kernel(*refs):
        out_ref = refs[-1]
        x_ref = refs[0]

        xf = x_ref[...].reshape(B * T, E)                         # f32 residual

        # Causal mask built once, reused by every block / head.
        row = lax.broadcasted_iota(jnp.int32, (T, T), 0)
        col = lax.broadcasted_iota(jnp.int32, (T, T), 1)
        causal = (col <= row)[None, :, :]                         # (1, T, T)

        idx = 1
        for _ in range(num_blocks):                               # static unroll
            (ln1_g, ln1_b, wqkv, wproj_t, bproj,
             ln2_g, ln2_b, w1_t, b1, w2_t, b2) = refs[idx:idx + PER_BLOCK_ARGS]
            idx += PER_BLOCK_ARGS

            # ---- attention sublayer: x += Wproj @ concat_h(attn_h(LN1(x)))
            lx = _layernorm(xf, ln1_g[...], ln1_b[...])           # (B*T, E)

            # Fused K/Q/V projection for all heads in ONE matmul
            # (1/sqrt(Dh) already folded into the Q columns).
            qkv = jnp.dot(lx.astype(jnp.bfloat16), wqkv[...],
                          preferred_element_type=jnp.float32)     # (B*T, 3E)
            k_all = qkv[:, 0 * E:1 * E].reshape(B, T, E)
            q_all = qkv[:, 1 * E:2 * E].reshape(B, T, E)
            v_all = qkv[:, 2 * E:3 * E].reshape(B, T, E)

            head_outs = []
            for h in range(H):                                    # static unroll
                sl = slice(h * Dh, (h + 1) * Dh)
                q = q_all[:, :, sl].astype(jnp.bfloat16)
                k = k_all[:, :, sl].astype(jnp.bfloat16)
                v = v_all[:, :, sl].astype(jnp.bfloat16)

                # q @ k^T without materializing k.T (contract last dims).
                att = jnp.einsum('bqd,bkd->bqk', q, k,
                                 preferred_element_type=jnp.float32)  # (B,T,T)
                att = jnp.where(causal, att, -jnp.inf)

                # Numerically stable softmax; diagonal always unmasked.
                m = jnp.max(att, axis=-1, keepdims=True)
                p = jnp.exp(att - m)
                denom = jnp.sum(p, axis=-1, keepdims=True)
                p = p * pl.reciprocal(denom, approx=True)         # EUP vrcp

                hout = jnp.einsum('bqk,bkd->bqd', p.astype(jnp.bfloat16), v,
                                  preferred_element_type=jnp.float32)
                head_outs.append(hout.reshape(B * T, Dh))

            heads = jnp.concatenate(head_outs, axis=-1)           # (B*T, E)
            proj = jnp.dot(heads.astype(jnp.bfloat16), wproj_t[...],
                           preferred_element_type=jnp.float32) + bproj[...]
            xf = xf + proj

            # ---- FFN sublayer: x += W2 @ relu(W1 @ LN2(x) + b1) + b2
            lx = _layernorm(xf, ln2_g[...], ln2_b[...])
            hmid = jnp.dot(lx.astype(jnp.bfloat16), w1_t[...],
                           preferred_element_type=jnp.float32) + b1[...]
            hmid = jnp.maximum(hmid, 0.0)                         # ReLU
            y = jnp.dot(hmid.astype(jnp.bfloat16), w2_t[...],
                        preferred_element_type=jnp.float32) + b2[...]
            xf = xf + y

        # ---- final LayerNorm + LM head
        ln_g, ln_b, head_w_t, head_b = refs[idx:idx + 4]
        lx = _layernorm(xf, ln_g[...], ln_b[...])
        logits = jnp.dot(lx.astype(jnp.bfloat16), head_w_t[...],
                         preferred_element_type=jnp.float32) + head_b[...]
        out_ref[...] = logits.reshape(B, T, V).astype(out_ref.dtype)

    return kernel


def transformer_stack_forward(x, packed, num_heads):
    """x: (B, T, E) f32 embedding sum -> (B, T, V) f32 logits. One pallas_call."""
    B, T, E = x.shape
    H = num_heads
    Dh = E // H
    V = packed['head_w_t'].shape[1]
    num_blocks = len(packed['blocks'])

    flat_args = [x]
    for bp in packed['blocks']:
        flat_args += [bp['ln1_g'], bp['ln1_b'], bp['wqkv'], bp['wproj_t'],
                      bp['bproj'], bp['ln2_g'], bp['ln2_b'],
                      bp['w1_t'], bp['b1'], bp['w2_t'], bp['b2']]
    flat_args += [packed['ln_g'], packed['ln_b'],
                  packed['head_w_t'], packed['head_b']]

    # Advisory cost estimate for the XLA scheduler.
    flops_per_block = (2 * B * T * E * 3 * E          # fused qkv projection
                       + 2 * B * H * T * T * Dh * 2   # scores + p@v
                       + 2 * B * T * E * E            # output projection
                       + 2 * B * T * E * 4 * E * 2)   # FFN
    flops = num_blocks * flops_per_block + 2 * B * T * E * V
    transcendentals = num_blocks * (B * H * T * T + 4 * B * T) + 2 * B * T
    bytes_accessed = sum(int(a.size) * int(a.dtype.itemsize) for a in flat_args) \
        + B * T * V * 4

    kernel = _make_model_kernel(B, T, E, H, V, num_blocks)

    return pl.pallas_call(
        kernel,
        out_shape=jax.ShapeDtypeStruct((B, T, V), jnp.float32),
        in_specs=_vmem_specs(len(flat_args)),
        out_specs=pl.BlockSpec(memory_space=pltpu.MemorySpace.VMEM),
        compiler_params=pltpu.CompilerParams(vmem_limit_bytes=VMEM_LIMIT),
        cost_estimate=pl.CostEstimate(flops=int(flops),
                                      transcendentals=int(transcendentals),
                                      bytes_accessed=int(bytes_accessed)),
    )(*flat_args)


# ---------------------------------------------------------------------------
# Wrapper-side weight packing (torch layout -> kernel layout), done ONCE.
# ---------------------------------------------------------------------------
def pack_block(blk, num_heads):
    H = num_heads
    Dh = blk['wk'].shape[1]
    E = blk['wk'].shape[2]
    scale = 1.0 / (Dh ** 0.5)
    # torch Linear does x @ W.T; store transposed (E, Dh) columns. Role-major
    # [K_allheads | Q_allheads | V_allheads] so each E-wide role slice in the
    # kernel is lane-aligned. Fold 1/sqrt(Dh) into the Q columns.
    k_cols = jnp.concatenate([blk['wk'][h].T for h in range(H)], axis=1)
    q_cols = jnp.concatenate([blk['wq'][h].T * scale for h in range(H)], axis=1)
    v_cols = jnp.concatenate([blk['wv'][h].T for h in range(H)], axis=1)
    wqkv = jnp.concatenate([k_cols, q_cols, v_cols], axis=1).astype(jnp.bfloat16)
    return {
        'ln1_g': blk['ln1_g'].reshape(1, E), 'ln1_b': blk['ln1_b'].reshape(1, E),
        'wqkv': wqkv,                                            # (E, 3E) bf16
        'wproj_t': blk['wproj'].T.astype(jnp.bfloat16),          # (E, E) bf16
        'bproj': blk['bproj'].reshape(1, E),
        'ln2_g': blk['ln2_g'].reshape(1, E), 'ln2_b': blk['ln2_b'].reshape(1, E),
        'w1_t': blk['w1'].T.astype(jnp.bfloat16),                # (E, 4E) bf16
        'b1': blk['b1'].reshape(1, -1),
        'w2_t': blk['w2'].T.astype(jnp.bfloat16),                # (4E, E) bf16
        'b2': blk['b2'].reshape(1, E),
    }


def pack_params(params, num_heads):
    E = params['pos_emb'].shape[1]
    return {
        'tok_emb': params['tok_emb'],
        'pos_emb': params['pos_emb'],
        'blocks': [pack_block(blk, num_heads) for blk in params['blocks']],
        'ln_g': params['ln_g'].reshape(1, E),
        'ln_b': params['ln_b'].reshape(1, E),
        'head_w_t': params['head_w'].T.astype(jnp.bfloat16),     # (E, V) bf16
        'head_b': params['head_b'].reshape(1, -1),
    }


@partial(jax.jit, static_argnames=('num_heads',))
def chatgpt_forward(token_ids, packed, num_heads):
    # TODO(synk): token/positional embedding gather left in plain JAX (XLA);
    # a Pallas DMA-gather kernel is overkill at toy vocab / context sizes.
    te = jnp.take(packed['tok_emb'], token_ids, axis=0)           # (B, T, E)
    x = te + packed['pos_emb'][None, :, :]
    return transformer_stack_forward(x, packed, num_heads)


# ---------------------------------------------------------------------------
# Pure-JAX f32 reference mirroring the PyTorch model exactly (eval mode)
# ---------------------------------------------------------------------------
def _ref_layernorm(x, g, b):
    mu = x.mean(-1, keepdims=True)
    var = ((x - mu) ** 2).mean(-1, keepdims=True)
    return (x - mu) / jnp.sqrt(var + LN_EPS) * g + b


def chatgpt_reference(token_ids, params, num_heads):
    te = jnp.take(params['tok_emb'], token_ids, axis=0)
    x = te + params['pos_emb'][None, :, :]
    B, T, E = x.shape
    Dh = E // num_heads
    mask = jnp.where(jnp.tril(jnp.ones((T, T), jnp.float32)) == 1.0,
                     0.0, -jnp.inf)
    for blk in params['blocks']:
        lx = _ref_layernorm(x, blk['ln1_g'], blk['ln1_b'])
        heads = []
        for h in range(num_heads):
            k = lx @ blk['wk'][h].T
            q = lx @ blk['wq'][h].T
            v = lx @ blk['wv'][h].T
            att = q @ jnp.swapaxes(k, -2, -1)
            att = att / (Dh ** 0.5)
            att = att + mask
            att = jax.nn.softmax(att, axis=-1)
            heads.append(att @ v)
        x1 = jnp.concatenate(heads, axis=-1) @ blk['wproj'].T + blk['bproj']
        x = x + x1                                   # dropout = identity (eval)
        lx = _ref_layernorm(x, blk['ln2_g'], blk['ln2_b'])
        x2 = jnp.maximum(lx @ blk['w1'].T + blk['b1'], 0.0) @ blk['w2'].T + blk['b2']
        x = x + x2
    x = _ref_layernorm(x, params['ln_g'], params['ln_b'])
    return x @ params['head_w'].T + params['head_b']


# ---------------------------------------------------------------------------
# Deterministic parameter construction (torch layouts, f32)
# ---------------------------------------------------------------------------
def init_params(key, vocab_size, E, T, num_heads, num_blocks):
    Dh = E // num_heads
    keys = jax.random.split(key, 4 + num_blocks)
    n = lambda k, shape: 0.02 * jax.random.normal(k, shape, jnp.float32)
    params = {
        'tok_emb': n(keys[0], (vocab_size, E)),
        'pos_emb': n(keys[1], (T, E)),
        'ln_g': jnp.ones((E,), jnp.float32),
        'ln_b': jnp.zeros((E,), jnp.float32),
        'head_w': n(keys[2], (vocab_size, E)),        # torch layout (out, in)
        'head_b': n(keys[3], (vocab_size,)),
        'blocks': [],
    }
    for i in range(num_blocks):
        bk = jax.random.split(keys[4 + i], 9)
        params['blocks'].append({
            'ln1_g': jnp.ones((E,), jnp.float32), 'ln1_b': jnp.zeros((E,), jnp.float32),
            'wk': n(bk[0], (num_heads, Dh, E)),
            'wq': n(bk[1], (num_heads, Dh, E)),
            'wv': n(bk[2], (num_heads, Dh, E)),
            'wproj': n(bk[3], (E, E)),
            'bproj': n(bk[4], (E,)),
            'ln2_g': jnp.ones((E,), jnp.float32), 'ln2_b': jnp.zeros((E,), jnp.float32),
            'w1': n(bk[5], (4 * E, E)),
            'b1': n(bk[6], (4 * E,)),
            'w2': n(bk[7], (E, 4 * E)),
            'b2': n(bk[8], (E,)),
        })
    return params


if __name__ == "__main__":
    # Small config consistent with the module: context_size=8, embedding=128
    # (lane-dense), num_heads=4, num_blocks=2, vocab=256, batch=2, dropout=0.
    B, T, E, H, NB, VOCAB = 2, 8, 128, 4, 2, 256

    key = jax.random.PRNGKey(0)
    pkey, dkey = jax.random.split(key)
    params = init_params(pkey, VOCAB, E, T, H, NB)
    token_ids = jax.random.randint(dkey, (B, T), 0, VOCAB, dtype=jnp.int32)

    packed = pack_params(params, num_heads=H)           # weight packing, once

    out = chatgpt_forward(token_ids, packed, num_heads=H)
    out = jax.block_until_ready(out)

    ref = chatgpt_reference(token_ids, params, num_heads=H)
    assert out.shape == (B, T, VOCAB)
    max_err = float(jnp.max(jnp.abs(out - ref)))
    # Tolerance relaxed for bf16 matmul operands + approx softmax reciprocal
    # (f32 accumulation keeps the error well inside this bound).
    assert jnp.allclose(out, ref, atol=5e-2, rtol=5e-2), \
        f"mismatch vs reference, max abs err {max_err}"

    print("KERNEL_OK")
</pallas_src>

<mosaic_0001>
module attributes {stable_mosaic.version = 11 : i64} {
  func.func @kernel(%arg0: memref<2x8x128xf32, #tpu.memory_space<vmem>>, %arg1: memref<1x128xf32, #tpu.memory_space<vmem>>, %arg2: memref<1x128xf32, #tpu.memory_space<vmem>>, %arg3: memref<128x384xbf16, #tpu.memory_space<vmem>>, %arg4: memref<128x128xbf16, #tpu.memory_space<vmem>>, %arg5: memref<1x128xf32, #tpu.memory_space<vmem>>, %arg6: memref<1x128xf32, #tpu.memory_space<vmem>>, %arg7: memref<1x128xf32, #tpu.memory_space<vmem>>, %arg8: memref<128x512xbf16, #tpu.memory_space<vmem>>, %arg9: memref<1x512xf32, #tpu.memory_space<vmem>>, %arg10: memref<512x128xbf16, #tpu.memory_space<vmem>>, %arg11: memref<1x128xf32, #tpu.memory_space<vmem>>, %arg12: memref<1x128xf32, #tpu.memory_space<vmem>>, %arg13: memref<1x128xf32, #tpu.memory_space<vmem>>, %arg14: memref<128x384xbf16, #tpu.memory_space<vmem>>, %arg15: memref<128x128xbf16, #tpu.memory_space<vmem>>, %arg16: memref<1x128xf32, #tpu.memory_space<vmem>>, %arg17: memref<1x128xf32, #tpu.memory_space<vmem>>, %arg18: memref<1x128xf32, #tpu.memory_space<vmem>>, %arg19: memref<128x512xbf16, #tpu.memory_space<vmem>>, %arg20: memref<1x512xf32, #tpu.memory_space<vmem>>, %arg21: memref<512x128xbf16, #tpu.memory_space<vmem>>, %arg22: memref<1x128xf32, #tpu.memory_space<vmem>>, %arg23: memref<1x128xf32, #tpu.memory_space<vmem>>, %arg24: memref<1x128xf32, #tpu.memory_space<vmem>>, %arg25: memref<128x256xbf16, #tpu.memory_space<vmem>>, %arg26: memref<1x256xf32, #tpu.memory_space<vmem>>, %arg27: memref<2x8x256xf32, #tpu.memory_space<vmem>>) attributes {dimension_semantics = [], scalar_prefetch = 0 : i64, scratch_operands = 0 : i64, tpu.core_type = #tpu.core_type<tc>} {
    %c0 = arith.constant 0 : index
    %c0_0 = arith.constant 0 : index
    %c0_1 = arith.constant 0 : index
    %0 = vector.load %arg0[%c0, %c0_0, %c0_1] : memref<2x8x128xf32, #tpu.memory_space<vmem>>, vector<2x8x128xf32>
    %1 = vector.shape_cast %0 : vector<2x8x128xf32> to vector<16x128xf32>
    %2 = tpu.iota {dimensions = array<i32: 0>} : vector<8x8xi32>
    %3 = tpu.iota {dimensions = array<i32: 1>} : vector<8x8xi32>
    %4 = arith.cmpi sle, %3, %2 : vector<8x8xi32>
    %5 = vector.shape_cast %4 : vector<8x8xi1> to vector<1x8x8xi1>
    %c0_2 = arith.constant 0 : index
    %c0_3 = arith.constant 0 : index
    %6 = vector.load %arg1[%c0_2, %c0_3] : memref<1x128xf32, #tpu.memory_space<vmem>>, vector<1x128xf32>
    %c0_4 = arith.constant 0 : index
    %c0_5 = arith.constant 0 : index
    %7 = vector.load %arg2[%c0_4, %c0_5] : memref<1x128xf32, #tpu.memory_space<vmem>>, vector<1x128xf32>
    %cst = arith.constant dense<0.000000e+00> : vector<16xf32>
    %8 = vector.multi_reduction <add>, %1, %cst [1] : vector<16x128xf32> to vector<16xf32>
    %9 = vector.shape_cast %8 : vector<16xf32> to vector<16x1xf32>
    %cst_6 = arith.constant 1.280000e+02 : f32
    %10 = vector.broadcast %cst_6 : f32 to vector<16x1xf32>
    %11 = arith.divf %9, %10 : vector<16x1xf32>
    %12 = vector.broadcast %11 : vector<16x1xf32> to vector<16x128xf32>
    %13 = arith.subf %1, %12 : vector<16x128xf32>
    %14 = arith.mulf %13, %13 : vector<16x128xf32>
    %cst_7 = arith.constant dense<0.000000e+00> : vector<16xf32>
    %15 = vector.multi_reduction <add>, %14, %cst_7 [1] : vector<16x128xf32> to vector<16xf32>
    %16 = vector.shape_cast %15 : vector<16xf32> to vector<16x1xf32>
    %cst_8 = arith.constant 1.280000e+02 : f32
    %17 = vector.broadcast %cst_8 : f32 to vector<16x1xf32>
    %18 = arith.divf %16, %17 : vector<16x1xf32>
    %cst_9 = arith.constant 9.99999974E-6 : f32
    %19 = vector.broadcast %cst_9 : f32 to vector<16x1xf32>
    %20 = arith.addf %18, %19 : vector<16x1xf32>
    %21 = math.rsqrt %20 : vector<16x1xf32>
    %22 = vector.broadcast %21 : vector<16x1xf32> to vector<16x128xf32>
    %23 = arith.mulf %13, %22 : vector<16x128xf32>
    %24 = vector.broadcast %6 : vector<1x128xf32> to vector<16x128xf32>
    %25 = arith.mulf %23, %24 : vector<16x128xf32>
    %26 = vector.broadcast %7 : vector<1x128xf32> to vector<16x128xf32>
    %27 = arith.addf %25, %26 : vector<16x128xf32>
    %28 = arith.truncf %27 : vector<16x128xf32> to vector<16x128xbf16>
    %c0_10 = arith.constant 0 : index
    %c0_11 = arith.constant 0 : index
    %29 = vector.load %arg3[%c0_10, %c0_11] : memref<128x384xbf16, #tpu.memory_space<vmem>>, vector<128x384xbf16>
    %cst_12 = arith.constant dense<0.000000e+00> : vector<16x384xf32>
    %30 = tpu.matmul %28, %29, %cst_12 {dimension_numbers = #tpu.dot_dimension_numbers<[1], [0], [0], [1], [0, 0, 1, 1], [], []>} : vector<16x128xbf16>, vector<128x384xbf16>, vector<16x384xf32> -> vector<16x384xf32>
    %31 = vector.extract_strided_slice %30 {offsets = [0, 0], sizes = [16, 128], strides = [1, 1]} : vector<16x384xf32> to vector<16x128xf32>
    %32 = vector.shape_cast %31 : vector<16x128xf32> to vector<2x8x128xf32>
    %33 = vector.extract_strided_slice %30 {offsets = [0, 128], sizes = [16, 128], strides = [1, 1]} : vector<16x384xf32> to vector<16x128xf32>
    %34 = vector.shape_cast %33 : vector<16x128xf32> to vector<2x8x128xf32>
    %35 = vector.extract_strided_slice %30 {offsets = [0, 256], sizes = [16, 128], strides = [1, 1]} : vector<16x384xf32> to vector<16x128xf32>
    %36 = vector.shape_cast %35 : vector<16x128xf32> to vector<2x8x128xf32>
    %37 = vector.extract_strided_slice %34 {offsets = [0, 0, 0], sizes = [2, 8, 32], strides = [1, 1, 1]} : vector<2x8x128xf32> to vector<2x8x32xf32>
    %38 = arith.truncf %37 : vector<2x8x32xf32> to vector<2x8x32xbf16>
    %39 = vector.extract_strided_slice %32 {offsets = [0, 0, 0], sizes = [2, 8, 32], strides = [1, 1, 1]} : vector<2x8x128xf32> to vector<2x8x32xf32>
    %40 = arith.truncf %39 : vector<2x8x32xf32> to vector<2x8x32xbf16>
    %41 = vector.extract_strided_slice %36 {offsets = [0, 0, 0], sizes = [2, 8, 32], strides = [1, 1, 1]} : vector<2x8x128xf32> to vector<2x8x32xf32>
    %42 = arith.truncf %41 : vector<2x8x32xf32> to vector<2x8x32xbf16>
    "tpu.trace_start"() <{level = 10 : i32, message = "bqd,bkd->bqk"}> : () -> ()
    %cst_13 = arith.constant dense<0.000000e+00> : vector<2x8x8xf32>
    %43 = tpu.matmul %38, %40, %cst_13 {dimension_numbers = #tpu.dot_dimension_numbers<[2], [2], [1], [1], [0, 0, 0, 1, 1, 1], [0], [0]>} : vector<2x8x32xbf16>, vector<2x8x32xbf16>, vector<2x8x8xf32> -> vector<2x8x8xf32>
    %cst_14 = arith.constant 0xFF800000 : f32
    "tpu.trace_stop"() : () -> ()
    %44 = vector.shape_cast %5 : vector<1x8x8xi1> to vector<1x8x8xi1>
    %45 = vector.broadcast %44 : vector<1x8x8xi1> to vector<2x8x8xi1>
    %46 = vector.broadcast %cst_14 : f32 to vector<2x8x8xf32>
    %47 = arith.select %45, %43, %46 : vector<2x8x8xi1>, vector<2x8x8xf32>
    %cst_15 = arith.constant dense<0xFF800000> : vector<2x8xf32>
    %48 = vector.multi_reduction <maximumf>, %47, %cst_15 [2] : vector<2x8x8xf32> to vector<2x8xf32>
    %49 = vector.shape_cast %48 : vector<2x8xf32> to vector<2x8x1xf32>
    %50 = vector.broadcast %49 : vector<2x8x1xf32> to vector<2x8x8xf32>
    %51 = arith.subf %47, %50 : vector<2x8x8xf32>
    %52 = math.exp %51 : vector<2x8x8xf32>
    %cst_16 = arith.constant dense<0.000000e+00> : vector<2x8xf32>
    %53 = vector.multi_reduction <add>, %52, %cst_16 [2] : vector<2x8x8xf32> to vector<2x8xf32>
    %54 = vector.shape_cast %53 : vector<2x8xf32> to vector<2x8x1xf32>
    %55 = tpu.reciprocal %54 {approx = true} : vector<2x8x1xf32> -> vector<2x8x1xf32>
    %56 = vector.broadcast %55 : vector<2x8x1xf32> to vector<2x8x8xf32>
    %57 = arith.mulf %52, %56 : vector<2x8x8xf32>
    %58 = arith.truncf %57 : vector<2x8x8xf32> to vector<2x8x8xbf16>
    "tpu.trace_start"() <{level = 10 : i32, message = "bqk,bkd->bqd"}> : () -> ()
    %cst_17 = arith.constant dense<0.000000e+00> : vector<2x8x32xf32>
    %59 = tpu.matmul %58, %42, %cst_17 {dimension_numbers = #tpu.dot_dimension_numbers<[2], [1], [1], [2], [0, 0, 0, 1, 1, 2], [0], [0]>} : vector<2x8x8xbf16>, vector<2x8x32xbf16>, vector<2x8x32xf32> -> vector<2x8x32xf32>
    "tpu.trace_stop"() : () -> ()
    %60 = vector.shape_cast %59 : vector<2x8x32xf32> to vector<16x32xf32>
    %61 = vector.extract_strided_slice %34 {offsets = [0, 0, 32], sizes = [2, 8, 32], strides = [1, 1, 1]} : vector<2x8x128xf32> to vector<2x8x32xf32>
    %62 = arith.truncf %61 : vector<2x8x32xf32> to vector<2x8x32xbf16>
    %63 = vector.extract_strided_slice %32 {offsets = [0, 0, 32], sizes = [2, 8, 32], strides = [1, 1, 1]} : vector<2x8x128xf32> to vector<2x8x32xf32>
    %64 = arith.truncf %63 : vector<2x8x32xf32> to vector<2x8x32xbf16>
    %65 = vector.extract_strided_slice %36 {offsets = [0, 0, 32], sizes = [2, 8, 32], strides = [1, 1, 1]} : vector<2x8x128xf32> to vector<2x8x32xf32>
    %66 = arith.truncf %65 : vector<2x8x32xf32> to vector<2x8x32xbf16>
    "tpu.trace_start"() <{level = 10 : i32, message = "bqd,bkd->bqk"}> : () -> ()
    %cst_18 = arith.constant dense<0.000000e+00> : vector<2x8x8xf32>
    %67 = tpu.matmul %62, %64, %cst_18 {dimension_numbers = #tpu.dot_dimension_numbers<[2], [2], [1], [1], [0, 0, 0, 1, 1, 1], [0], [0]>} : vector<2x8x32xbf16>, vector<2x8x32xbf16>, vector<2x8x8xf32> -> vector<2x8x8xf32>
    %cst_19 = arith.constant 0xFF800000 : f32
    "tpu.trace_stop"() : () -> ()
    %68 = vector.shape_cast %5 : vector<1x8x8xi1> to vector<1x8x8xi1>
    %69 = vector.broadcast %68 : vector<1x8x8xi1> to vector<2x8x8xi1>
    %70 = vector.broadcast %cst_19 : f32 to vector<2x8x8xf32>
    %71 = arith.select %69, %67, %70 : vector<2x8x8xi1>, vector<2x8x8xf32>
    %cst_20 = arith.constant dense<0xFF800000> : vector<2x8xf32>
    %72 = vector.multi_reduction <maximumf>, %71, %cst_20 [2] : vector<2x8x8xf32> to vector<2x8xf32>
    %73 = vector.shape_cast %72 : vector<2x8xf32> to vector<2x8x1xf32>
    %74 = vector.broadcast %73 : vector<2x8x1xf32> to vector<2x8x8xf32>
    %75 = arith.subf %71, %74 : vector<2x8x8xf32>
    %76 = math.exp %75 : vector<2x8x8xf32>
    %cst_21 = arith.constant dense<0.000000e+00> : vector<2x8xf32>
    %77 = vector.multi_reduction <add>, %76, %cst_21 [2] : vector<2x8x8xf32> to vector<2x8xf32>
    %78 = vector.shape_cast %77 : vector<2x8xf32> to vector<2x8x1xf32>
    %79 = tpu.reciprocal %78 {approx = true} : vector<2x8x1xf32> -> vector<2x8x1xf32>
    %80 = vector.broadcast %79 : vector<2x8x1xf32> to vector<2x8x8xf32>
    %81 = arith.mulf %76, %80 : vector<2x8x8xf32>
    %82 = arith.truncf %81 : vector<2x8x8xf32> to vector<2x8x8xbf16>
    "tpu.trace_start"() <{level = 10 : i32, message = "bqk,bkd->bqd"}> : () -> ()
    %cst_22 = arith.constant dense<0.000000e+00> : vector<2x8x32xf32>
    %83 = tpu.matmul %82, %66, %cst_22 {dimension_numbers = #tpu.dot_dimension_numbers<[2], [1], [1], [2], [0, 0, 0, 1, 1, 2], [0], [0]>} : vector<2x8x8xbf16>, vector<2x8x32xbf16>, vector<2x8x32xf32> -> vector<2x8x32xf32>
    "tpu.trace_stop"() : () -> ()
    %84 = vector.shape_cast %83 : vector<2x8x32xf32> to vector<16x32xf32>
    %85 = vector.extract_strided_slice %34 {offsets = [0, 0, 64], sizes = [2, 8, 32], strides = [1, 1, 1]} : vector<2x8x128xf32> to vector<2x8x32xf32>
    %86 = arith.truncf %85 : vector<2x8x32xf32> to vector<2x8x32xbf16>
    %87 = vector.extract_strided_slice %32 {offsets = [0, 0, 64], sizes = [2, 8, 32], strides = [1, 1, 1]} : vector<2x8x128xf32> to vector<2x8x32xf32>
    %88 = arith.truncf %87 : vector<2x8x32xf32> to vector<2x8x32xbf16>
    %89 = vector.extract_strided_slice %36 {offsets = [0, 0, 64], sizes = [2, 8, 32], strides = [1, 1, 1]} : vector<2x8x128xf32> to vector<2x8x32xf32>
    %90 = arith.truncf %89 : vector<2x8x32xf32> to vector<2x8x32xbf16>
    "tpu.trace_start"() <{level = 10 : i32, message = "bqd,bkd->bqk"}> : () -> ()
    %cst_23 = arith.constant dense<0.000000e+00> : vector<2x8x8xf32>
    %91 = tpu.matmul %86, %88, %cst_23 {dimension_numbers = #tpu.dot_dimension_numbers<[2], [2], [1], [1], [0, 0, 0, 1, 1, 1], [0], [0]>} : vector<2x8x32xbf16>, vector<2x8x32xbf16>, vector<2x8x8xf32> -> vector<2x8x8xf32>
    %cst_24 = arith.constant 0xFF800000 : f32
    "tpu.trace_stop"() : () -> ()
    %92 = vector.shape_cast %5 : vector<1x8x8xi1> to vector<1x8x8xi1>
    %93 = vector.broadcast %92 : vector<1x8x8xi1> to vector<2x8x8xi1>
    %94 = vector.broadcast %cst_24 : f32 to vector<2x8x8xf32>
    %95 = arith.select %93, %91, %94 : vector<2x8x8xi1>, vector<2x8x8xf32>
    %cst_25 = arith.constant dense<0xFF800000> : vector<2x8xf32>
    %96 = vector.multi_reduction <maximumf>, %95, %cst_25 [2] : vector<2x8x8xf32> to vector<2x8xf32>
    %97 = vector.shape_cast %96 : vector<2x8xf32> to vector<2x8x1xf32>
    %98 = vector.broadcast %97 : vector<2x8x1xf32> to vector<2x8x8xf32>
    %99 = arith.subf %95, %98 : vector<2x8x8xf32>
    %100 = math.exp %99 : vector<2x8x8xf32>
    %cst_26 = arith.constant dense<0.000000e+00> : vector<2x8xf32>
    %101 = vector.multi_reduction <add>, %100, %cst_26 [2] : vector<2x8x8xf32> to vector<2x8xf32>
    %102 = vector.shape_cast %101 : vector<2x8xf32> to vector<2x8x1xf32>
    %103 = tpu.reciprocal %102 {approx = true} : vector<2x8x1xf32> -> vector<2x8x1xf32>
    %104 = vector.broadcast %103 : vector<2x8x1xf32> to vector<2x8x8xf32>
    %105 = arith.mulf %100, %104 : vector<2x8x8xf32>
    %106 = arith.truncf %105 : vector<2x8x8xf32> to vector<2x8x8xbf16>
    "tpu.trace_start"() <{level = 10 : i32, message = "bqk,bkd->bqd"}> : () -> ()
    %cst_27 = arith.constant dense<0.000000e+00> : vector<2x8x32xf32>
    %107 = tpu.matmul %106, %90, %cst_27 {dimension_numbers = #tpu.dot_dimension_numbers<[2], [1], [1], [2], [0, 0, 0, 1, 1, 2], [0], [0]>} : vector<2x8x8xbf16>, vector<2x8x32xbf16>, vector<2x8x32xf32> -> vector<2x8x32xf32>
    "tpu.trace_stop"() : () -> ()
    %108 = vector.shape_cast %107 : vector<2x8x32xf32> to vector<16x32xf32>
    %109 = vector.extract_strided_slice %34 {offsets = [0, 0, 96], sizes = [2, 8, 32], strides = [1, 1, 1]} : vector<2x8x128xf32> to vector<2x8x32xf32>
    %110 = arith.truncf %109 : vector<2x8x32xf32> to vector<2x8x32xbf16>
    %111 = vector.extract_strided_slice %32 {offsets = [0, 0, 96], sizes = [2, 8, 32], strides = [1, 1, 1]} : vector<2x8x128xf32> to vector<2x8x32xf32>
    %112 = arith.truncf %111 : vector<2x8x32xf32> to vector<2x8x32xbf16>
    %113 = vector.extract_strided_slice %36 {offsets = [0, 0, 96], sizes = [2, 8, 32], strides = [1, 1, 1]} : vector<2x8x128xf32> to vector<2x8x32xf32>
    %114 = arith.truncf %113 : vector<2x8x32xf32> to vector<2x8x32xbf16>
    "tpu.trace_start"() <{level = 10 : i32, message = "bqd,bkd->bqk"}> : () -> ()
    %cst_28 = arith.constant dense<0.000000e+00> : vector<2x8x8xf32>
    %115 = tpu.matmul %110, %112, %cst_28 {dimension_numbers = #tpu.dot_dimension_numbers<[2], [2], [1], [1], [0, 0, 0, 1, 1, 1], [0], [0]>} : vector<2x8x32xbf16>, vector<2x8x32xbf16>, vector<2x8x8xf32> -> vector<2x8x8xf32>
    %cst_29 = arith.constant 0xFF800000 : f32
    "tpu.trace_stop"() : () -> ()
    %116 = vector.shape_cast %5 : vector<1x8x8xi1> to vector<1x8x8xi1>
    %117 = vector.broadcast %116 : vector<1x8x8xi1> to vector<2x8x8xi1>
    %118 = vector.broadcast %cst_29 : f32 to vector<2x8x8xf32>
    %119 = arith.select %117, %115, %118 : vector<2x8x8xi1>, vector<2x8x8xf32>
    %cst_30 = arith.constant dense<0xFF800000> : vector<2x8xf32>
    %120 = vector.multi_reduction <maximumf>, %119, %cst_30 [2] : vector<2x8x8xf32> to vector<2x8xf32>
    %121 = vector.shape_cast %120 : vector<2x8xf32> to vector<2x8x1xf32>
    %122 = vector.broadcast %121 : vector<2x8x1xf32> to vector<2x8x8xf32>
    %123 = arith.subf %119, %122 : vector<2x8x8xf32>
    %124 = math.exp %123 : vector<2x8x8xf32>
    %cst_31 = arith.constant dense<0.000000e+00> : vector<2x8xf32>
    %125 = vector.multi_reduction <add>, %124, %cst_31 [2] : vector<2x8x8xf32> to vector<2x8xf32>
    %126 = vector.shape_cast %125 : vector<2x8xf32> to vector<2x8x1xf32>
    %127 = tpu.reciprocal %126 {approx = true} : vector<2x8x1xf32> -> vector<2x8x1xf32>
    %128 = vector.broadcast %127 : vector<2x8x1xf32> to vector<2x8x8xf32>
    %129 = arith.mulf %124, %128 : vector<2x8x8xf32>
    %130 = arith.truncf %129 : vector<2x8x8xf32> to vector<2x8x8xbf16>
    "tpu.trace_start"() <{level = 10 : i32, message = "bqk,bkd->bqd"}> : () -> ()
    %cst_32 = arith.constant dense<0.000000e+00> : vector<2x8x32xf32>
    %131 = tpu.matmul %130, %114, %cst_32 {dimension_numbers = #tpu.dot_dimension_numbers<[2], [1], [1], [2], [0, 0, 0, 1, 1, 2], [0], [0]>} : vector<2x8x8xbf16>, vector<2x8x32xbf16>, vector<2x8x32xf32> -> vector<2x8x32xf32>
    "tpu.trace_stop"() : () -> ()
    %132 = vector.shape_cast %131 : vector<2x8x32xf32> to vector<16x32xf32>
    %133 = tpu.concatenate %60, %84, %108, %132 in 1 : vector<16x32xf32>, vector<16x32xf32>, vector<16x32xf32>, vector<16x32xf32> -> vector<16x128xf32>
    %134 = arith.truncf %133 : vector<16x128xf32> to vector<16x128xbf16>
    %c0_33 = arith.constant 0 : index
    %c0_34 = arith.constant 0 : index
    %135 = vector.load %arg4[%c0_33, %c0_34] : memref<128x128xbf16, #tpu.memory_space<vmem>>, vector<128x128xbf16>
    %cst_35 = arith.constant dense<0.000000e+00> : vector<16x128xf32>
    %136 = tpu.matmul %134, %135, %cst_35 {dimension_numbers = #tpu.dot_dimension_numbers<[1], [0], [0], [1], [0, 0, 1, 1], [], []>} : vector<16x128xbf16>, vector<128x128xbf16>, vector<16x128xf32> -> vector<16x128xf32>
    %c0_36 = arith.constant 0 : index
    %c0_37 = arith.constant 0 : index
    %137 = vector.load %arg5[%c0_36, %c0_37] : memref<1x128xf32, #tpu.memory_space<vmem>>, vector<1x128xf32>
    %138 = vector.broadcast %137 : vector<1x128xf32> to vector<16x128xf32>
    %139 = arith.addf %136, %138 : vector<16x128xf32>
    %140 = arith.addf %1, %139 : vector<16x128xf32>
    %c0_38 = arith.constant 0 : index
    %c0_39 = arith.constant 0 : index
    %141 = vector.load %arg6[%c0_38, %c0_39] : memref<1x128xf32, #tpu.memory_space<vmem>>, vector<1x128xf32>
    %c0_40 = arith.constant 0 : index
    %c0_41 = arith.constant 0 : index
    %142 = vector.load %arg7[%c0_40, %c0_41] : memref<1x128xf32, #tpu.memory_space<vmem>>, vector<1x128xf32>
    %cst_42 = arith.constant dense<0.000000e+00> : vector<16xf32>
    %143 = vector.multi_reduction <add>, %140, %cst_42 [1] : vector<16x128xf32> to vector<16xf32>
    %144 = vector.shape_cast %143 : vector<16xf32> to vector<16x1xf32>
    %cst_43 = arith.constant 1.280000e+02 : f32
    %145 = vector.broadcast %cst_43 : f32 to vector<16x1xf32>
    %146 = arith.divf %144, %145 : vector<16x1xf32>
    %147 = vector.broadcast %146 : vector<16x1xf32> to vector<16x128xf32>
    %148 = arith.subf %140, %147 : vector<16x128xf32>
    %149 = arith.mulf %148, %148 : vector<16x128xf32>
    %cst_44 = arith.constant dense<0.000000e+00> : vector<16xf32>
    %150 = vector.multi_reduction <add>, %149, %cst_44 [1] : vector<16x128xf32> to vector<16xf32>
    %151 = vector.shape_cast %150 : vector<16xf32> to vector<16x1xf32>
    %cst_45 = arith.constant 1.280000e+02 : f32
    %152 = vector.broadcast %cst_45 : f32 to vector<16x1xf32>
    %153 = arith.divf %151, %152 : vector<16x1xf32>
    %cst_46 = arith.constant 9.99999974E-6 : f32
    %154 = vector.broadcast %cst_46 : f32 to vector<16x1xf32>
    %155 = arith.addf %153, %154 : vector<16x1xf32>
    %156 = math.rsqrt %155 : vector<16x1xf32>
    %157 = vector.broadcast %156 : vector<16x1xf32> to vector<16x128xf32>
    %158 = arith.mulf %148, %157 : vector<16x128xf32>
    %159 = vector.broadcast %141 : vector<1x128xf32> to vector<16x128xf32>
    %160 = arith.mulf %158, %159 : vector<16x128xf32>
    %161 = vector.broadcast %142 : vector<1x128xf32> to vector<16x128xf32>
    %162 = arith.addf %160, %161 : vector<16x128xf32>
    %163 = arith.truncf %162 : vector<16x128xf32> to vector<16x128xbf16>
    %c0_47 = arith.constant 0 : index
    %c0_48 = arith.constant 0 : index
    %164 = vector.load %arg8[%c0_47, %c0_48] : memref<128x512xbf16, #tpu.memory_space<vmem>>, vector<128x512xbf16>
    %cst_49 = arith.constant dense<0.000000e+00> : vector<16x512xf32>
    %165 = tpu.matmul %163, %164, %cst_49 {dimension_numbers = #tpu.dot_dimension_numbers<[1], [0], [0], [1], [0, 0, 1, 1], [], []>} : vector<16x128xbf16>, vector<128x512xbf16>, vector<16x512xf32> -> vector<16x512xf32>
    %c0_50 = arith.constant 0 : index
    %c0_51 = arith.constant 0 : index
    %166 = vector.load %arg9[%c0_50, %c0_51] : memref<1x512xf32, #tpu.memory_space<vmem>>, vector<1x512xf32>
    %167 = vector.broadcast %166 : vector<1x512xf32> to vector<16x512xf32>
    %168 = arith.addf %165, %167 : vector<16x512xf32>
    %cst_52 = arith.constant 0.000000e+00 : f32
    %169 = vector.broadcast %cst_52 : f32 to vector<16x512xf32>
    %170 = arith.maximumf %168, %169 : vector<16x512xf32>
    %171 = arith.truncf %170 : vector<16x512xf32> to vector<16x512xbf16>
    %c0_53 = arith.constant 0 : index
    %c0_54 = arith.constant 0 : index
    %172 = vector.load %arg10[%c0_53, %c0_54] : memref<512x128xbf16, #tpu.memory_space<vmem>>, vector<512x128xbf16>
    %cst_55 = arith.constant dense<0.000000e+00> : vector<16x128xf32>
    %173 = tpu.matmul %171, %172, %cst_55 {dimension_numbers = #tpu.dot_dimension_numbers<[1], [0], [0], [1], [0, 0, 1, 1], [], []>} : vector<16x512xbf16>, vector<512x128xbf16>, vector<16x128xf32> -> vector<16x128xf32>
    %c0_56 = arith.constant 0 : index
    %c0_57 = arith.constant 0 : index
    %174 = vector.load %arg11[%c0_56, %c0_57] : memref<1x128xf32, #tpu.memory_space<vmem>>, vector<1x128xf32>
    %175 = vector.broadcast %174 : vector<1x128xf32> to vector<16x128xf32>
    %176 = arith.addf %173, %175 : vector<16x128xf32>
    %177 = arith.addf %140, %176 : vector<16x128xf32>
    %c0_58 = arith.constant 0 : index
    %c0_59 = arith.constant 0 : index
    %178 = vector.load %arg12[%c0_58, %c0_59] : memref<1x128xf32, #tpu.memory_space<vmem>>, vector<1x128xf32>
    %c0_60 = arith.constant 0 : index
    %c0_61 = arith.constant 0 : index
    %179 = vector.load %arg13[%c0_60, %c0_61] : memref<1x128xf32, #tpu.memory_space<vmem>>, vector<1x128xf32>
    %cst_62 = arith.constant dense<0.000000e+00> : vector<16xf32>
    %180 = vector.multi_reduction <add>, %177, %cst_62 [1] : vector<16x128xf32> to vector<16xf32>
    %181 = vector.shape_cast %180 : vector<16xf32> to vector<16x1xf32>
    %cst_63 = arith.constant 1.280000e+02 : f32
    %182 = vector.broadcast %cst_63 : f32 to vector<16x1xf32>
    %183 = arith.divf %181, %182 : vector<16x1xf32>
    %184 = vector.broadcast %183 : vector<16x1xf32> to vector<16x128xf32>
    %185 = arith.subf %177, %184 : vector<16x128xf32>
    %186 = arith.mulf %185, %185 : vector<16x128xf32>
    %cst_64 = arith.constant dense<0.000000e+00> : vector<16xf32>
    %187 = vector.multi_reduction <add>, %186, %cst_64 [1] : vector<16x128xf32> to vector<16xf32>
    %188 = vector.shape_cast %187 : vector<16xf32> to vector<16x1xf32>
    %cst_65 = arith.constant 1.280000e+02 : f32
    %189 = vector.broadcast %cst_65 : f32 to vector<16x1xf32>
    %190 = arith.divf %188, %189 : vector<16x1xf32>
    %cst_66 = arith.constant 9.99999974E-6 : f32
    %191 = vector.broadcast %cst_66 : f32 to vector<16x1xf32>
    %192 = arith.addf %190, %191 : vector<16x1xf32>
    %193 = math.rsqrt %192 : vector<16x1xf32>
    %194 = vector.broadcast %193 : vector<16x1xf32> to vector<16x128xf32>
    %195 = arith.mulf %185, %194 : vector<16x128xf32>
    %196 = vector.broadcast %178 : vector<1x128xf32> to vector<16x128xf32>
    %197 = arith.mulf %195, %196 : vector<16x128xf32>
    %198 = vector.broadcast %179 : vector<1x128xf32> to vector<16x128xf32>
    %199 = arith.addf %197, %198 : vector<16x128xf32>
    %200 = arith.truncf %199 : vector<16x128xf32> to vector<16x128xbf16>
    %c0_67 = arith.constant 0 : index
    %c0_68 = arith.constant 0 : index
    %201 = vector.load %arg14[%c0_67, %c0_68] : memref<128x384xbf16, #tpu.memory_space<vmem>>, vector<128x384xbf16>
    %cst_69 = arith.constant dense<0.000000e+00> : vector<16x384xf32>
    %202 = tpu.matmul %200, %201, %cst_69 {dimension_numbers = #tpu.dot_dimension_numbers<[1], [0], [0], [1], [0, 0, 1, 1], [], []>} : vector<16x128xbf16>, vector<128x384xbf16>, vector<16x384xf32> -> vector<16x384xf32>
    %203 = vector.extract_strided_slice %202 {offsets = [0, 0], sizes = [16, 128], strides = [1, 1]} : vector<16x384xf32> to vector<16x128xf32>
    %204 = vector.shape_cast %203 : vector<16x128xf32> to vector<2x8x128xf32>
    %205 = vector.extract_strided_slice %202 {offsets = [0, 128], sizes = [16, 128], strides = [1, 1]} : vector<16x384xf32> to vector<16x128xf32>
    %206 = vector.shape_cast %205 : vector<16x128xf32> to vector<2x8x128xf32>
    %207 = vector.extract_strided_slice %202 {offsets = [0, 256], sizes = [16, 128], strides = [1, 1]} : vector<16x384xf32> to vector<16x128xf32>
    %208 = vector.shape_cast %207 : vector<16x128xf32> to vector<2x8x128xf32>
    %209 = vector.extract_strided_slice %206 {offsets = [0, 0, 0], sizes = [2, 8, 32], strides = [1, 1, 1]} : vector<2x8x128xf32> to vector<2x8x32xf32>
    %210 = arith.truncf %209 : vector<2x8x32xf32> to vector<2x8x32xbf16>
    %211 = vector.extract_strided_slice %204 {offsets = [0, 0, 0], sizes = [2, 8, 32], strides = [1, 1, 1]} : vector<2x8x128xf32> to vector<2x8x32xf32>
    %212 = arith.truncf %211 : vector<2x8x32xf32> to vector<2x8x32xbf16>
    %213 = vector.extract_strided_slice %208 {offsets = [0, 0, 0], sizes = [2, 8, 32], strides = [1, 1, 1]} : vector<2x8x128xf32> to vector<2x8x32xf32>
    %214 = arith.truncf %213 : vector<2x8x32xf32> to vector<2x8x32xbf16>
    "tpu.trace_start"() <{level = 10 : i32, message = "bqd,bkd->bqk"}> : () -> ()
    %cst_70 = arith.constant dense<0.000000e+00> : vector<2x8x8xf32>
    %215 = tpu.matmul %210, %212, %cst_70 {dimension_numbers = #tpu.dot_dimension_numbers<[2], [2], [1], [1], [0, 0, 0, 1, 1, 1], [0], [0]>} : vector<2x8x32xbf16>, vector<2x8x32xbf16>, vector<2x8x8xf32> -> vector<2x8x8xf32>
    %cst_71 = arith.constant 0xFF800000 : f32
    "tpu.trace_stop"() : () -> ()
    %216 = vector.shape_cast %5 : vector<1x8x8xi1> to vector<1x8x8xi1>
    %217 = vector.broadcast %216 : vector<1x8x8xi1> to vector<2x8x8xi1>
    %218 = vector.broadcast %cst_71 : f32 to vector<2x8x8xf32>
    %219 = arith.select %217, %215, %218 : vector<2x8x8xi1>, vector<2x8x8xf32>
    %cst_72 = arith.constant dense<0xFF800000> : vector<2x8xf32>
    %220 = vector.multi_reduction <maximumf>, %219, %cst_72 [2] : vector<2x8x8xf32> to vector<2x8xf32>
    %221 = vector.shape_cast %220 : vector<2x8xf32> to vector<2x8x1xf32>
    %222 = vector.broadcast %221 : vector<2x8x1xf32> to vector<2x8x8xf32>
    %223 = arith.subf %219, %222 : vector<2x8x8xf32>
    %224 = math.exp %223 : vector<2x8x8xf32>
    %cst_73 = arith.constant dense<0.000000e+00> : vector<2x8xf32>
    %225 = vector.multi_reduction <add>, %224, %cst_73 [2] : vector<2x8x8xf32> to vector<2x8xf32>
    %226 = vector.shape_cast %225 : vector<2x8xf32> to vector<2x8x1xf32>
    %227 = tpu.reciprocal %226 {approx = true} : vector<2x8x1xf32> -> vector<2x8x1xf32>
    %228 = vector.broadcast %227 : vector<2x8x1xf32> to vector<2x8x8xf32>
    %229 = arith.mulf %224, %228 : vector<2x8x8xf32>
    %230 = arith.truncf %229 : vector<2x8x8xf32> to vector<2x8x8xbf16>
    "tpu.trace_start"() <{level = 10 : i32, message = "bqk,bkd->bqd"}> : () -> ()
    %cst_74 = arith.constant dense<0.000000e+00> : vector<2x8x32xf32>
    %231 = tpu.matmul %230, %214, %cst_74 {dimension_numbers = #tpu.dot_dimension_numbers<[2], [1], [1], [2], [0, 0, 0, 1, 1, 2], [0], [0]>} : vector<2x8x8xbf16>, vector<2x8x32xbf16>, vector<2x8x32xf32> -> vector<2x8x32xf32>
    "tpu.trace_stop"() : () -> ()
    %232 = vector.shape_cast %231 : vector<2x8x32xf32> to vector<16x32xf32>
    %233 = vector.extract_strided_slice %206 {offsets = [0, 0, 32], sizes = [2, 8, 32], strides = [1, 1, 1]} : vector<2x8x128xf32> to vector<2x8x32xf32>
    %234 = arith.truncf %233 : vector<2x8x32xf32> to vector<2x8x32xbf16>
    %235 = vector.extract_strided_slice %204 {offsets = [0, 0, 32], sizes = [2, 8, 32], strides = [1, 1, 1]} : vector<2x8x128xf32> to vector<2x8x32xf32>
    %236 = arith.truncf %235 : vector<2x8x32xf32> to vector<2x8x32xbf16>
    %237 = vector.extract_strided_slice %208 {offsets = [0, 0, 32], sizes = [2, 8, 32], strides = [1, 1, 1]} : vector<2x8x128xf32> to vector<2x8x32xf32>
    %238 = arith.truncf %237 : vector<2x8x32xf32> to vector<2x8x32xbf16>
    "tpu.trace_start"() <{level = 10 : i32, message = "bqd,bkd->bqk"}> : () -> ()
    %cst_75 = arith.constant dense<0.000000e+00> : vector<2x8x8xf32>
    %239 = tpu.matmul %234, %236, %cst_75 {dimension_numbers = #tpu.dot_dimension_numbers<[2], [2], [1], [1], [0, 0, 0, 1, 1, 1], [0], [0]>} : vector<2x8x32xbf16>, vector<2x8x32xbf16>, vector<2x8x8xf32> -> vector<2x8x8xf32>
    %cst_76 = arith.constant 0xFF800000 : f32
    "tpu.trace_stop"() : () -> ()
    %240 = vector.shape_cast %5 : vector<1x8x8xi1> to vector<1x8x8xi1>
    %241 = vector.broadcast %240 : vector<1x8x8xi1> to vector<2x8x8xi1>
    %242 = vector.broadcast %cst_76 : f32 to vector<2x8x8xf32>
    %243 = arith.select %241, %239, %242 : vector<2x8x8xi1>, vector<2x8x8xf32>
    %cst_77 = arith.constant dense<0xFF800000> : vector<2x8xf32>
    %244 = vector.multi_reduction <maximumf>, %243, %cst_77 [2] : vector<2x8x8xf32> to vector<2x8xf32>
    %245 = vector.shape_cast %244 : vector<2x8xf32> to vector<2x8x1xf32>
    %246 = vector.broadcast %245 : vector<2x8x1xf32> to vector<2x8x8xf32>
    %247 = arith.subf %243, %246 : vector<2x8x8xf32>
    %248 = math.exp %247 : vector<2x8x8xf32>
    %cst_78 = arith.constant dense<0.000000e+00> : vector<2x8xf32>
    %249 = vector.multi_reduction <add>, %248, %cst_78 [2] : vector<2x8x8xf32> to vector<2x8xf32>
    %250 = vector.shape_cast %249 : vector<2x8xf32> to vector<2x8x1xf32>
    %251 = tpu.reciprocal %250 {approx = true} : vector<2x8x1xf32> -> vector<2x8x1xf32>
    %252 = vector.broadcast %251 : vector<2x8x1xf32> to vector<2x8x8xf32>
    %253 = arith.mulf %248, %252 : vector<2x8x8xf32>
    %254 = arith.truncf %253 : vector<2x8x8xf32> to vector<2x8x8xbf16>
    "tpu.trace_start"() <{level = 10 : i32, message = "bqk,bkd->bqd"}> : () -> ()
    %cst_79 = arith.constant dense<0.000000e+00> : vector<2x8x32xf32>
    %255 = tpu.matmul %254, %238, %cst_79 {dimension_numbers = #tpu.dot_dimension_numbers<[2], [1], [1], [2], [0, 0, 0, 1, 1, 2], [0], [0]>} : vector<2x8x8xbf16>, vector<2x8x32xbf16>, vector<2x8x32xf32> -> vector<2x8x32xf32>
    "tpu.trace_stop"() : () -> ()
    %256 = vector.shape_cast %255 : vector<2x8x32xf32> to vector<16x32xf32>
    %257 = vector.extract_strided_slice %206 {offsets = [0, 0, 64], sizes = [2, 8, 32], strides = [1, 1, 1]} : vector<2x8x128xf32> to vector<2x8x32xf32>
    %258 = arith.truncf %257 : vector<2x8x32xf32> to vector<2x8x32xbf16>
    %259 = vector.extract_strided_slice %204 {offsets = [0, 0, 64], sizes = [2, 8, 32], strides = [1, 1, 1]} : vector<2x8x128xf32> to vector<2x8x32xf32>
    %260 = arith.truncf %259 : vector<2x8x32xf32> to vector<2x8x32xbf16>
    %261 = vector.extract_strided_slice %208 {offsets = [0, 0, 64], sizes = [2, 8, 32], strides = [1, 1, 1]} : vector<2x8x128xf32> to vector<2x8x32xf32>
    %262 = arith.truncf %261 : vector<2x8x32xf32> to vector<2x8x32xbf16>
    "tpu.trace_start"() <{level = 10 : i32, message = "bqd,bkd->bqk"}> : () -> ()
    %cst_80 = arith.constant dense<0.000000e+00> : vector<2x8x8xf32>
    %263 = tpu.matmul %258, %260, %cst_80 {dimension_numbers = #tpu.dot_dimension_numbers<[2], [2], [1], [1], [0, 0, 0, 1, 1, 1], [0], [0]>} : vector<2x8x32xbf16>, vector<2x8x32xbf16>, vector<2x8x8xf32> -> vector<2x8x8xf32>
    %cst_81 = arith.constant 0xFF800000 : f32
    "tpu.trace_stop"() : () -> ()
    %264 = vector.shape_cast %5 : vector<1x8x8xi1> to vector<1x8x8xi1>
    %265 = vector.broadcast %264 : vector<1x8x8xi1> to vector<2x8x8xi1>
    %266 = vector.broadcast %cst_81 : f32 to vector<2x8x8xf32>
    %267 = arith.select %265, %263, %266 : vector<2x8x8xi1>, vector<2x8x8xf32>
    %cst_82 = arith.constant dense<0xFF800000> : vector<2x8xf32>
    %268 = vector.multi_reduction <maximumf>, %267, %cst_82 [2] : vector<2x8x8xf32> to vector<2x8xf32>
    %269 = vector.shape_cast %268 : vector<2x8xf32> to vector<2x8x1xf32>
    %270 = vector.broadcast %269 : vector<2x8x1xf32> to vector<2x8x8xf32>
    %271 = arith.subf %267, %270 : vector<2x8x8xf32>
    %272 = math.exp %271 : vector<2x8x8xf32>
    %cst_83 = arith.constant dense<0.000000e+00> : vector<2x8xf32>
    %273 = vector.multi_reduction <add>, %272, %cst_83 [2] : vector<2x8x8xf32> to vector<2x8xf32>
    %274 = vector.shape_cast %273 : vector<2x8xf32> to vector<2x8x1xf32>
    %275 = tpu.reciprocal %274 {approx = true} : vector<2x8x1xf32> -> vector<2x8x1xf32>
    %276 = vector.broadcast %275 : vector<2x8x1xf32> to vector<2x8x8xf32>
    %277 = arith.mulf %272, %276 : vector<2x8x8xf32>
    %278 = arith.truncf %277 : vector<2x8x8xf32> to vector<2x8x8xbf16>
    "tpu.trace_start"() <{level = 10 : i32, message = "bqk,bkd->bqd"}> : () -> ()
    %cst_84 = arith.constant dense<0.000000e+00> : vector<2x8x32xf32>
    %279 = tpu.matmul %278, %262, %cst_84 {dimension_numbers = #tpu.dot_dimension_numbers<[2], [1], [1], [2], [0, 0, 0, 1, 1, 2], [0], [0]>} : vector<2x8x8xbf16>, vector<2x8x32xbf16>, vector<2x8x32xf32> -> vector<2x8x32xf32>
    "tpu.trace_stop"() : () -> ()
    %280 = vector.shape_cast %279 : vector<2x8x32xf32> to vector<16x32xf32>
    %281 = vector.extract_strided_slice %206 {offsets = [0, 0, 96], sizes = [2, 8, 32], strides = [1, 1, 1]} : vector<2x8x128xf32> to vector<2x8x32xf32>
    %282 = arith.truncf %281 : vector<2x8x32xf32> to vector<2x8x32xbf16>
    %283 = vector.extract_strided_slice %204 {offsets = [0, 0, 96], sizes = [2, 8, 32], strides = [1, 1, 1]} : vector<2x8x128xf32> to vector<2x8x32xf32>
    %284 = arith.truncf %283 : vector<2x8x32xf32> to vector<2x8x32xbf16>
    %285 = vector.extract_strided_slice %208 {offsets = [0, 0, 96], sizes = [2, 8, 32], strides = [1, 1, 1]} : vector<2x8x128xf32> to vector<2x8x32xf32>
    %286 = arith.truncf %285 : vector<2x8x32xf32> to vector<2x8x32xbf16>
    "tpu.trace_start"() <{level = 10 : i32, message = "bqd,bkd->bqk"}> : () -> ()
    %cst_85 = arith.constant dense<0.000000e+00> : vector<2x8x8xf32>
    %287 = tpu.matmul %282, %284, %cst_85 {dimension_numbers = #tpu.dot_dimension_numbers<[2], [2], [1], [1], [0, 0, 0, 1, 1, 1], [0], [0]>} : vector<2x8x32xbf16>, vector<2x8x32xbf16>, vector<2x8x8xf32> -> vector<2x8x8xf32>
    %cst_86 = arith.constant 0xFF800000 : f32
    "tpu.trace_stop"() : () -> ()
    %288 = vector.shape_cast %5 : vector<1x8x8xi1> to vector<1x8x8xi1>
    %289 = vector.broadcast %288 : vector<1x8x8xi1> to vector<2x8x8xi1>
    %290 = vector.broadcast %cst_86 : f32 to vector<2x8x8xf32>
    %291 = arith.select %289, %287, %290 : vector<2x8x8xi1>, vector<2x8x8xf32>
    %cst_87 = arith.constant dense<0xFF800000> : vector<2x8xf32>
    %292 = vector.multi_reduction <maximumf>, %291, %cst_87 [2] : vector<2x8x8xf32> to vector<2x8xf32>
    %293 = vector.shape_cast %292 : vector<2x8xf32> to vector<2x8x1xf32>
    %294 = vector.broadcast %293 : vector<2x8x1xf32> to vector<2x8x8xf32>
    %295 = arith.subf %291, %294 : vector<2x8x8xf32>
    %296 = math.exp %295 : vector<2x8x8xf32>
    %cst_88 = arith.constant dense<0.000000e+00> : vector<2x8xf32>
    %297 = vector.multi_reduction <add>, %296, %cst_88 [2] : vector<2x8x8xf32> to vector<2x8xf32>
    %298 = vector.shape_cast %297 : vector<2x8xf32> to vector<2x8x1xf32>
    %299 = tpu.reciprocal %298 {approx = true} : vector<2x8x1xf32> -> vector<2x8x1xf32>
    %300 = vector.broadcast %299 : vector<2x8x1xf32> to vector<2x8x8xf32>
    %301 = arith.mulf %296, %300 : vector<2x8x8xf32>
    %302 = arith.truncf %301 : vector<2x8x8xf32> to vector<2x8x8xbf16>
    "tpu.trace_start"() <{level = 10 : i32, message = "bqk,bkd->bqd"}> : () -> ()
    %cst_89 = arith.constant dense<0.000000e+00> : vector<2x8x32xf32>
    %303 = tpu.matmul %302, %286, %cst_89 {dimension_numbers = #tpu.dot_dimension_numbers<[2], [1], [1], [2], [0, 0, 0, 1, 1, 2], [0], [0]>} : vector<2x8x8xbf16>, vector<2x8x32xbf16>, vector<2x8x32xf32> -> vector<2x8x32xf32>
    "tpu.trace_stop"() : () -> ()
    %304 = vector.shape_cast %303 : vector<2x8x32xf32> to vector<16x32xf32>
    %305 = tpu.concatenate %232, %256, %280, %304 in 1 : vector<16x32xf32>, vector<16x32xf32>, vector<16x32xf32>, vector<16x32xf32> -> vector<16x128xf32>
    %306 = arith.truncf %305 : vector<16x128xf32> to vector<16x128xbf16>
    %c0_90 = arith.constant 0 : index
    %c0_91 = arith.constant 0 : index
    %307 = vector.load %arg15[%c0_90, %c0_91] : memref<128x128xbf16, #tpu.memory_space<vmem>>, vector<128x128xbf16>
    %cst_92 = arith.constant dense<0.000000e+00> : vector<16x128xf32>
    %308 = tpu.matmul %306, %307, %cst_92 {dimension_numbers = #tpu.dot_dimension_numbers<[1], [0], [0], [1], [0, 0, 1, 1], [], []>} : vector<16x128xbf16>, vector<128x128xbf16>, vector<16x128xf32> -> vector<16x128xf32>
    %c0_93 = arith.constant 0 : index
    %c0_94 = arith.constant 0 : index
    %309 = vector.load %arg16[%c0_93, %c0_94] : memref<1x128xf32, #tpu.memory_space<vmem>>, vector<1x128xf32>
    %310 = vector.broadcast %309 : vector<1x128xf32> to vector<16x128xf32>
    %311 = arith.addf %308, %310 : vector<16x128xf32>
    %312 = arith.addf %177, %311 : vector<16x128xf32>
    %c0_95 = arith.constant 0 : index
    %c0_96 = arith.constant 0 : index
    %313 = vector.load %arg17[%c0_95, %c0_96] : memref<1x128xf32, #tpu.memory_space<vmem>>, vector<1x128xf32>
    %c0_97 = arith.constant 0 : index
    %c0_98 = arith.constant 0 : index
    %314 = vector.load %arg18[%c0_97, %c0_98] : memref<1x128xf32, #tpu.memory_space<vmem>>, vector<1x128xf32>
    %cst_99 = arith.constant dense<0.000000e+00> : vector<16xf32>
    %315 = vector.multi_reduction <add>, %312, %cst_99 [1] : vector<16x128xf32> to vector<16xf32>
    %316 = vector.shape_cast %315 : vector<16xf32> to vector<16x1xf32>
    %cst_100 = arith.constant 1.280000e+02 : f32
    %317 = vector.broadcast %cst_100 : f32 to vector<16x1xf32>
    %318 = arith.divf %316, %317 : vector<16x1xf32>
    %319 = vector.broadcast %318 : vector<16x1xf32> to vector<16x128xf32>
    %320 = arith.subf %312, %319 : vector<16x128xf32>
    %321 = arith.mulf %320, %320 : vector<16x128xf32>
    %cst_101 = arith.constant dense<0.000000e+00> : vector<16xf32>
    %322 = vector.multi_reduction <add>, %321, %cst_101 [1] : vector<16x128xf32> to vector<16xf32>
    %323 = vector.shape_cast %322 : vector<16xf32> to vector<16x1xf32>
    %cst_102 = arith.constant 1.280000e+02 : f32
    %324 = vector.broadcast %cst_102 : f32 to vector<16x1xf32>
    %325 = arith.divf %323, %324 : vector<16x1xf32>
    %cst_103 = arith.constant 9.99999974E-6 : f32
    %326 = vector.broadcast %cst_103 : f32 to vector<16x1xf32>
    %327 = arith.addf %325, %326 : vector<16x1xf32>
    %328 = math.rsqrt %327 : vector<16x1xf32>
    %329 = vector.broadcast %328 : vector<16x1xf32> to vector<16x128xf32>
    %330 = arith.mulf %320, %329 : vector<16x128xf32>
    %331 = vector.broadcast %313 : vector<1x128xf32> to vector<16x128xf32>
    %332 = arith.mulf %330, %331 : vector<16x128xf32>
    %333 = vector.broadcast %314 : vector<1x128xf32> to vector<16x128xf32>
    %334 = arith.addf %332, %333 : vector<16x128xf32>
    %335 = arith.truncf %334 : vector<16x128xf32> to vector<16x128xbf16>
    %c0_104 = arith.constant 0 : index
    %c0_105 = arith.constant 0 : index
    %336 = vector.load %arg19[%c0_104, %c0_105] : memref<128x512xbf16, #tpu.memory_space<vmem>>, vector<128x512xbf16>
    %cst_106 = arith.constant dense<0.000000e+00> : vector<16x512xf32>
    %337 = tpu.matmul %335, %336, %cst_106 {dimension_numbers = #tpu.dot_dimension_numbers<[1], [0], [0], [1], [0, 0, 1, 1], [], []>} : vector<16x128xbf16>, vector<128x512xbf16>, vector<16x512xf32> -> vector<16x512xf32>
    %c0_107 = arith.constant 0 : index
    %c0_108 = arith.constant 0 : index
    %338 = vector.load %arg20[%c0_107, %c0_108] : memref<1x512xf32, #tpu.memory_space<vmem>>, vector<1x512xf32>
    %339 = vector.broadcast %338 : vector<1x512xf32> to vector<16x512xf32>
    %340 = arith.addf %337, %339 : vector<16x512xf32>
    %cst_109 = arith.constant 0.000000e+00 : f32
    %341 = vector.broadcast %cst_109 : f32 to vector<16x512xf32>
    %342 = arith.maximumf %340, %341 : vector<16x512xf32>
    %343 = arith.truncf %342 : vector<16x512xf32> to vector<16x512xbf16>
    %c0_110 = arith.constant 0 : index
    %c0_111 = arith.constant 0 : index
    %344 = vector.load %arg21[%c0_110, %c0_111] : memref<512x128xbf16, #tpu.memory_space<vmem>>, vector<512x128xbf16>
    %cst_112 = arith.constant dense<0.000000e+00> : vector<16x128xf32>
    %345 = tpu.matmul %343, %344, %cst_112 {dimension_numbers = #tpu.dot_dimension_numbers<[1], [0], [0], [1], [0, 0, 1, 1], [], []>} : vector<16x512xbf16>, vector<512x128xbf16>, vector<16x128xf32> -> vector<16x128xf32>
    %c0_113 = arith.constant 0 : index
    %c0_114 = arith.constant 0 : index
    %346 = vector.load %arg22[%c0_113, %c0_114] : memref<1x128xf32, #tpu.memory_space<vmem>>, vector<1x128xf32>
    %347 = vector.broadcast %346 : vector<1x128xf32> to vector<16x128xf32>
    %348 = arith.addf %345, %347 : vector<16x128xf32>
    %349 = arith.addf %312, %348 : vector<16x128xf32>
    %c0_115 = arith.constant 0 : index
    %c0_116 = arith.constant 0 : index
    %350 = vector.load %arg23[%c0_115, %c0_116] : memref<1x128xf32, #tpu.memory_space<vmem>>, vector<1x128xf32>
    %c0_117 = arith.constant 0 : index
    %c0_118 = arith.constant 0 : index
    %351 = vector.load %arg24[%c0_117, %c0_118] : memref<1x128xf32, #tpu.memory_space<vmem>>, vector<1x128xf32>
    %cst_119 = arith.constant dense<0.000000e+00> : vector<16xf32>
    %352 = vector.multi_reduction <add>, %349, %cst_119 [1] : vector<16x128xf32> to vector<16xf32>
    %353 = vector.shape_cast %352 : vector<16xf32> to vector<16x1xf32>
    %cst_120 = arith.constant 1.280000e+02 : f32
    %354 = vector.broadcast %cst_120 : f32 to vector<16x1xf32>
    %355 = arith.divf %353, %354 : vector<16x1xf32>
    %356 = vector.broadcast %355 : vector<16x1xf32> to vector<16x128xf32>
    %357 = arith.subf %349, %356 : vector<16x128xf32>
    %358 = arith.mulf %357, %357 : vector<16x128xf32>
    %cst_121 = arith.constant dense<0.000000e+00> : vector<16xf32>
    %359 = vector.multi_reduction <add>, %358, %cst_121 [1] : vector<16x128xf32> to vector<16xf32>
    %360 = vector.shape_cast %359 : vector<16xf32> to vector<16x1xf32>
    %cst_122 = arith.constant 1.280000e+02 : f32
    %361 = vector.broadcast %cst_122 : f32 to vector<16x1xf32>
    %362 = arith.divf %360, %361 : vector<16x1xf32>
    %cst_123 = arith.constant 9.99999974E-6 : f32
    %363 = vector.broadcast %cst_123 : f32 to vector<16x1xf32>
    %364 = arith.addf %362, %363 : vector<16x1xf32>
    %365 = math.rsqrt %364 : vector<16x1xf32>
    %366 = vector.broadcast %365 : vector<16x1xf32> to vector<16x128xf32>
    %367 = arith.mulf %357, %366 : vector<16x128xf32>
    %368 = vector.broadcast %350 : vector<1x128xf32> to vector<16x128xf32>
    %369 = arith.mulf %367, %368 : vector<16x128xf32>
    %370 = vector.broadcast %351 : vector<1x128xf32> to vector<16x128xf32>
    %371 = arith.addf %369, %370 : vector<16x128xf32>
    %372 = arith.truncf %371 : vector<16x128xf32> to vector<16x128xbf16>
    %c0_124 = arith.constant 0 : index
    %c0_125 = arith.constant 0 : index
    %373 = vector.load %arg25[%c0_124, %c0_125] : memref<128x256xbf16, #tpu.memory_space<vmem>>, vector<128x256xbf16>
    %cst_126 = arith.constant dense<0.000000e+00> : vector<16x256xf32>
    %374 = tpu.matmul %372, %373, %cst_126 {dimension_numbers = #tpu.dot_dimension_numbers<[1], [0], [0], [1], [0, 0, 1, 1], [], []>} : vector<16x128xbf16>, vector<128x256xbf16>, vector<16x256xf32> -> vector<16x256xf32>
    %c0_127 = arith.constant 0 : index
    %c0_128 = arith.constant 0 : index
    %375 = vector.load %arg26[%c0_127, %c0_128] : memref<1x256xf32, #tpu.memory_space<vmem>>, vector<1x256xf32>
    %376 = vector.broadcast %375 : vector<1x256xf32> to vector<16x256xf32>
    %377 = arith.addf %374, %376 : vector<16x256xf32>
    %378 = vector.shape_cast %377 : vector<16x256xf32> to vector<2x8x256xf32>
    %c0_129 = arith.constant 0 : index
    %c0_130 = arith.constant 0 : index
    %c0_131 = arith.constant 0 : index
    %379 = vector.load %arg27[%c0_129, %c0_130, %c0_131] : memref<2x8x256xf32, #tpu.memory_space<vmem>>, vector<2x8x256xf32>
    tpu.vector_store %arg27[%c0_129, %c0_130, %c0_131], %378 {strides = array<i32>} : memref<2x8x256xf32, #tpu.memory_space<vmem>>, vector<2x8x256xf32>,
    return
  }
}

</mosaic_0001>

<bundles_post_ra>
// kernel: chatgpt_forward.1
= control target key start
LH: loop header
LB: loop body
LE: loop exit
PB: predicated region body
PF: predicated region fallthrough
CT: control target
= control target key end

     0   :  { %s7180_s0 = inlined_call_operand.vmem [shape: f32[2,8,128], index: 0, kind: input, shape index: {}]   ;;  %s7181_s1 = inlined_call_operand.vmem [shape: f32[1,128], index: 1, kind: input, shape index: {}]   ;;  %s7182_s2 = inlined_call_operand.vmem [shape: f32[1,128], index: 2, kind: input, shape index: {}]   ;;  %s7183_s3 = inlined_call_operand.hbm [shape: bf16[128,384], index: 3, kind: input, shape index: {}]   ;;  %s7184_s4 = inlined_call_operand.hbm [shape: bf16[128,128], index: 4, kind: input, shape index: {}]   ;;  %s7185_s5 = inlined_call_operand.vmem [shape: f32[1,128], index: 5, kind: input, shape index: {}]   ;;  %s7186_s6 = inlined_call_operand.hbm [shape: f32[1,128], index: 6, kind: input, shape index: {}]   ;;  %s7187_s7 = inlined_call_operand.hbm [shape: f32[1,128], index: 7, kind: input, shape index: {}]   ;;  %s7188_s8 = inlined_call_operand.hbm [shape: bf16[128,512], index: 8, kind: input, shape index: {}]   ;;  %s7189_s9 = inlined_call_operand.vmem [shape: f32[1,512], index: 9, kind: input, shape index: {}]   ;;  %s7190_s10 = inlined_call_operand.hbm [shape: bf16[512,128], index: 10, kind: input, shape index: {}]   ;;  %s7191_s11 = inlined_call_operand.hbm [shape: f32[1,128], index: 11, kind: input, shape index: {}]   ;;  %s7192_s12 = inlined_call_operand.hbm [shape: f32[1,128], index: 12, kind: input, shape index: {}]   ;;  %s7193_s13 = inlined_call_operand.hbm [shape: f32[1,128], index: 13, kind: input, shape index: {}]   ;;  %s7194_s14 = inlined_call_operand.hbm [shape: bf16[128,384], index: 14, kind: input, shape index: {}]   ;;  %s7195_s15 = inlined_call_operand.hbm [shape: bf16[128,128], index: 15, kind: input, shape index: {}]   ;;  %s7196_s16 = inlined_call_operand.hbm [shape: f32[1,128], index: 16, kind: input, shape index: {}]   ;;  %s7197_s17 = inlined_call_operand.hbm [shape: f32[1,128], index: 17, kind: input, shape index: {}]   ;;  %s7198_s18 = inlined_call_operand.hbm [shape: f32[1,128], index: 18, kind: input, shape index: {}]   ;;  %s7199_s19 = inlined_call_operand.vmem [shape: bf16[128,512], index: 19, kind: input, shape index: {}]   ;;  %s7200_s20 = inlined_call_operand.vmem [shape: f32[1,512], index: 20, kind: input, shape index: {}]   ;;  %s7201_s21 = inlined_call_operand.hbm [shape: bf16[512,128], index: 21, kind: input, shape index: {}]   ;;  %s7202_s22 = inlined_call_operand.hbm [shape: f32[1,128], index: 22, kind: input, shape index: {}]   ;;  %s7203_s23 = inlined_call_operand.vmem [shape: f32[1,128], index: 23, kind: input, shape index: {}]   ;;  %s7204_s24 = inlined_call_operand.vmem [shape: f32[1,128], index: 24, kind: input, shape index: {}]   ;;  %s7205_s25 = inlined_call_operand.hbm [shape: bf16[128,256], index: 25, kind: input, shape index: {}]   ;;  %s7206_s26 = inlined_call_operand.vmem [shape: f32[1,256], index: 26, kind: input, shape index: {}]   ;;  %s7207_s27 = inlined_call_operand.hbm [shape: f32[2,8,256], index: 27, kind: output, shape index: {}]  }
   0x1   :  { %7217 = sst [smem:[#allocation40_spill]] %s7180_s0 }
   0x2   :  { %7218 = sst [smem:[#allocation41_spill]] %s7181_s1 }
   0x3   :  { %7219 = sst [smem:[#allocation42_spill]] %s7182_s2 }
   0x4   :  { %7220 = sst [smem:[#allocation43_spill]] %s7183_s3 }
   0x5   :  { %7221 = sst [smem:[#allocation44_spill]] %s7184_s4 }
   0x6   :  { %7222 = sst [smem:[#allocation45_spill]] %s7185_s5 }
   0x7   :  { %7223 = sst [smem:[#allocation46_spill]] %s7186_s6 }
   0x8   :  { %7224 = sst [smem:[#allocation47_spill]] %s7187_s7 }
   0x9   :  { %7225 = sst [smem:[#allocation48_spill]] %s7188_s8 }
   0xa   :  { %7226 = sst [smem:[#allocation49_spill]] %s7189_s9 }
   0xb   :  { %7227 = sst [smem:[#allocation50_spill]] %s7190_s10 }
   0xc   :  { %7228 = sst [smem:[#allocation51_spill]] %s7191_s11 }
   0xd   :  { %7229 = sst [smem:[#allocation52_spill]] %s7204_s24 }
   0xe   :  { %7230 = sst [smem:[#allocation53_spill]] %s7206_s26 }
   0xf   :  { %7231 = sst [smem:[#allocation54_spill]] %s7207_s27 }
  0x10   :  { %32 = vsyncpa [#allocation3], 0 }
  0x11   :  { %33 = vsyncpa [#allocation6], 0 }
  0x12   :  { %34 = vsyncpa [#allocation9], 0 }
  0x13   :  { %35 = vsyncpa [#allocation12], 0 }
  0x14   :  { %36 = vsyncpa [#allocation15], 0 }
  0x15   :  { %37 = vsyncpa [#allocation18], 0 }
  0x16   :  { %38 = vsyncpa [#allocation21], 0 }
  0x17   :  { %39 = vsyncpa [#allocation24], 0 }
  0x18   :  { %40 = vsyncpa [#allocation27], 0 }
  0x19   :  { %41 = vsyncpa [#allocation4], 0  ;;  %s6113_s7 = smov [#allocation5]   ;;  %s7232_s9 = sld [smem:[#allocation44_spill]] }
  0x1a   :  { %s65_s4 = sshll.u32 %s6113_s7, 4  ;;  %s66_s4 = int_to_ptr.vmem [resolvable:$true] %s65_s4 }
  0x1f   :  { %s5697_s5 = scalar_lea.hbm %s7232_s9, 1024 }
  0x20   :  { %p5698_p0 = scmp.ne.s32.totalorder %s7232_s9, %s5697_s5  ;;  %p5701_p1 = scmp.lt.u32.totalorder %s5697_s5, %s7232_s9 }
  0x22   :  { %p5703_p2 = pnand %p5701_p1, %p5698_p0 }
  0x24   :  { %5706 = shalt.err (!%p5703_p2)
}
  0x25   :  { %s5707_s1 = scalar_lea.vmem %s66_s4, 1024  ;;  %p5712_p4 = scmp.lt.s32.totalorder %s66_s4, %s66_s4 }
  0x26   :  { %p5708_p3 = scmp.ne.s32.totalorder %s66_s4, %s5707_s1  ;;  %p5713_p5 = scmp.lt.s32.totalorder %s5707_s1, %s5707_s1 }
  0x28   :  { %p5714_p6 = por %p5713_p5, %p5712_p4 }
  0x2a   :  { %p5715_p7 = pnand %p5714_p6, %p5708_p3 }
  0x2c   :  { %5718 = shalt.err (!%p5715_p7)
}
  0x2d   :  { %s6114_s6 = smov 64   ;;  %s6115_s11 = smov 4  }
  0x2e   :  { %71 = dma.hbm_to_vmem [thread:$0]  %s7232_s9, 1024, %s66_s4, [#allocation6], %s6114_s6, %s6114_s6, %s6115_s11  }
  0x2f   :  { %s6116_s7 = smov [#allocation8]   ;;  %s6117_s30 = smov [#allocation11]  }
  0x30   :  { %s90_s8 = sshll.u32 %s6116_s7, 4  ;;  %s113_s5 = sshll.u32 %s6117_s30, 4  ;;  %s91_s8 = int_to_ptr.vmem [resolvable:$true] %s90_s8  ;;  %s114_s5 = int_to_ptr.vmem [resolvable:$true] %s113_s5 }
  0x31   :  { %s7233_s10 = sld [smem:[#allocation47_spill]] }
  0x37   :  { %s5719_s29 = scalar_lea.hbm %s7233_s10, 16 }
  0x38   :  { %p5720_p8 = scmp.ne.s32.totalorder %s7233_s10, %s5719_s29  ;;  %p5723_p9 = scmp.lt.u32.totalorder %s5719_s29, %s7233_s10 }
  0x3a   :  { %p5725_p10 = pnand %p5723_p9, %p5720_p8 }
  0x3c   :  { %5728 = shalt.err (!%p5725_p10)
}
  0x3d   :  { %s5729_s4 = scalar_lea.vmem %s91_s8, 16  ;;  %s5733_s9 = scalar_lea.vmem %s91_s8, 32 }
  0x3e   :  { %p5730_p11 = scmp.ne.s32.totalorder %s91_s8, %s5729_s4  ;;  %p5734_p12 = scmp.lt.s32.totalorder %s91_s8, %s91_s8 }
  0x3f   :  { %p5735_p13 = scmp.lt.s32.totalorder %s5733_s9, %s5729_s4 }
  0x41   :  { %p5736_p0 = por %p5735_p13, %p5734_p12 }
  0x43   :  { %p5737_p1 = pnand %p5736_p0, %p5730_p11 }
  0x45   :  { %5740 = shalt.err (!%p5737_p1)
}
  0x46   :  { %93 = dma.hbm_to_vmem [thread:$0]  %s7233_s10, 16, %s91_s8, [#allocation9]  }
  0x47   :  { %s7234_s30 = sld [smem:[#allocation50_spill]] }
  0x4d   :  { %s5741_s24 = scalar_lea.hbm %s7234_s30, 4096 }
  0x4e   :  { %p5742_p2 = scmp.ne.s32.totalorder %s7234_s30, %s5741_s24  ;;  %p5745_p3 = scmp.lt.u32.totalorder %s5741_s24, %s7234_s30 }
  0x50   :  { %p5747_p4 = pnand %p5745_p3, %p5742_p2 }
  0x52   :  { %5750 = shalt.err (!%p5747_p4)
}
  0x53   :  { %s5751_s1 = scalar_lea.vmem %s114_s5, 4096  ;;  %p5756_p6 = scmp.lt.s32.totalorder %s114_s5, %s114_s5 }
  0x54   :  { %p5752_p5 = scmp.ne.s32.totalorder %s114_s5, %s5751_s1  ;;  %p5757_p7 = scmp.lt.s32.totalorder %s5751_s1, %s5751_s1 }
  0x56   :  { %p5758_p8 = por %p5757_p7, %p5756_p6 }
  0x58   :  { %p5759_p9 = pnand %p5758_p8, %p5752_p5 }
  0x5a   :  { %5762 = shalt.err (!%p5759_p9)
}
  0x5b   :  { %119 = dma.hbm_to_vmem [thread:$0]  %s7234_s30, 4096, %s114_s5, [#allocation12], %s6114_s6, %s6114_s6, %s6115_s11  }
  0x5c   :  { %s6118_s4 = smov [#allocation14]   ;;  %s5763_s27 = scalar_lea.hbm %s7192_s12, 16 }
  0x5d   :  { %s136_s9 = sshll.u32 %s6118_s4, 4  ;;  %p5764_p10 = scmp.ne.s32.totalorder %s7192_s12, %s5763_s27  ;;  %s137_s9 = int_to_ptr.vmem [resolvable:$true] %s136_s9 }
  0x5e   :  { %p5767_p11 = scmp.lt.u32.totalorder %s5763_s27, %s7192_s12 }
  0x60   :  { %p5769_p12 = pnand %p5767_p11, %p5764_p10 }
  0x62   :  { %5772 = shalt.err (!%p5769_p12)
}
  0x63   :  { %s5773_s0 = scalar_lea.vmem %s137_s9, 16  ;;  %s5777_s5 = scalar_lea.vmem %s137_s9, 32 }
  0x64   :  { %p5774_p13 = scmp.ne.s32.totalorder %s137_s9, %s5773_s0  ;;  %p5778_p0 = scmp.lt.s32.totalorder %s137_s9, %s137_s9 }
  0x65   :  { %p5779_p1 = scmp.lt.s32.totalorder %s5777_s5, %s5773_s0 }
  0x67   :  { %p5780_p2 = por %p5779_p1, %p5778_p0 }
  0x69   :  { %p5781_p3 = pnand %p5780_p2, %p5774_p13 }
  0x6b   :  { %5784 = shalt.err (!%p5781_p3)
}
  0x6c   :  { %139 = dma.hbm_to_vmem [thread:$0]  %s7192_s12, 16, %s137_s9, [#allocation15]  }
  0x6d   :  { %s6119_s1 = smov [#allocation17]   ;;  %s6120_s10 = smov [#allocation20]  }
  0x6e   :  { %s155_s8 = sshll.u32 %s6119_s1, 4  ;;  %s180_s4 = sshll.u32 %s6120_s10, 4  ;;  %s156_s8 = int_to_ptr.vmem [resolvable:$true] %s155_s8  ;;  %s6338_s4 = int_to_ptr.vmem [resolvable:$true] %s180_s4 }
  0x6f   :  { %s5785_s27 = scalar_lea.hbm %s7194_s14, 3072 }
  0x70   :  { %p5786_p4 = scmp.ne.s32.totalorder %s7194_s14, %s5785_s27  ;;  %p5789_p5 = scmp.lt.u32.totalorder %s5785_s27, %s7194_s14 }
  0x72   :  { %p5791_p6 = pnand %p5789_p5, %p5786_p4 }
  0x74   :  { %5794 = shalt.err (!%p5791_p6)
}
  0x75   :  { %s5795_s12 = scalar_lea.vmem %s156_s8, 3072  ;;  %p5800_p8 = scmp.lt.s32.totalorder %s156_s8, %s156_s8 }
  0x76   :  { %p5796_p7 = scmp.ne.s32.totalorder %s156_s8, %s5795_s12  ;;  %p5801_p9 = scmp.lt.s32.totalorder %s5795_s12, %s5795_s12 }
  0x78   :  { %p5802_p10 = por %p5801_p9, %p5800_p8 }
  0x7a   :  { %p5803_p11 = pnand %p5802_p10, %p5796_p7 }
  0x7c   :  { %5806 = shalt.err (!%p5803_p11)
}
  0x7d   :  { %s6121_s9 = smov 192   ;;  %s6122_s0 = smov 12  }
  0x7e   :  { %161 = dma.hbm_to_vmem [thread:$0]  %s7194_s14, 3072, %s156_s8, [#allocation18], %s6121_s9, %s6121_s9, %s6122_s0  }
  0x7f   :  { %s5807_s10 = scalar_lea.hbm %s7196_s16, 16 }
  0x80   :  { %p5808_p12 = scmp.ne.s32.totalorder %s7196_s16, %s5807_s10  ;;  %p5811_p13 = scmp.lt.u32.totalorder %s5807_s10, %s7196_s16 }
  0x82   :  { %p5813_p0 = pnand %p5811_p13, %p5808_p12 }
  0x84   :  { %5816 = shalt.err (!%p5813_p0)
}
  0x85   :  { %s5817_s24 = scalar_lea.vmem %s6338_s4, 16  ;;  %s5821_s14 = scalar_lea.vmem %s6338_s4, 32 }
  0x86   :  { %p5818_p1 = scmp.ne.s32.totalorder %s6338_s4, %s5817_s24  ;;  %p5822_p2 = scmp.lt.s32.totalorder %s6338_s4, %s6338_s4 }
  0x87   :  { %p5823_p3 = scmp.lt.s32.totalorder %s5821_s14, %s5817_s24 }
  0x89   :  { %p5824_p4 = por %p5823_p3, %p5822_p2 }
  0x8b   :  { %p5825_p5 = pnand %p5824_p4, %p5818_p1 }
  0x8d   :  { %5828 = shalt.err (!%p5825_p5)
}
  0x8e   :  { %183 = dma.hbm_to_vmem [thread:$0]  %s7196_s16, 16, %s6338_s4, [#allocation21]  }
  0x8f   :  { %s6123_s28 = smov [#allocation23]   ;;  %s6124_s5 = smov [#allocation26]  }
  0x90   :  { %s200_s12 = sshll.u32 %s6123_s28, 4  ;;  %s226_s30 = sshll.u32 %s6124_s5, 4  ;;  %s201_s12 = int_to_ptr.vmem [resolvable:$true] %s200_s12  ;;  %s227_s30 = int_to_ptr.vmem [resolvable:$true] %s226_s30 }
  0x91   :  { %s5829_s10 = scalar_lea.hbm %s7198_s18, 16 }
  0x92   :  { %p5830_p6 = scmp.ne.s32.totalorder %s7198_s18, %s5829_s10  ;;  %p5833_p7 = scmp.lt.u32.totalorder %s5829_s10, %s7198_s18 }
  0x94   :  { %p5835_p8 = pnand %p5833_p7, %p5830_p6 }
  0x96   :  { %5838 = shalt.err (!%p5835_p8)
}
  0x97   :  { %s5839_s16 = scalar_lea.vmem %s201_s12, 16  ;;  %s5843_s4 = scalar_lea.vmem %s201_s12, 32 }
  0x98   :  { %p5840_p9 = scmp.ne.s32.totalorder %s201_s12, %s5839_s16  ;;  %p5844_p10 = scmp.lt.s32.totalorder %s201_s12, %s201_s12 }
  0x99   :  { %p5845_p11 = scmp.lt.s32.totalorder %s5843_s4, %s5839_s16 }
  0x9b   :  { %p5846_p12 = por %p5845_p11, %p5844_p10 }
  0x9d   :  { %p5847_p13 = pnand %p5846_p12, %p5840_p9 }
  0x9f   :  { %5850 = shalt.err (!%p5847_p13)
}
  0xa0   :  { %203 = dma.hbm_to_vmem [thread:$0]  %s7198_s18, 16, %s201_s12, [#allocation24]  }
  0xa1   :  { %s5851_s28 = scalar_lea.hbm %s7202_s22, 16 }
  0xa2   :  { %p5852_p0 = scmp.ne.s32.totalorder %s7202_s22, %s5851_s28  ;;  %p5855_p1 = scmp.lt.u32.totalorder %s5851_s28, %s7202_s22 }
  0xa4   :  { %p5857_p2 = pnand %p5855_p1, %p5852_p0 }
  0xa6   :  { %5860 = shalt.err (!%p5857_p2)
}
  0xa7   :  { %s5861_s2 = scalar_lea.vmem %s227_s30, 16  ;;  %s5865_s3 = scalar_lea.vmem %s227_s30, 32 }
  0xa8   :  { %p5862_p3 = scmp.ne.s32.totalorder %s227_s30, %s5861_s2  ;;  %p5866_p4 = scmp.lt.s32.totalorder %s227_s30, %s227_s30 }
  0xa9   :  { %p5867_p5 = scmp.lt.s32.totalorder %s5865_s3, %s5861_s2 }
  0xab   :  { %p5868_p6 = por %p5867_p5, %p5866_p4 }
  0xad   :  { %p5869_p7 = pnand %p5868_p6, %p5862_p3 }
  0xaf   :  { %5872 = shalt.err (!%p5869_p7)
}
  0xb0   :  { %229 = dma.hbm_to_vmem [thread:$0]  %s7202_s22, 16, %s227_s30, [#allocation27]  }
  0xb1   :  { %s6125_s27 = smov [#allocation2]   ;;  %s6126_s16 = smov [#allocation7]  }
  0xb2   :  { %s53_s7 = sshll.u32 %s6125_s27, 4  ;;  %s80_s4 = sshll.u32 %s6126_s16, 4  ;;  %s54_s7 = int_to_ptr.vmem [resolvable:$true] %s53_s7  ;;  %s81_s4 = int_to_ptr.vmem [resolvable:$true] %s80_s4 }
  0xb3   :  { %s7235_s8 = sld [smem:[#allocation43_spill]] }
  0xb9   :  { %s5873_s26 = scalar_lea.hbm %s7235_s8, 3072 }
  0xba   :  { %p5874_p8 = scmp.ne.s32.totalorder %s7235_s8, %s5873_s26  ;;  %p5877_p9 = scmp.lt.u32.totalorder %s5873_s26, %s7235_s8 }
  0xbc   :  { %p5879_p10 = pnand %p5877_p9, %p5874_p8 }
  0xbe   :  { %5882 = shalt.err (!%p5879_p10)
}
  0xbf   :  { %s5883_s22 = scalar_lea.vmem %s54_s7, 3072  ;;  %p5888_p12 = scmp.lt.s32.totalorder %s54_s7, %s54_s7 }
  0xc0   :  { %p5884_p11 = scmp.ne.s32.totalorder %s54_s7, %s5883_s22  ;;  %p5889_p13 = scmp.lt.s32.totalorder %s5883_s22, %s5883_s22 }
  0xc2   :  { %p5890_p0 = por %p5889_p13, %p5888_p12 }
  0xc4   :  { %p5891_p1 = pnand %p5890_p0, %p5884_p11 }
  0xc6   :  { %5894 = shalt.err (!%p5891_p1)
}
  0xc7   :  { %59 = dma.hbm_to_vmem [thread:$0]  %s7235_s8, 3072, %s54_s7, [#allocation3], %s6121_s9, %s6121_s9, %s6122_s0  }
  0xc8   :  { %s7236_s18 = sld [smem:[#allocation46_spill]] }
  0xce   :  { %s5895_s12 = scalar_lea.hbm %s7236_s18, 16 }
  0xcf   :  { %p5896_p2 = scmp.ne.s32.totalorder %s7236_s18, %s5895_s12  ;;  %p5899_p3 = scmp.lt.u32.totalorder %s5895_s12, %s7236_s18 }
  0xd1   :  { %p5901_p4 = pnand %p5899_p3, %p5896_p2 }
  0xd3   :  { %5904 = shalt.err (!%p5901_p4)
}
  0xd4   :  { %s5905_s26 = scalar_lea.vmem %s81_s4, 16  ;;  %s5909_s28 = scalar_lea.vmem %s81_s4, 32 }
  0xd5   :  { %p5906_p5 = scmp.ne.s32.totalorder %s81_s4, %s5905_s26  ;;  %p5910_p6 = scmp.lt.s32.totalorder %s81_s4, %s81_s4 }
  0xd6   :  { %p5911_p7 = scmp.lt.s32.totalorder %s5909_s28, %s5905_s26 }
  0xd8   :  { %p5912_p8 = por %p5911_p7, %p5910_p6 }
  0xda   :  { %p5913_p9 = pnand %p5912_p8, %p5906_p5 }
  0xdc   :  { %5916 = shalt.err (!%p5913_p9)
}
  0xdd   :  { %83 = dma.hbm_to_vmem [thread:$0]  %s7236_s18, 16, %s81_s4, [#allocation6]  }
  0xde   :  { %s6127_s7 = smov [#allocation10]   ;;  %s7237_s1 = sld [smem:[#allocation48_spill]] }
  0xdf   :  { %s99_s8 = sshll.u32 %s6127_s7, 4  ;;  %s100_s8 = int_to_ptr.vmem [resolvable:$true] %s99_s8 }
  0xe4   :  { %s5917_s22 = scalar_lea.hbm %s7237_s1, 4096 }
  0xe5   :  { %p5918_p10 = scmp.ne.s32.totalorder %s7237_s1, %s5917_s22  ;;  %p5921_p11 = scmp.lt.u32.totalorder %s5917_s22, %s7237_s1 }
  0xe7   :  { %p5923_p12 = pnand %p5921_p11, %p5918_p10 }
  0xe9   :  { %5926 = shalt.err (!%p5923_p12)
}
  0xea   :  { %s5927_s12 = scalar_lea.vmem %s100_s8, 4096  ;;  %p5932_p0 = scmp.lt.s32.totalorder %s100_s8, %s100_s8 }
  0xeb   :  { %p5928_p13 = scmp.ne.s32.totalorder %s100_s8, %s5927_s12  ;;  %p5933_p1 = scmp.lt.s32.totalorder %s5927_s12, %s5927_s12 }
  0xed   :  { %p5934_p2 = por %p5933_p1, %p5932_p0 }
  0xef   :  { %p5935_p3 = pnand %p5934_p2, %p5928_p13 }
  0xf1   :  { %5938 = shalt.err (!%p5935_p3)
}
  0xf2   :  { %s6128_s4 = smov 256   ;;  %s6129_s18 = smov 16  }
  0xf3   :  { %105 = dma.hbm_to_vmem [thread:$0]  %s7237_s1, 4096, %s100_s8, [#allocation9], %s6128_s4, %s6128_s4, %s6129_s18  }
  0xf4   :  { %s6130_s24 = smov [#allocation13]   ;;  %s6131_s26 = smov [#allocation16]  }
  0xf5   :  { %s126_s14 = sshll.u32 %s6130_s24, 4  ;;  %s146_s28 = sshll.u32 %s6131_s26, 4  ;;  %s127_s14 = int_to_ptr.vmem [resolvable:$true] %s126_s14  ;;  %s147_s28 = int_to_ptr.vmem [resolvable:$true] %s146_s28 }
  0xf6   :  { %s7238_s7 = sld [smem:[#allocation51_spill]] }
  0xfc   :  { %s5939_s5 = scalar_lea.hbm %s7238_s7, 16 }
  0xfd   :  { %p5940_p4 = scmp.ne.s32.totalorder %s7238_s7, %s5939_s5  ;;  %p5943_p5 = scmp.lt.u32.totalorder %s5939_s5, %s7238_s7 }
  0xff   :  { %p5945_p6 = pnand %p5943_p5, %p5940_p4 }
 0x101   :  { %5948 = shalt.err (!%p5945_p6)
}
 0x102   :  { %s5949_s8 = scalar_lea.vmem %s127_s14, 16  ;;  %s5953_s1 = scalar_lea.vmem %s127_s14, 32 }
 0x103   :  { %p5950_p7 = scmp.ne.s32.totalorder %s127_s14, %s5949_s8  ;;  %p5954_p8 = scmp.lt.s32.totalorder %s127_s14, %s127_s14 }
 0x104   :  { %p5955_p9 = scmp.lt.s32.totalorder %s5953_s1, %s5949_s8 }
 0x106   :  { %p5956_p10 = por %p5955_p9, %p5954_p8 }
 0x108   :  { %p5957_p11 = pnand %p5956_p10, %p5950_p7 }
 0x10a   :  { %5960 = shalt.err (!%p5957_p11)
}
 0x10b   :  { %129 = dma.hbm_to_vmem [thread:$0]  %s7238_s7, 16, %s127_s14, [#allocation12]  }
 0x10c   :  { %s5961_s16 = scalar_lea.hbm %s7193_s13, 16 }
 0x10d   :  { %p5962_p12 = scmp.ne.s32.totalorder %s7193_s13, %s5961_s16  ;;  %p5965_p13 = scmp.lt.u32.totalorder %s5961_s16, %s7193_s13 }
 0x10f   :  { %p5967_p0 = pnand %p5965_p13, %p5962_p12 }
 0x111   :  { %5970 = shalt.err (!%p5967_p0)
}
 0x112   :  { %s5971_s5 = scalar_lea.vmem %s147_s28, 16  ;;  %s5975_s29 = scalar_lea.vmem %s147_s28, 32 }
 0x113   :  { %p5972_p1 = scmp.ne.s32.totalorder %s147_s28, %s5971_s5  ;;  %p5976_p2 = scmp.lt.s32.totalorder %s147_s28, %s147_s28 }
 0x114   :  { %p5977_p3 = scmp.lt.s32.totalorder %s5975_s29, %s5971_s5 }
 0x116   :  { %p5978_p4 = por %p5977_p3, %p5976_p2 }
 0x118   :  { %p5979_p5 = pnand %p5978_p4, %p5972_p1 }
 0x11a   :  { %5982 = shalt.err (!%p5979_p5)
}
 0x11b   :  { %149 = dma.hbm_to_vmem [thread:$0]  %s7193_s13, 16, %s147_s28, [#allocation15]  }
 0x11c   :  { %s6132_s22 = smov [#allocation19]   ;;  %s6133_s10 = smov [#allocation22]  }
 0x11d   :  { %s167_s30 = sshll.u32 %s6132_s22, 4  ;;  %s190_s8 = sshll.u32 %s6133_s10, 4  ;;  %s168_s30 = int_to_ptr.vmem [resolvable:$true] %s167_s30  ;;  %s191_s8 = int_to_ptr.vmem [resolvable:$true] %s190_s8 }
 0x11e   :  { %s5983_s3 = scalar_lea.hbm %s7195_s15, 1024 }
 0x11f   :  { %p5984_p6 = scmp.ne.s32.totalorder %s7195_s15, %s5983_s3  ;;  %p5987_p7 = scmp.lt.u32.totalorder %s5983_s3, %s7195_s15 }
 0x121   :  { %p5989_p8 = pnand %p5987_p7, %p5984_p6 }
 0x123   :  { %5992 = shalt.err (!%p5989_p8)
}
 0x124   :  { %s5993_s13 = scalar_lea.vmem %s168_s30, 1024  ;;  %p5998_p10 = scmp.lt.s32.totalorder %s168_s30, %s168_s30 }
 0x125   :  { %p5994_p9 = scmp.ne.s32.totalorder %s168_s30, %s5993_s13  ;;  %p5999_p11 = scmp.lt.s32.totalorder %s5993_s13, %s5993_s13 }
 0x127   :  { %p6000_p12 = por %p5999_p11, %p5998_p10 }
 0x129   :  { %p6001_p13 = pnand %p6000_p12, %p5994_p9 }
 0x12b   :  { %6004 = shalt.err (!%p6001_p13)
}
 0x12c   :  { %173 = dma.hbm_to_vmem [thread:$0]  %s7195_s15, 1024, %s168_s30, [#allocation18], %s6114_s6, %s6114_s6, %s6115_s11  }
 0x12d   :  { %s6005_s5 = scalar_lea.hbm %s7197_s17, 16 }
 0x12e   :  { %p6006_p0 = scmp.ne.s32.totalorder %s7197_s17, %s6005_s5  ;;  %p6009_p1 = scmp.lt.u32.totalorder %s6005_s5, %s7197_s17 }
 0x130   :  { %p6011_p2 = pnand %p6009_p1, %p6006_p0 }
 0x132   :  { %6014 = shalt.err (!%p6011_p2)
}
 0x133   :  { %s6015_s10 = scalar_lea.vmem %s191_s8, 16  ;;  %s6019_s1 = scalar_lea.vmem %s191_s8, 32 }
 0x134   :  { %p6016_p3 = scmp.ne.s32.totalorder %s191_s8, %s6015_s10  ;;  %p6020_p4 = scmp.lt.s32.totalorder %s191_s8, %s191_s8 }
 0x135   :  { %p6021_p5 = scmp.lt.s32.totalorder %s6019_s1, %s6015_s10 }
 0x137   :  { %p6022_p6 = por %p6021_p5, %p6020_p4 }
 0x139   :  { %p6023_p7 = pnand %p6022_p6, %p6016_p3 }
 0x13b   :  { %6026 = shalt.err (!%p6023_p7)
}
 0x13c   :  { %193 = dma.hbm_to_vmem [thread:$0]  %s7197_s17, 16, %s191_s8, [#allocation21]  }
 0x13d   :  { %s6134_s2 = smov [#allocation25]   ;;  %s6135_s12 = smov [#allocation28]  }
 0x13e   :  { %s213_s3 = sshll.u32 %s6134_s2, 4  ;;  %s239_s27 = sshll.u32 %s6135_s12, 4  ;;  %s214_s3 = int_to_ptr.vmem [resolvable:$true] %s213_s3  ;;  %s240_s27 = int_to_ptr.vmem [resolvable:$true] %s239_s27 }
 0x13f   :  { %s6027_s13 = scalar_lea.hbm %s7201_s21, 4096 }
 0x140   :  { %p6028_p8 = scmp.ne.s32.totalorder %s7201_s21, %s6027_s13  ;;  %p6031_p9 = scmp.lt.u32.totalorder %s6027_s13, %s7201_s21 }
 0x142   :  { %p6033_p10 = pnand %p6031_p9, %p6028_p8 }
 0x144   :  { %6036 = shalt.err (!%p6033_p10)
}
 0x145   :  { %s6037_s17 = scalar_lea.vmem %s214_s3, 4096  ;;  %p6042_p12 = scmp.lt.s32.totalorder %s214_s3, %s214_s3 }
 0x146   :  { %p6038_p11 = scmp.ne.s32.totalorder %s214_s3, %s6037_s17  ;;  %p6043_p13 = scmp.lt.s32.totalorder %s6037_s17, %s6037_s17 }
 0x148   :  { %p6044_p0 = por %p6043_p13, %p6042_p12 }
 0x14a   :  { %p6045_p1 = pnand %p6044_p0, %p6038_p11 }
 0x14c   :  { %6048 = shalt.err (!%p6045_p1)
}
 0x14d   :  { %219 = dma.hbm_to_vmem [thread:$0]  %s7201_s21, 4096, %s214_s3, [#allocation24], %s6114_s6, %s6114_s6, %s6115_s11  }
 0x14e   :  { %s6049_s7 = scalar_lea.hbm %s7205_s25, 2048 }
 0x14f   :  { %p6050_p2 = scmp.ne.s32.totalorder %s7205_s25, %s6049_s7  ;;  %p6053_p3 = scmp.lt.u32.totalorder %s6049_s7, %s7205_s25 }
 0x151   :  { %p6055_p4 = pnand %p6053_p3, %p6050_p2 }
 0x153   :  { %6058 = shalt.err (!%p6055_p4)
}
 0x154   :  { %s6059_s30 = scalar_lea.vmem %s240_s27, 2048  ;;  %p6064_p6 = scmp.lt.s32.totalorder %s240_s27, %s240_s27 }
 0x155   :  { %p6060_p5 = scmp.ne.s32.totalorder %s240_s27, %s6059_s30  ;;  %p6065_p7 = scmp.lt.s32.totalorder %s6059_s30, %s6059_s30 }
 0x157   :  { %p6066_p8 = por %p6065_p7, %p6064_p6 }
 0x159   :  { %p6067_p9 = pnand %p6066_p8, %p6060_p5 }
 0x15b   :  { %6070 = shalt.err (!%p6067_p9)
}
 0x15c   :  { %s6136_s21 = smov 128   ;;  %s6137_s11 = smov 8  }
 0x15d   :  { %245 = dma.hbm_to_vmem [thread:$0]  %s7205_s25, 2048, %s240_s27, [#allocation27], %s6136_s21, %s6136_s21, %s6137_s11  }
 0x15e   :  { %6093 = dma.done.wait [#allocation3], 3072  }
 0x15f   :  { %6094 = vsyncadd [#allocation3], 4294964224 }
 0x160   :  { %6095 = dma.done.wait [#allocation6], 1040  }
 0x161   :  { %6096 = vsyncadd [#allocation6], 4294966256 }
 0x162   :  { %6097 = dma.done.wait [#allocation9], 4112  }
 0x163   :  { %6098 = vsyncadd [#allocation9], 4294963184 }
 0x164   :  { %6099 = dma.done.wait [#allocation12], 4112  }
 0x165   :  { %6100 = vsyncadd [#allocation12], 4294963184 }
 0x166   :  { %6101 = dma.done.wait [#allocation15], 32  }
 0x167   :  { %6102 = vsyncadd [#allocation15], 4294967264 }
 0x168   :  { %6103 = dma.done.wait [#allocation18], 4096  }
 0x169   :  { %6104 = vsyncadd [#allocation18], 4294963200 }
 0x16a   :  { %6105 = dma.done.wait [#allocation21], 32  }
 0x16b   :  { %6106 = vsyncadd [#allocation21], 4294967264 }
 0x16c   :  { %6107 = dma.done.wait [#allocation24], 4112  }
 0x16d   :  { %6108 = vsyncadd [#allocation24], 4294963184 }
 0x16e   :  { %6109 = dma.done.wait [#allocation27], 2064  }
 0x16f   :  { %6110 = vsyncadd [#allocation27], 4294965232  ;;  %s7239_s27 = sld [smem:[#allocation40_spill]]  ;;  %v5347_v2 = vld [vmem:[#allocation2 + $0x4] ss:$12 sps:$4 sm:$0xff]   ;;  %v6138_v4 = vmov 0.0  }
 0x170   :  { %v5349_v3 = vld [vmem:[#allocation2] ss:$12 sps:$4 sm:$0xff]   ;;  %5014 = vmatprep.subr.bf16.mxu1 %v6138_v4  ;;  %v5350_v5 = vld [vmem:[#allocation2 + $0x8] ss:$12 sps:$4 sm:$0xff]   ;;  %509 = vmatprep.subr.bf16.mxu0 %v5347_v2  ;;  %v5353_v15 = vld [vmem:[#allocation2 + $0x18] ss:$12 sps:$4 sm:$0xff]  }
 0x171   :  { %v5351_v6 = vld [vmem:[#allocation2 + $0x1c] ss:$12 sps:$4 sm:$0xff]   ;;  %510 = vmatpush1.bf16.msra.mxu0 %v5349_v3  ;;  %5015 = vmatpush3.bf16.msra.mxu1 %v5350_v5  ;;  %v5354_v16 = vld [vmem:[#allocation2 + $0x20] ss:$12 sps:$4 sm:$0xff]   ;;  %v5358_v19 = vld [vmem:[#allocation2 + $0x38] ss:$12 sps:$4 sm:$0xff]  }
 0x172   :  { %511 = vmatprep.subr.bf16.mxu0 %v5351_v6  ;;  %5016 = vmatprep.subr.bf16.mxu1 %v6138_v4  ;;  %v5355_v17 = vld [vmem:[#allocation2 + $0x34] ss:$12 sps:$4 sm:$0xff]   ;;  %v5357_v18 = vld [vmem:[#allocation2 + $0x30] ss:$12 sps:$4 sm:$0xff]   ;;  %v5359_v20 = vld [vmem:[#allocation2 + $0x4c] ss:$12 sps:$4 sm:$0xff]  }
 0x173   :  { %v5361_v21 = vld [vmem:[#allocation2 + $0x48] ss:$12 sps:$4 sm:$0xff]   ;;  %v5362_v22 = vld [vmem:[#allocation2 + $0x50] ss:$12 sps:$4 sm:$0xff]   ;;  %v5365_v24 = vld [vmem:[#allocation2 + $0x60] ss:$12 sps:$4 sm:$0xff]  }
 0x174   :  { %v5363_v23 = vld [vmem:[#allocation2 + $0x64] ss:$12 sps:$4 sm:$0xff]   ;;  %v5366_v25 = vld [vmem:[#allocation2 + $0x68] ss:$12 sps:$4 sm:$0xff]   ;;  %v5370_v28 = vld [vmem:[#allocation2 + $0x80] ss:$12 sps:$4 sm:$0xff]  }
 0x175   :  { %v300_v0 = vld [vmem:[%s7239_s27] sm:$0xff]  ;;  %v301_v1 = vld [vmem:[%s7239_s27 + $0x8] sm:$0xff]  ;;  %512 = vmatpush1.bf16.msra.mxu0 %v5353_v15  ;;  %5017 = vmatpush3.bf16.msra.mxu1 %v5354_v16  ;;  %v6139_v30 = vmov 0   ;;  %vm6140_vm0 = vmmov 0   ;;  %v5373_v31 = vld [vmem:[#allocation2 + $0x90] ss:$12 sps:$4 sm:$0xff]  }
 0x176   :  { %309 = vadd.xlane.f32.xlu0 %v300_v0  ;;  %5018 = vmatprep.subr.bf16.mxu1 %v6138_v4  ;;  %v5367_v26 = vld [vmem:[#allocation2 + $0x7c] ss:$12 sps:$4 sm:$0xff]   ;;  %v5369_v27 = vld [vmem:[#allocation2 + $0x78] ss:$12 sps:$4 sm:$0xff]   ;;  %v5371_v29 = vld [vmem:[#allocation2 + $0x94] ss:$12 sps:$4 sm:$0xff]  }
 0x177   :  { %513 = vmatprep.subr.bf16.mxu0 %v5355_v17  ;;  %541 = vmatprep.mubr.bf16.mxu0 %v6139_v30  ;;  %v5374_v32 = vld [vmem:[#allocation2 + $0x98] ss:$12 sps:$4 sm:$0xff]   ;;  %v5377_v34 = vld [vmem:[#allocation2 + $0xa8] ss:$12 sps:$4 sm:$0xff]   ;;  %v5378_v35 = vld [vmem:[#allocation2 + $0xb0] ss:$12 sps:$4 sm:$0xff]  }
 0x178   :  { %5030 = vmatprep.mubr.msk.bf16.mxu1 %vm6140_vm0, %v6138_v4  ;;  %v5375_v33 = vld [vmem:[#allocation2 + $0xac] ss:$12 sps:$4 sm:$0xff]   ;;  %s7240_s26 = sld [smem:[#allocation41_spill]]  ;;  %s7241_s17 = sld [smem:[#allocation42_spill]]  ;;  %vm599_vm1 = vcmask 261120   ;;  %vm724_vm2 = vcmask 1043456  }
 0x179   :  { %514 = vmatpush1.bf16.msra.mxu0 %v5357_v18  ;;  %5019 = vmatpush3.bf16.msra.mxu1 %v5358_v19  ;;  %vm696_vm4 = vcmask 64512   ;;  %s6141_s8 = smov 96   ;;  %s6142_s5 = smov 32   ;;  %vm1512_vm5 = vcmask 523264   ;;  %vm1515_vm6 = vcmask 785408  }
 0x17a   :  { %311 = vadd.xlane.f32.xlu0 %v301_v1  ;;  %5020 = vmatprep.subr.bf16.mxu1 %v6138_v4  ;;  %s7244_s7 = sld [smem:[#allocation45_spill]]  ;;  %s7245_s11 = sld [smem:[#allocation49_spill]] }
 0x17b   :  { %515 = vmatprep.subr.bf16.mxu0 %v5359_v20  ;;  %s7246_s29 = sld [smem:[#allocation52_spill]]  ;;  %s7247_s22 = sld [smem:[#allocation53_spill]] }
 0x17d   :  { %516 = vmatpush1.bf16.msra.mxu0 %v5361_v21  ;;  %5021 = vmatpush3.bf16.msra.mxu1 %v5362_v22 }
 0x17e   :  { %5022 = vmatprep.subr.bf16.mxu1 %v6138_v4  ;;  %517 = vmatprep.subr.bf16.mxu0 %v5363_v23  ;;  %v4572_v44 = vld [vmem:[%s7240_s26] ss:$0 sm:$0xff] }
 0x17f   :  { %v4573_v48 = vld [vmem:[%s7241_s17] ss:$0 sm:$0xff] }
 0x181   :  { %518 = vmatpush1.bf16.msra.mxu0 %v5365_v24  ;;  %5023 = vmatpush3.bf16.msra.mxu1 %v5366_v25 }
 0x182   :  { %519 = vmatprep.subr.bf16.mxu0 %v5367_v26  ;;  %5024 = vmatprep.subr.bf16.mxu1 %v6138_v4 }
 0x185   :  { %520 = vmatpush1.bf16.msra.mxu0 %v5369_v27  ;;  %5025 = vmatpush3.bf16.msra.mxu1 %v5370_v28 }
 0x186   :  { %521 = vmatprep.subr.bf16.mxu0 %v5371_v29  ;;  %5026 = vmatprep.subr.bf16.mxu1 %v6138_v4 }
 0x189   :  { %522 = vmatpush1.bf16.msra.mxu0 %v5373_v31  ;;  %5027 = vmatpush3.bf16.msra.mxu1 %v5374_v32 }
 0x18a   :  { %523 = vmatprep.subr.bf16.mxu0 %v5375_v33  ;;  %5028 = vmatprep.subr.bf16.mxu1 %v6138_v4 }
 0x18d   :  { %524 = vmatpush1.bf16.msra.mxu0 %v5377_v34  ;;  %5029 = vmatpush3.bf16.msra.mxu1 %v5378_v35 }
 0x18e   :  { %5034 = vmatprep.subr.bf16.mxu0 %v6138_v4  ;;  %5040 = vmatprep.subr.bf16.mxu1 %v6138_v4 }
 0x203   :  { %v310_v7 = vpop.xlane.xlu0 %309 }
 0x204   :  { %v314_v8 = vmul.f32 0.0078125, %v310_v7 }
 0x206   :  { %v6525_v9 = vsub.f32 %v300_v0, %v314_v8  ;;  %v302_v8 = vlaneseq }
 0x207   :  { %v312_v10 = vpop.xlane.xlu0 %311 }
 0x208   :  { %v315_v11 = vmul.f32 0.0078125, %v312_v10  ;;  %v318_v12 = vmul.f32 %v6525_v9, %v6525_v9  ;;  %v305_v10 = vand.u32 127, %v302_v8 }
 0x20a   :  { %v6529_v13 = vsub.f32 %v301_v1, %v315_v11  ;;  %320 = vadd.xlane.f32.xlu1 %v318_v12 }
 0x20c   :  { %v319_v14 = vmul.f32 %v6529_v13, %v6529_v13 }
 0x20e   :  { %322 = vadd.xlane.f32.xlu1 %v319_v14 }
 0x297   :  { %v321_v36 = vpop.xlane.xlu1 %320 }
 0x298   :  { %v324_v37 = vmul.f32 0.0078125, %v321_v36 }
 0x29a   :  { %v326_v38 = vadd.f32 1e-05, %v324_v37 }
 0x29b   :  { %v323_v39 = vpop.xlane.xlu1 %322 }
 0x29c   :  { %5611 = vrsqrt.f32 %v326_v38  ;;  %v325_v40 = vmul.f32 0.0078125, %v323_v39 }
 0x29e   :  { %v327_v41 = vadd.f32 1e-05, %v325_v40 }
 0x2a0   :  { %5613 = vrsqrt.f32 %v327_v41 }
 0x2a6   :  { %v5612_v42 = vpop.eup %5611 }
 0x2a7   :  { %v330_v43 = vmul.f32 %v5612_v42, %v6525_v9  ;;  %v6588_v9 = vshrl.u32 %v302_v8, 7 }
 0x2a9   :  { %v338_v47 = vmul.f32 %v4572_v44, %v330_v43  ;;  %vm6591_vm3 = vcmp.le.s32.totalorder %v305_v10, %v6588_v9 }
 0x2aa   :  { %v5614_v45 = vpop.eup %5613 }
 0x2ab   :  { %v331_v46 = vmul.f32 %v5614_v45, %v6529_v13  ;;  %v346_v50 = vadd.f32 %v4573_v48, %v338_v47 }
 0x2ad   :  { %v339_v49 = vmul.f32 %v4572_v44, %v331_v46 }
 0x2af   :  { %v347_v51 = vadd.f32 %v4573_v48, %v339_v49 }
 0x2b1   :  { %v348_v52 = vpack.c.bf16 %v347_v51, %v346_v50 }
 0x2b3   :  { %542 = vmatmul.mubr.bf16.vlgmr.msra.gmra.mrb[0].mxu0 %v348_v52  ;;  %5031 = vmatmul.mubr.bf16.vlgmr.msra.gmra.mrb[0].mxu1 %v348_v52 }
 0x2b4   :  { %5036 = vmatprep.mubr.msk.bf16.mxu0 %vm6140_vm0, %v6138_v4  ;;  %5042 = vmatprep.mubr.msk.bf16.mxu1 %vm6140_vm0, %v6138_v4 }
 0x386   :  { %v543_v53 = vpop.f32.mrb[0].mxu0  ;;  %v586_v54 = vpop.f32.mrb[0].mxu1 }
 0x387   :  { %v6556_v55 = vpack.c.bf16 %v543_v53, %v543_v53  ;;  %v545_v56 = vpop.f32.mrb[1].mxu0  ;;  %v5032_v57 = vpop.f32.mrb[1].mxu1  ;;  %v6565_v1 = vpack.c.bf16 %v586_v54, %v586_v54 }
 0x388   :  { %v547_v58 = vpop.f32.mrb[2].mxu0  ;;  %v589_v59 = vpop.f32.mrb[2].mxu1  ;;  %v6568_v2 = vpack.c.bf16 %v545_v56, %v545_v56 }
 0x389   :  { %v6558_v60 = vpack.c.bf16 %v547_v58, %v547_v58  ;;  %v549_v61 = vpop.f32.mrb[3].mxu0  ;;  %v5033_v62 = vpop.f32.mrb[3].mxu1  ;;  %v604_v63 = vsel %vm599_vm1, %v6556_v55, 0  ;;  %v6570_v3 = vpack.c.bf16 %v589_v59, %v589_v59  ;;  %v726_v6 = vsel %vm724_vm2, %v6565_v1, 0 }
 0x38a   :  { %5035 = vmatpush3.bf16.xpose.msra.mxu0 %v604_v63  ;;  %v6572_v5 = vpack.c.bf16 %v549_v61, %v549_v61 }
 0x38b   :  { %v650_v0 = vsel %vm599_vm1, %v6558_v60, 0  ;;  %5046 = vmatprep.subr.bf16.mxu0 %v6138_v4  ;;  %v772_v7 = vsel %vm724_vm2, %v6570_v3, 0 }
 0x38c   :  { %5041 = vmatpush3.bf16.xpose.msra.mxu1 %v650_v0 }
 0x38d   :  { %5052 = vmatprep.subr.bf16.mxu1 %v6138_v4 }
 0x391   :  { %5037 = vmatmul.mubr.msk.bf16.vlgmr.msra.gmra.mrb[4].mxu0 %vm599_vm1, %v6568_v2 }
 0x392   :  { %5047 = vmatpush3.bf16.msra.mxu0 %v726_v6  ;;  %5048 = vmatprep.mubr.msk.bf16.mxu0 %vm6140_vm0, %v6138_v4 }
 0x393   :  { %5043 = vmatmul.mubr.msk.bf16.vlgmr.msra.gmra.mrb[4].mxu1 %vm599_vm1, %v6572_v5  ;;  %5058 = vmatprep.subr.bf16.mxu0 %v6138_v4 }
 0x394   :  { %5053 = vmatpush3.bf16.msra.mxu1 %v772_v7  ;;  %5054 = vmatprep.mubr.msk.bf16.mxu1 %vm6140_vm0, %v6138_v4 }
 0x395   :  { %5064 = vmatprep.subr.bf16.mxu1 %v6138_v4 }
 0x464   :  { %v640_v12 = vpop.f32.mrb[4].mxu0 }
 0x465   :  { %v694_v13 = vsel %vm6591_vm3, %v640_v12, -inf  ;;  %v5038_v14 = vpop.f32.mrb[5].mxu0 }
 0x466   :  { %v643_v15 = vpop.f32.mrb[6].mxu0  ;;  %v686_v16 = vpop.f32.mrb[4].mxu1  ;;  %v697_v17 = vsel %vm696_vm4, %v694_v13, -inf }
 0x467   :  { %v695_v18 = vsel %vm6591_vm3, %v686_v16, -inf  ;;  %698 = vmax.xlane.f32.xlu0 %v697_v17  ;;  %v5039_v19 = vpop.f32.mrb[7].mxu0  ;;  %v5044_v20 = vpop.f32.mrb[5].mxu1 }
 0x468   :  { %v689_v21 = vpop.f32.mrb[6].mxu1  ;;  %v700_v22 = vsel %vm696_vm4, %v695_v18, -inf }
 0x469   :  { %701 = vmax.xlane.f32.xlu1 %v700_v22  ;;  %v5045_v23 = vpop.f32.mrb[7].mxu1 }
 0x47a   :  { %870 = vrot.lane.b32.xlu1 %v6558_v60, %s6141_s8 }
 0x4f4   :  { %v699_v24 = vpop.xlane.xlu0 %698 }
 0x4f5   :  { %v703_v25 = vsub.f32 %v694_v13, %v699_v24 }
 0x4f6   :  { %v702_v26 = vpop.xlane.xlu1 %701 }
 0x4f7   :  { %v705_v27 = vmul.f32 1.442695, %v703_v25  ;;  %v704_v28 = vsub.f32 %v695_v18, %v702_v26 }
 0x4f9   :  { %5615 = vpow2.f32 %v705_v27  ;;  %v707_v29 = vmul.f32 1.442695, %v704_v28 }
 0x4fa   :  { %v871_v35 = vpop.permute.xlu1 %870 }
 0x4fb   :  { %5617 = vpow2.f32 %v707_v29  ;;  %v876_v46 = vsel %vm599_vm1, %v871_v35, 0 }
 0x503   :  { %v5616_v31 = vpop.eup %5615 }
 0x504   :  { %v709_v32 = vsel %vm696_vm4, %v5616_v31, 0.0 }
 0x505   :  { %v5618_v33 = vpop.eup %5617  ;;  %710 = vadd.xlane.f32.xlu0 %v709_v32 }
 0x506   :  { %v712_v34 = vsel %vm696_vm4, %v5618_v33, 0.0 }
 0x507   :  { %713 = vadd.xlane.f32.xlu1 %v712_v34 }
 0x518   :  { %815 = vrot.lane.b32.xlu1 %v6568_v2, %s6141_s8 }
 0x51b   :  { %818 = vrot.lane.b32.xlu0 %v6556_v55, %s6141_s8 }
 0x51c   :  { %867 = vrot.lane.b32.xlu1 %v6572_v5, %s6141_s8 }
 0x592   :  { %v711_v36 = vpop.xlane.xlu0 %710 }
 0x593   :  { %5619 = vrcp.f32 %v711_v36 }
 0x594   :  { %v714_v37 = vpop.xlane.xlu1 %713 }
 0x595   :  { %5621 = vrcp.f32 %v714_v37 }
 0x596   :  { %v819_v41 = vpop.permute.xlu0 %818 }
 0x597   :  { %v824_v44 = vsel %vm599_vm1, %v819_v41, 0 }
 0x598   :  { %v816_v47 = vpop.permute.xlu1 %815 }
 0x59c   :  { %v868_v48 = vpop.permute.xlu1 %867 }
 0x59d   :  { %v5620_v38 = vpop.eup %5619 }
 0x59e   :  { %v717_v39 = vmul.f32 %v5620_v38, %v5616_v31 }
 0x59f   :  { %v5622_v40 = vpop.eup %5621 }
 0x5a0   :  { %v718_v42 = vmul.f32 %v5622_v40, %v5618_v33  ;;  %v719_v43 = vpack.c.bf16 %v717_v39, %v717_v39 }
 0x5a2   :  { %5049 = vmatmul.mubr.msk.bf16.vlgmr.msra.gmra.mrb[8].mxu0 %vm696_vm4, %v719_v43  ;;  %v720_v45 = vpack.c.bf16 %v718_v42, %v718_v42 }
 0x5a3   :  { %5059 = vmatpush3.bf16.xpose.msra.mxu0 %v824_v44  ;;  %5060 = vmatprep.mubr.msk.bf16.mxu0 %vm6140_vm0, %v6138_v4 }
 0x5a4   :  { %5055 = vmatmul.mubr.msk.bf16.vlgmr.msra.gmra.mrb[8].mxu1 %vm696_vm4, %v720_v45  ;;  %5070 = vmatprep.subr.bf16.mxu0 %v6138_v4 }
 0x5a5   :  { %5065 = vmatpush3.bf16.xpose.msra.mxu1 %v876_v46  ;;  %5066 = vmatprep.mubr.msk.bf16.mxu1 %vm6140_vm0, %v6138_v4 }
 0x5a6   :  { %5076 = vmatprep.subr.bf16.mxu1 %v6138_v4 }
 0x5aa   :  { %5061 = vmatmul.mubr.msk.bf16.vlgmr.msra.gmra.mrb[12].mxu0 %vm599_vm1, %v816_v47 }
 0x5ab   :  { %5072 = vmatprep.mubr.msk.bf16.mxu0 %vm6140_vm0, %v6138_v4 }
 0x5ac   :  { %5067 = vmatmul.mubr.msk.bf16.vlgmr.msra.gmra.mrb[12].mxu1 %vm599_vm1, %v868_v48 }
 0x5ad   :  { %5078 = vmatprep.mubr.msk.bf16.mxu1 %vm6140_vm0, %v6138_v4 }
 0x675   :  { %v6627_v49 = vpop.f32.mrb[8].mxu0 }
 0x676   :  { %v5050_v50 = vpop.f32.mrb[9].mxu0 }
 0x677   :  { %v765_v51 = vpop.f32.mrb[10].mxu0  ;;  %v6629_v52 = vpop.f32.mrb[8].mxu1 }
 0x678   :  { %v5051_v53 = vpop.f32.mrb[11].mxu0  ;;  %v5056_v54 = vpop.f32.mrb[9].mxu1 }
 0x679   :  { %v811_v56 = vpop.f32.mrb[10].mxu1 }
 0x67a   :  { %v5057_v57 = vpop.f32.mrb[11].mxu1 }
 0x67d   :  { %v860_v58 = vpop.f32.mrb[12].mxu0 }
 0x67e   :  { %v918_v59 = vsel %vm6591_vm3, %v860_v58, -inf  ;;  %v5062_v61 = vpop.f32.mrb[13].mxu0 }
 0x67f   :  { %v863_v62 = vpop.f32.mrb[14].mxu0  ;;  %v912_v63 = vpop.f32.mrb[12].mxu1  ;;  %v920_v0 = vsel %vm696_vm4, %v918_v59, -inf }
 0x680   :  { %v919_v6 = vsel %vm6591_vm3, %v912_v63, -inf  ;;  %921 = vmax.xlane.f32.xlu0 %v920_v0  ;;  %v5063_v7 = vpop.f32.mrb[15].mxu0  ;;  %v5068_v8 = vpop.f32.mrb[13].mxu1 }
 0x681   :  { %v915_v10 = vpop.f32.mrb[14].mxu1  ;;  %v923_v12 = vsel %vm696_vm4, %v919_v6, -inf }
 0x682   :  { %924 = vmax.xlane.f32.xlu1 %v923_v12  ;;  %v5069_v13 = vpop.f32.mrb[15].mxu1 }
 0x693   :  { %994 = vrot.lane.b32.xlu1 %v6570_v3, %s6141_s8 }
 0x697   :  { %1044 = vrot.lane.b32.xlu1 %v6556_v55, %s6114_s6 }
 0x69b   :  { %1094 = vrot.lane.b32.xlu1 %v6558_v60, %s6114_s6 }
 0x69f   :  { %1092 = vrot.lane.b32.xlu1 %v6572_v5, %s6114_s6 }
 0x70d   :  { %v922_v14 = vpop.xlane.xlu0 %921 }
 0x70e   :  { %v926_v15 = vsub.f32 %v918_v59, %v922_v14 }
 0x70f   :  { %v925_v16 = vpop.xlane.xlu1 %924 }
 0x710   :  { %v928_v17 = vmul.f32 1.442695, %v926_v15  ;;  %v927_v18 = vsub.f32 %v919_v6, %v925_v16 }
 0x712   :  { %5623 = vpow2.f32 %v928_v17  ;;  %v930_v19 = vmul.f32 1.442695, %v927_v18 }
 0x713   :  { %v995_v20 = vpop.permute.xlu1 %994 }
 0x714   :  { %5625 = vpow2.f32 %v930_v19  ;;  %v1000_v21 = vsel %vm724_vm2, %v995_v20, 0 }
 0x715   :  { %5077 = vmatpush3.bf16.msra.mxu1 %v1000_v21 }
 0x716   :  { %5088 = vmatprep.subr.bf16.mxu1 %v6138_v4 }
 0x717   :  { %v1045_v32 = vpop.permute.xlu1 %1044 }
 0x718   :  { %v1050_v38 = vsel %vm599_vm1, %v1045_v32, 0 }
 0x71b   :  { %v1095_v37 = vpop.permute.xlu1 %1094 }
 0x71c   :  { %v5624_v22 = vpop.eup %5623  ;;  %v1100_v40 = vsel %vm599_vm1, %v1095_v37, 0 }
 0x71d   :  { %v932_v23 = vsel %vm696_vm4, %v5624_v22, 0.0 }
 0x71e   :  { %v5626_v24 = vpop.eup %5625  ;;  %933 = vadd.xlane.f32.xlu0 %v932_v23 }
 0x71f   :  { %v935_v25 = vsel %vm696_vm4, %v5626_v24, 0.0  ;;  %v1093_v42 = vpop.permute.xlu1 %1092 }
 0x722   :  { %936 = vadd.xlane.f32.xlu0 %v935_v25 }
 0x738   :  { %945 = vrot.lane.b32.xlu0 %v6565_v1, %s6141_s8 }
 0x73c   :  { %1042 = vrot.lane.b32.xlu0 %v6568_v2, %s6114_s6 }
 0x7ab   :  { %v934_v26 = vpop.xlane.xlu0 %933 }
 0x7ac   :  { %5627 = vrcp.f32 %v934_v26 }
 0x7af   :  { %v937_v27 = vpop.xlane.xlu0 %936 }
 0x7b0   :  { %5629 = vrcp.f32 %v937_v27 }
 0x7b3   :  { %v946_v28 = vpop.permute.xlu0 %945 }
 0x7b4   :  { %v951_v29 = vsel %vm724_vm2, %v946_v28, 0 }
 0x7b5   :  { %5071 = vmatpush3.bf16.msra.mxu0 %v951_v29 }
 0x7b6   :  { %v5628_v31 = vpop.eup %5627  ;;  %5082 = vmatprep.subr.bf16.mxu0 %v6138_v4 }
 0x7b7   :  { %v940_v33 = vmul.f32 %v5628_v31, %v5624_v22  ;;  %v1043_v41 = vpop.permute.xlu0 %1042 }
 0x7b9   :  { %v942_v34 = vpack.c.bf16 %v940_v33, %v940_v33 }
 0x7ba   :  { %v5630_v35 = vpop.eup %5629 }
 0x7bb   :  { %v941_v36 = vmul.f32 %v5630_v35, %v5626_v24  ;;  %5073 = vmatmul.mubr.msk.bf16.vlgmr.msra.gmra.mrb[16].mxu0 %vm696_vm4, %v942_v34 }
 0x7bc   :  { %5084 = vmatprep.mubr.msk.bf16.mxu0 %vm6140_vm0, %v6138_v4 }
 0x7bd   :  { %v943_v39 = vpack.c.bf16 %v941_v36, %v941_v36 }
 0x7be   :  { %5083 = vmatpush3.bf16.xpose.msra.mxu0 %v1050_v38 }
 0x7bf   :  { %5079 = vmatmul.mubr.msk.bf16.vlgmr.msra.gmra.mrb[16].mxu1 %vm696_vm4, %v943_v39  ;;  %5094 = vmatprep.subr.bf16.mxu0 %v6138_v4 }
 0x7c0   :  { %5089 = vmatpush3.bf16.xpose.msra.mxu1 %v1100_v40  ;;  %5090 = vmatprep.mubr.msk.bf16.mxu1 %vm6140_vm0, %v6138_v4 }
 0x7c1   :  { %5100 = vmatprep.subr.bf16.mxu1 %v6138_v4 }
 0x7c5   :  { %5085 = vmatmul.mubr.msk.bf16.vlgmr.msra.gmra.mrb[20].mxu0 %vm599_vm1, %v1043_v41 }
 0x7c6   :  { %5096 = vmatprep.mubr.msk.bf16.mxu0 %vm6140_vm0, %v6138_v4 }
 0x7c7   :  { %5091 = vmatmul.mubr.msk.bf16.vlgmr.msra.gmra.mrb[20].mxu1 %vm599_vm1, %v1093_v42 }
 0x7c8   :  { %5102 = vmatprep.mubr.msk.bf16.mxu1 %vm6140_vm0, %v6138_v4 }
 0x88e   :  { %v6671_v43 = vpop.f32.mrb[16].mxu0 }
 0x88f   :  { %v5074_v44 = vpop.f32.mrb[17].mxu0 }
 0x890   :  { %v990_v45 = vpop.f32.mrb[18].mxu0 }
 0x891   :  { %v5075_v46 = vpop.f32.mrb[19].mxu0 }
 0x892   :  { %v6673_v47 = vpop.f32.mrb[16].mxu1 }
 0x893   :  { %v5317_v48 = vpack.i.bf16 %v6673_v47, %v6671_v43  ;;  %v5080_v50 = vpop.f32.mrb[17].mxu1 }
 0x894   :  { %v1039_v51 = vpop.f32.mrb[18].mxu1 }
 0x895   :  { %v5081_v53 = vpop.f32.mrb[19].mxu1 }
 0x898   :  { %v1086_v54 = vpop.f32.mrb[20].mxu0 }
 0x899   :  { %v1142_v56 = vsel %vm6591_vm3, %v1086_v54, -inf  ;;  %v5086_v57 = vpop.f32.mrb[21].mxu0 }
 0x89a   :  { %v1089_v58 = vpop.f32.mrb[22].mxu0  ;;  %v1136_v59 = vpop.f32.mrb[20].mxu1  ;;  %v1144_v61 = vsel %vm696_vm4, %v1142_v56, -inf }
 0x89b   :  { %v1143_v62 = vsel %vm6591_vm3, %v1136_v59, -inf  ;;  %1145 = vmax.xlane.f32.xlu0 %v1144_v61  ;;  %v5087_v63 = vpop.f32.mrb[23].mxu0  ;;  %v5092_v0 = vpop.f32.mrb[21].mxu1 }
 0x89c   :  { %v1139_v6 = vpop.f32.mrb[22].mxu1  ;;  %v1147_v7 = vsel %vm696_vm4, %v1143_v62, -inf }
 0x89d   :  { %1148 = vmax.xlane.f32.xlu1 %v1147_v7  ;;  %v5093_v8 = vpop.f32.mrb[23].mxu1 }
 0x8ae   :  { %1216 = vrot.lane.b32.xlu1 %v6570_v3, %s6114_s6 }
 0x8b2   :  { %1266 = vrot.lane.b32.xlu1 %v6556_v55, %s6142_s5 }
 0x8b6   :  { %1316 = vrot.lane.b32.xlu1 %v6558_v60, %s6142_s5 }
 0x8ba   :  { %1314 = vrot.lane.b32.xlu1 %v6572_v5, %s6142_s5 }
 0x928   :  { %v1146_v10 = vpop.xlane.xlu0 %1145 }
 0x929   :  { %v1150_v12 = vsub.f32 %v1142_v56, %v1146_v10 }
 0x92a   :  { %v1149_v13 = vpop.xlane.xlu1 %1148 }
 0x92b   :  { %v1152_v14 = vmul.f32 1.442695, %v1150_v12  ;;  %v1151_v15 = vsub.f32 %v1143_v62, %v1149_v13 }
 0x92d   :  { %5631 = vpow2.f32 %v1152_v14  ;;  %v1154_v16 = vmul.f32 1.442695, %v1151_v15 }
 0x92e   :  { %v1217_v17 = vpop.permute.xlu1 %1216 }
 0x92f   :  { %5633 = vpow2.f32 %v1154_v16  ;;  %v1222_v18 = vsel %vm724_vm2, %v1217_v17, 0 }
 0x930   :  { %5101 = vmatpush3.bf16.msra.mxu1 %v1222_v18 }
 0x931   :  { %5112 = vmatprep.subr.bf16.mxu1 %v6138_v4 }
 0x932   :  { %v1267_v25 = vpop.permute.xlu1 %1266 }
 0x936   :  { %v1317_v31 = vpop.permute.xlu1 %1316 }
 0x937   :  { %v5632_v55 = vpop.eup %5631  ;;  %v1322_v33 = vsel %vm599_vm1, %v1317_v31, 0 }
 0x938   :  { %v1156_v60 = vsel %vm696_vm4, %v5632_v55, 0.0 }
 0x939   :  { %v5634_v19 = vpop.eup %5633  ;;  %1157 = vadd.xlane.f32.xlu0 %v1156_v60 }
 0x93a   :  { %v1159_v5 = vsel %vm696_vm4, %v5634_v19, 0.0  ;;  %v1315_v35 = vpop.permute.xlu1 %1314 }
 0x93d   :  { %1160 = vadd.xlane.f32.xlu0 %v1159_v5 }
 0x953   :  { %1168 = vrot.lane.b32.xlu0 %v6565_v1, %s6114_s6 }
 0x957   :  { %1264 = vrot.lane.b32.xlu0 %v6568_v2, %s6142_s5  ;;  %v1272_v2 = vsel %vm599_vm1, %v1267_v25, 0  ;;  %v5383_v25 = vld [vmem:[#allocation5 + $0x20] sm:$0xff]  }
 0x9c6   :  { %v1158_v20 = vpop.xlane.xlu0 %1157 }
 0x9c7   :  { %5635 = vrcp.f32 %v1158_v20 }
 0x9ca   :  { %v1161_v21 = vpop.xlane.xlu0 %1160 }
 0x9cb   :  { %5637 = vrcp.f32 %v1161_v21  ;;  %v5379_v21 = vld [vmem:[#allocation5] sm:$0xff]  }
 0x9ce   :  { %v1169_v22 = vpop.permute.xlu0 %1168 }
 0x9cf   :  { %v1174_v23 = vsel %vm724_vm2, %v1169_v22, 0  ;;  %v5380_v22 = vld [vmem:[#allocation5 + $0x8] sm:$0xff]  }
 0x9d0   :  { %5095 = vmatpush3.bf16.msra.mxu0 %v1174_v23  ;;  %v5381_v23 = vld [vmem:[#allocation5 + $0x10] sm:$0xff]  }
 0x9d1   :  { %v5636_v24 = vpop.eup %5635  ;;  %5106 = vmatprep.subr.bf16.mxu0 %v6138_v4 }
 0x9d2   :  { %v1164_v26 = vmul.f32 %v5636_v24, %v5632_v55  ;;  %v1265_v34 = vpop.permute.xlu0 %1264  ;;  %v5382_v24 = vld [vmem:[#allocation5 + $0x18] sm:$0xff]  }
 0x9d4   :  { %v1166_v27 = vpack.c.bf16 %v1164_v26, %v1164_v26  ;;  %v5384_v26 = vld [vmem:[#allocation5 + $0x28] sm:$0xff]  }
 0x9d5   :  { %v5638_v28 = vpop.eup %5637 }
 0x9d6   :  { %v1165_v29 = vmul.f32 %v5638_v28, %v5634_v19  ;;  %5097 = vmatmul.mubr.msk.bf16.vlgmr.msra.gmra.mrb[24].mxu0 %vm696_vm4, %v1166_v27  ;;  %v5385_v27 = vld [vmem:[#allocation5 + $0x30] sm:$0xff]   ;;  %v5386_v28 = vld [vmem:[#allocation5 + $0x38] sm:$0xff]  }
 0x9d7   :  { %5108 = vmatprep.mubr.msk.bf16.mxu0 %vm6140_vm0, %v6138_v4 }
 0x9d8   :  { %v1167_v32 = vpack.c.bf16 %v1165_v29, %v1165_v29 }
 0x9d9   :  { %5107 = vmatpush3.bf16.xpose.msra.mxu0 %v1272_v2 }
 0x9da   :  { %5103 = vmatmul.mubr.msk.bf16.vlgmr.msra.gmra.mrb[24].mxu1 %vm696_vm4, %v1167_v32  ;;  %5118 = vmatprep.subr.bf16.mxu0 %v6138_v4 }
 0x9db   :  { %5113 = vmatpush3.bf16.xpose.msra.mxu1 %v1322_v33  ;;  %5114 = vmatprep.mubr.msk.bf16.mxu1 %vm6140_vm0, %v6138_v4 }
 0x9dc   :  { %5124 = vmatprep.subr.bf16.mxu1 %v6138_v4 }
 0x9e0   :  { %5109 = vmatmul.mubr.msk.bf16.vlgmr.msra.gmra.mrb[28].mxu0 %vm599_vm1, %v1265_v34 }
 0x9e1   :  { %5120 = vmatprep.mubr.msk.bf16.mxu0 %vm6140_vm0, %v6138_v4 }
 0x9e2   :  { %5115 = vmatmul.mubr.msk.bf16.vlgmr.msra.gmra.mrb[28].mxu1 %vm599_vm1, %v1315_v35 }
 0x9e3   :  { %5126 = vmatprep.mubr.msk.bf16.mxu1 %vm6140_vm0, %v6138_v4 }
 0xaa9   :  { %v1210_v36 = vpop.f32.mrb[24].mxu0 }
 0xaaa   :  { %v5098_v37 = vpop.f32.mrb[25].mxu0 }
 0xaab   :  { %v1213_v38 = vpop.f32.mrb[26].mxu0 }
 0xaac   :  { %v5099_v39 = vpop.f32.mrb[27].mxu0 }
 0xaad   :  { %v1258_v40 = vpop.f32.mrb[24].mxu1 }
 0xaae   :  { %v5322_v41 = vpack.i.bf16 %v1258_v40, %v1210_v36  ;;  %v5104_v42 = vpop.f32.mrb[25].mxu1 }
 0xaaf   :  { %v1261_v44 = vpop.f32.mrb[26].mxu1 }
 0xab0   :  { %v5105_v45 = vpop.f32.mrb[27].mxu1 }
 0xab3   :  { %v1308_v46 = vpop.f32.mrb[28].mxu0 }
 0xab4   :  { %v1364_v50 = vsel %vm6591_vm3, %v1308_v46, -inf  ;;  %v5110_v51 = vpop.f32.mrb[29].mxu0 }
 0xab5   :  { %v1311_v53 = vpop.f32.mrb[30].mxu0  ;;  %v1358_v54 = vpop.f32.mrb[28].mxu1  ;;  %v1366_v56 = vsel %vm696_vm4, %v1364_v50, -inf }
 0xab6   :  { %v1365_v57 = vsel %vm6591_vm3, %v1358_v54, -inf  ;;  %1367 = vmax.xlane.f32.xlu0 %v1366_v56  ;;  %v5111_v58 = vpop.f32.mrb[31].mxu0  ;;  %v5116_v59 = vpop.f32.mrb[29].mxu1 }
 0xab7   :  { %v1361_v61 = vpop.f32.mrb[30].mxu1  ;;  %v1369_v62 = vsel %vm696_vm4, %v1365_v57, -inf }
 0xab8   :  { %1370 = vmax.xlane.f32.xlu1 %v1369_v62  ;;  %v5117_v63 = vpop.f32.mrb[31].mxu1 }
 0xac9   :  { %1438 = vrot.lane.b32.xlu1 %v6570_v3, %s6142_s5 }
 0xacd   :  { %5318 = vrot.lane.b32.xlu1 %v5317_v48, %s6142_s5 }
 0xad1   :  { %5323 = vrot.lane.b32.xlu1 %v5322_v41, %s6114_s6 }
 0xb43   :  { %v1368_v0 = vpop.xlane.xlu0 %1367 }
 0xb44   :  { %v1372_v6 = vsub.f32 %v1364_v50, %v1368_v0  ;;  %v5695_v0 = vld [vmem:[%s7239_s27] sm:$0xff] }
 0xb45   :  { %v1371_v7 = vpop.xlane.xlu1 %1370 }
 0xb46   :  { %v1374_v8 = vmul.f32 1.442695, %v1372_v6  ;;  %v1373_v10 = vsub.f32 %v1365_v57, %v1371_v7 }
 0xb48   :  { %5639 = vpow2.f32 %v1374_v8  ;;  %v1376_v12 = vmul.f32 1.442695, %v1373_v10  ;;  %v5696_v10 = vld [vmem:[%s7239_s27 + $0x8] sm:$0xff] }
 0xb49   :  { %v1439_v13 = vpop.permute.xlu1 %1438 }
 0xb4a   :  { %5641 = vpow2.f32 %v1376_v12  ;;  %v1444_v14 = vsel %vm724_vm2, %v1439_v13, 0  ;;  %v5387_v13 = vld [vmem:[#allocation10] ss:$16 sps:$4 sm:$0xff]  }
 0xb4b   :  { %5125 = vmatpush3.bf16.msra.mxu1 %v1444_v14  ;;  %v5389_v14 = vld [vmem:[#allocation10 + $0x4] ss:$16 sps:$4 sm:$0xff]  }
 0xb4c   :  { %1888 = vmatprep.subr.bf16.mxu1 %v5389_v14  ;;  %v5438_v14 = vld [vmem:[#allocation11 + $0x80] sm:$0xff]  }
 0xb4d   :  { %v5319_v38 = vpop.permute.xlu1 %5318 }
 0xb4e   :  { %v5321_v40 = vunpack.i.h.bf16 %v5319_v38  ;;  %v5320_v41 = vunpack.i.l.bf16 %v5319_v38  ;;  %v5428_v38 = vld [vmem:[#allocation10 + $0xcc] ss:$16 sps:$4 sm:$0xff]  }
 0xb50   :  { %v1511_v46 = vsel %vm599_vm1, %v6629_v52, %v5321_v40  ;;  %v1510_v50 = vsel %vm599_vm1, %v6627_v49, %v5320_v41  ;;  %v4614_v52 = vld [vmem:[%s7244_s7] ss:$0 sm:$0xff]  ;;  %v5426_v40 = vld [vmem:[#allocation10 + $0xc8] ss:$16 sps:$4 sm:$0xff]   ;;  %v5431_v41 = vld [vmem:[#allocation10 + $0xe4] ss:$16 sps:$4 sm:$0xff]  }
 0xb51   :  { %v5324_v39 = vpop.permute.xlu1 %5323 }
 0xb52   :  { %v5640_v3 = vpop.eup %5639  ;;  %v5326_v42 = vunpack.i.h.bf16 %v5324_v39  ;;  %v5325_v44 = vunpack.i.l.bf16 %v5324_v39  ;;  %v5423_v39 = vld [vmem:[#allocation10 + $0xc0] ss:$16 sps:$4 sm:$0xff]  }
 0xb53   :  { %v1378_v15 = vsel %vm696_vm4, %v5640_v3, 0.0 }
 0xb54   :  { %v5642_v16 = vpop.eup %5641  ;;  %1379 = vadd.xlane.f32.xlu0 %v1378_v15  ;;  %v1513_v54 = vsel %vm1512_vm5, %v1510_v50, %v5325_v44  ;;  %v1514_v56 = vsel %vm1512_vm5, %v1511_v46, %v5326_v42  ;;  %v5392_v15 = vld [vmem:[#allocation10 + $0xc] ss:$16 sps:$4 sm:$0xff]   ;;  %v5429_v44 = vld [vmem:[#allocation10 + $0xe0] ss:$16 sps:$4 sm:$0xff]  }
 0xb55   :  { %v1381_v43 = vsel %vm696_vm4, %v5642_v16, 0.0  ;;  %v5434_v42 = vld [vmem:[#allocation10 + $0xec] ss:$16 sps:$4 sm:$0xff]   ;;  %v5435_v46 = vld [vmem:[#allocation11 + $0x40] sm:$0xff]  }
 0xb56   :  { %v5436_v50 = vld [vmem:[#allocation11 + $0xc0] sm:$0xff]  }
 0xb58   :  { %1382 = vadd.xlane.f32.xlu0 %v1381_v43  ;;  %v5398_v43 = vld [vmem:[#allocation10 + $0x2c] ss:$16 sps:$4 sm:$0xff]  }
 0xb6e   :  { %1390 = vrot.lane.b32.xlu0 %v6565_v1, %s6142_s5 }
 0xbe1   :  { %v1380_v47 = vpop.xlane.xlu0 %1379 }
 0xbe2   :  { %5643 = vrcp.f32 %v1380_v47  ;;  %v5393_v47 = vld [vmem:[#allocation10 + $0x20] ss:$16 sps:$4 sm:$0xff]  }
 0xbe5   :  { %v1383_v48 = vpop.xlane.xlu0 %1382 }
 0xbe6   :  { %5645 = vrcp.f32 %v1383_v48  ;;  %v5396_v48 = vld [vmem:[#allocation10 + $0x28] ss:$16 sps:$4 sm:$0xff]  }
 0xbe9   :  { %v1391_v17 = vpop.permute.xlu0 %1390 }
 0xbea   :  { %v1396_v18 = vsel %vm724_vm2, %v1391_v17, 0 }
 0xbeb   :  { %5119 = vmatpush3.bf16.msra.mxu0 %v1396_v18 }
 0xbec   :  { %v5644_v55 = vpop.eup %5643  ;;  %5130 = vmatprep.subr.bf16.mxu0 %v6138_v4 }
 0xbed   :  { %v1386_v60 = vmul.f32 %v5644_v55, %v5640_v3  ;;  %v5390_v3 = vld [vmem:[#allocation10 + $0x8] ss:$16 sps:$4 sm:$0xff]  }
 0xbef   :  { %v1388_v19 = vpack.c.bf16 %v1386_v60, %v1386_v60 }
 0xbf0   :  { %v5646_v5 = vpop.eup %5645 }
 0xbf1   :  { %v1387_v20 = vmul.f32 %v5646_v5, %v5642_v16  ;;  %5121 = vmatmul.mubr.msk.bf16.vlgmr.msra.gmra.mrb[32].mxu0 %vm696_vm4, %v1388_v19  ;;  %v5395_v16 = vld [vmem:[#allocation10 + $0x24] ss:$16 sps:$4 sm:$0xff]  }
 0xbf2   :  { %5146 = vmatprep.mubr.msk.bf16.mxu0 %vm6140_vm0, %v6138_v4  ;;  %5131 = vmatpush3.bf16.msra.mxu0 %v5379_v21  ;;  %v5401_v21 = vld [vmem:[#allocation10 + $0x44] ss:$16 sps:$4 sm:$0xff]  }
 0xbf3   :  { %v1389_v1 = vpack.c.bf16 %v1387_v20, %v1387_v20  ;;  %5132 = vmatprep.subr.bf16.mxu0 %v6138_v4 }
 0xbf5   :  { %5127 = vmatmul.mubr.msk.bf16.vlgmr.msra.gmra.mrb[32].mxu1 %vm696_vm4, %v1389_v1 }
 0xbf6   :  { %1920 = vmatprep.mubr.bf16.mxu1 %v6139_v30  ;;  %5133 = vmatpush3.bf16.msra.mxu0 %v5380_v22  ;;  %v5404_v22 = vld [vmem:[#allocation10 + $0x4c] ss:$16 sps:$4 sm:$0xff]  }
 0xbf7   :  { %5134 = vmatprep.subr.bf16.mxu0 %v6138_v4  ;;  %1889 = vmatpush1.bf16.msra.mxu1 %v5387_v13  ;;  %v5437_v13 = vld [vmem:[#allocation11] sm:$0xff]  }
 0xbf8   :  { %1890 = vmatprep.subr.bf16.mxu1 %v5395_v16  ;;  %v5440_v16 = vld [vmem:[#allocation11 + $0xc8] sm:$0xff]  }
 0xbfa   :  { %5135 = vmatpush3.bf16.msra.mxu0 %v5381_v23  ;;  %v5399_v23 = vld [vmem:[#allocation10 + $0x40] ss:$16 sps:$4 sm:$0xff]  }
 0xbfb   :  { %5136 = vmatprep.subr.bf16.mxu0 %v6138_v4  ;;  %1891 = vmatpush1.bf16.msra.mxu1 %v5393_v47  ;;  %v5442_v47 = vld [vmem:[#allocation11 + $0x88] sm:$0xff]  }
 0xbfc   :  { %1892 = vmatprep.subr.bf16.mxu1 %v5401_v21  ;;  %v5452_v21 = vld [vmem:[#allocation11 + $0xe0] sm:$0xff]  }
 0xbfe   :  { %5137 = vmatpush3.bf16.msra.mxu0 %v5382_v24  ;;  %v5402_v24 = vld [vmem:[#allocation10 + $0x48] ss:$16 sps:$4 sm:$0xff]  }
 0xbff   :  { %5138 = vmatprep.subr.bf16.mxu0 %v6138_v4  ;;  %1893 = vmatpush1.bf16.msra.mxu1 %v5399_v23  ;;  %v5454_v23 = vld [vmem:[#allocation11 + $0xa0] sm:$0xff]  }
 0xc02   :  { %5139 = vmatpush3.bf16.msra.mxu0 %v5383_v25  ;;  %v5407_v25 = vld [vmem:[#allocation10 + $0x64] ss:$16 sps:$4 sm:$0xff]  }
 0xc03   :  { %5140 = vmatprep.subr.bf16.mxu0 %v6138_v4  ;;  %1894 = vmatprep.subr.bf16.mxu1 %v5407_v25  ;;  %v5456_v25 = vld [vmem:[#allocation11 + $0xe8] sm:$0xff]  }
 0xc06   :  { %5141 = vmatpush3.bf16.msra.mxu0 %v5384_v26  ;;  %v5410_v26 = vld [vmem:[#allocation10 + $0x6c] ss:$16 sps:$4 sm:$0xff]  }
 0xc07   :  { %5142 = vmatprep.subr.bf16.mxu0 %v6138_v4 }
 0xc0a   :  { %5143 = vmatpush3.bf16.msra.mxu0 %v5385_v27  ;;  %v5405_v27 = vld [vmem:[#allocation10 + $0x60] ss:$16 sps:$4 sm:$0xff]  }
 0xc0b   :  { %5144 = vmatprep.subr.bf16.mxu0 %v6138_v4  ;;  %1895 = vmatpush1.bf16.msra.mxu1 %v5405_v27  ;;  %v5458_v27 = vld [vmem:[#allocation11 + $0xa8] sm:$0xff]  }
 0xc0e   :  { %5145 = vmatpush3.bf16.msra.mxu0 %v5386_v28  ;;  %v5408_v28 = vld [vmem:[#allocation10 + $0x68] ss:$16 sps:$4 sm:$0xff]  }
 0xc0f   :  { %1931 = vmatprep.subr.bf16.mxu0 %v5392_v15  ;;  %v5439_v15 = vld [vmem:[#allocation11 + $0x48] sm:$0xff]  }
 0xcc4   :  { %v1432_v29 = vpop.f32.mrb[32].mxu0 }
 0xcc5   :  { %v5122_v31 = vpop.f32.mrb[33].mxu0 }
 0xcc6   :  { %v1435_v2 = vpop.f32.mrb[34].mxu0  ;;  %v5416_v31 = vld [vmem:[#allocation10 + $0x8c] ss:$16 sps:$4 sm:$0xff]  }
 0xcc7   :  { %v5123_v32 = vpop.f32.mrb[35].mxu0  ;;  %v5411_v2 = vld [vmem:[#allocation10 + $0x80] ss:$16 sps:$4 sm:$0xff]  }
 0xcc8   :  { %v1480_v33 = vpop.f32.mrb[32].mxu1  ;;  %v5414_v32 = vld [vmem:[#allocation10 + $0x88] ss:$16 sps:$4 sm:$0xff]  }
 0xcc9   :  { %v5327_v34 = vpack.i.bf16 %v1480_v33, %v1432_v29  ;;  %v5128_v35 = vpop.f32.mrb[33].mxu1  ;;  %v5413_v29 = vld [vmem:[#allocation10 + $0x84] ss:$16 sps:$4 sm:$0xff]  }
 0xcca   :  { %v1483_v36 = vpop.f32.mrb[34].mxu1  ;;  %1896 = vmatprep.subr.bf16.mxu1 %v5413_v29  ;;  %v5419_v33 = vld [vmem:[#allocation10 + $0xa4] ss:$16 sps:$4 sm:$0xff]   ;;  %v5417_v35 = vld [vmem:[#allocation10 + $0xa0] ss:$16 sps:$4 sm:$0xff]  }
 0xccb   :  { %5328 = vrot.lane.b32.xlu0 %v5327_v34, %s6141_s8  ;;  %v5129_v37 = vpop.f32.mrb[35].mxu1  ;;  %1897 = vmatpush1.bf16.msra.mxu1 %v5411_v2  ;;  %v5422_v34 = vld [vmem:[#allocation10 + $0xac] ss:$16 sps:$4 sm:$0xff]   ;;  %v5420_v36 = vld [vmem:[#allocation10 + $0xa8] ss:$16 sps:$4 sm:$0xff]   ;;  %v5460_v29 = vld [vmem:[#allocation11 + $0xf0] sm:$0xff]  }
 0xccc   :  { %1898 = vmatprep.subr.bf16.mxu1 %v5419_v33  ;;  %v5425_v37 = vld [vmem:[#allocation10 + $0xc4] ss:$16 sps:$4 sm:$0xff]   ;;  %v5464_v33 = vld [vmem:[#allocation11 + $0xf8] sm:$0xff]  }
 0xccd   :  { %v5462_v2 = vld [vmem:[#allocation11 + $0xb0] sm:$0xff]  }
 0xccf   :  { %1899 = vmatpush1.bf16.msra.mxu1 %v5417_v35  ;;  %v5466_v35 = vld [vmem:[#allocation11 + $0xb8] sm:$0xff]  }
 0xcd0   :  { %1900 = vmatprep.subr.bf16.mxu1 %v5425_v37  ;;  %v1718_v37 = vsub.s32 2, %v6588_v9 }
 0xcd3   :  { %1901 = vmatpush1.bf16.msra.mxu1 %v5423_v39  ;;  %v6795_v39 = vsub.s32 1, %v6588_v9 }
 0xcd4   :  { %1902 = vmatprep.subr.bf16.mxu1 %v5431_v41 }
 0xcd7   :  { %1903 = vmatpush1.bf16.msra.mxu1 %v5429_v44 }
 0xcd8   :  { %4876 = vmatprep.subr.bf16.mxu1 %v5435_v46 }
 0xd3d   :  { %v5329_v45 = vpop.permute.xlu0 %5328 }
 0xd3e   :  { %v5331_v51 = vunpack.i.h.bf16 %v5329_v45  ;;  %v5330_v53 = vunpack.i.l.bf16 %v5329_v45  ;;  %v5432_v45 = vld [vmem:[#allocation10 + $0xe8] ss:$16 sps:$4 sm:$0xff]  }
 0xd40   :  { %v1517_v57 = vsel %vm1515_vm6, %v1514_v56, %v5331_v51  ;;  %v1516_v58 = vsel %vm1515_vm6, %v1513_v54, %v5330_v53 }
 0xd41   :  { %v1518_v59 = vpack.c.bf16 %v1517_v57, %v1516_v58 }
 0xd43   :  { %5147 = vmatmul.mubr.bf16.vlgmr.msra.gmra.mrb[36].mxu0 %v1518_v59 }
 0xd44   :  { %1963 = vmatprep.mubr.bf16.mxu0 %v6139_v30  ;;  %1932 = vmatpush1.bf16.msra.mxu0 %v5390_v3 }
 0xd45   :  { %1933 = vmatprep.subr.bf16.mxu0 %v5398_v43  ;;  %v5441_v43 = vld [vmem:[#allocation11 + $0x8] sm:$0xff]  }
 0xd48   :  { %1934 = vmatpush1.bf16.msra.mxu0 %v5396_v48  ;;  %v5443_v48 = vld [vmem:[#allocation11 + $0x50] sm:$0xff]  }
 0xd49   :  { %1935 = vmatprep.subr.bf16.mxu0 %v5404_v22  ;;  %v5453_v22 = vld [vmem:[#allocation11 + $0x20] sm:$0xff]  }
 0xd4c   :  { %1936 = vmatpush1.bf16.msra.mxu0 %v5402_v24  ;;  %v5455_v24 = vld [vmem:[#allocation11 + $0x68] sm:$0xff]  }
 0xd4d   :  { %1937 = vmatprep.subr.bf16.mxu0 %v5410_v26  ;;  %v5457_v26 = vld [vmem:[#allocation11 + $0x28] sm:$0xff]  }
 0xd50   :  { %1938 = vmatpush1.bf16.msra.mxu0 %v5408_v28  ;;  %v5459_v28 = vld [vmem:[#allocation11 + $0x70] sm:$0xff]  }
 0xd51   :  { %1939 = vmatprep.subr.bf16.mxu0 %v5416_v31  ;;  %v5461_v31 = vld [vmem:[#allocation11 + $0x30] sm:$0xff]  }
 0xd54   :  { %1940 = vmatpush1.bf16.msra.mxu0 %v5414_v32  ;;  %v5463_v32 = vld [vmem:[#allocation11 + $0x78] sm:$0xff]  }
 0xd55   :  { %1941 = vmatprep.subr.bf16.mxu0 %v5422_v34  ;;  %v5465_v34 = vld [vmem:[#allocation11 + $0x38] sm:$0xff]  }
 0xd58   :  { %1942 = vmatpush1.bf16.msra.mxu0 %v5420_v36  ;;  %v6788_v36 = vsub.s32 0, %v6588_v9 }
 0xd59   :  { %1943 = vmatprep.subr.bf16.mxu0 %v5428_v38  ;;  %v1706_v38 = vld [vmem:[%s7245_s11] sm:$0xf] }
 0xd5a   :  { %v1711_v41 = vrot.slane %v1706_v38, %v6788_v36  ;;  %v1715_v44 = vrot.slane %v1706_v38, %v6795_v39 }
 0xd5c   :  { %1944 = vmatpush1.bf16.msra.mxu0 %v5426_v40  ;;  %v1722_v40 = vsub.s32 3, %v6588_v9 }
 0xd5d   :  { %1945 = vmatprep.subr.bf16.mxu0 %v5434_v42  ;;  %v1719_v42 = vrot.slane %v1706_v38, %v1718_v37 }
 0xd60   :  { %1946 = vmatpush1.bf16.msra.mxu0 %v5432_v45  ;;  %v1723_v45 = vrot.slane %v1706_v38, %v1722_v40  ;;  %v5470_v38 = vld [vmem:[#allocation17 + $0x8] ss:$12 sps:$4 sm:$0xff]  }
 0xd61   :  { %4898 = vmatprep.subr.bf16.mxu0 %v5436_v50 }
 0xe16   :  { %v1624_v61 = vpop.f32.mrb[36].mxu0 }
 0xe17   :  { %v1625_v49 = vadd.f32 %v4614_v52, %v1624_v61  ;;  %v5148_v62 = vpop.f32.mrb[37].mxu0  ;;  %v4623_v61 = vld [vmem:[#allocation7] ss:$0 sm:$0xff] }
 0xe18   :  { %v1627_v63 = vpop.f32.mrb[38].mxu0 }
 0xe19   :  { %v6765_v6 = vadd.f32 %v5695_v0, %v1625_v49  ;;  %v1628_v7 = vadd.f32 %v4614_v52, %v1627_v63  ;;  %v5149_v8 = vpop.f32.mrb[39].mxu0  ;;  %v4624_v0 = vld [vmem:[#allocation8] ss:$0 sm:$0xff] }
 0xe1b   :  { %v6770_v12 = vadd.f32 %v5696_v10, %v1628_v7  ;;  %1635 = vadd.xlane.f32.xlu1 %v6765_v6 }
 0xe1d   :  { %1637 = vadd.xlane.f32.xlu0 %v6770_v12 }
 0xea8   :  { %v1636_v17 = vpop.xlane.xlu1 %1635 }
 0xea9   :  { %v1639_v18 = vmul.f32 0.0078125, %v1636_v17  ;;  %v5444_v17 = vld [vmem:[#allocation11 + $0xd0] sm:$0xff]  }
 0xeaa   :  { %v1638_v55 = vpop.xlane.xlu0 %1637 }
 0xeab   :  { %v6775_v60 = vsub.f32 %v6765_v6, %v1639_v18  ;;  %v1640_v19 = vmul.f32 0.0078125, %v1638_v55  ;;  %v5445_v18 = vld [vmem:[#allocation11 + $0x10] sm:$0xff]  }
 0xeac   :  { %v5446_v55 = vld [vmem:[#allocation11 + $0x90] sm:$0xff]  }
 0xead   :  { %v6778_v5 = vsub.f32 %v6770_v12, %v1640_v19  ;;  %v1643_v20 = vmul.f32 %v6775_v60, %v6775_v60  ;;  %v5448_v19 = vld [vmem:[#allocation11 + $0xd8] sm:$0xff]  }
 0xeaf   :  { %1645 = vadd.xlane.f32.xlu0 %v1643_v20  ;;  %v1644_v1 = vmul.f32 %v6778_v5, %v6778_v5  ;;  %v5450_v20 = vld [vmem:[#allocation11 + $0x98] sm:$0xff]  }
 0xeb3   :  { %1647 = vadd.xlane.f32.xlu0 %v1644_v1  ;;  %v5451_v1 = vld [vmem:[#allocation11 + $0x60] sm:$0xff]  }
 0xf3c   :  { %v1646_v51 = vpop.xlane.xlu0 %1645 }
 0xf3d   :  { %v1649_v53 = vmul.f32 0.0078125, %v1646_v51 }
 0xf3f   :  { %v1651_v54 = vadd.f32 1e-05, %v1649_v53 }
 0xf40   :  { %v1648_v56 = vpop.xlane.xlu0 %1647 }
 0xf41   :  { %5647 = vrsqrt.f32 %v1651_v54  ;;  %v1650_v57 = vmul.f32 0.0078125, %v1648_v56 }
 0xf43   :  { %v1652_v58 = vadd.f32 1e-05, %v1650_v57 }
 0xf45   :  { %5649 = vrsqrt.f32 %v1652_v58 }
 0xf4b   :  { %v5648_v59 = vpop.eup %5647 }
 0xf4c   :  { %v1655_v52 = vmul.f32 %v5648_v59, %v6775_v60  ;;  %v5447_v60 = vld [vmem:[#allocation11 + $0x58] sm:$0xff]  }
 0xf4e   :  { %v1663_v63 = vmul.f32 %v4623_v61, %v1655_v52 }
 0xf4f   :  { %v5650_v49 = vpop.eup %5649 }
 0xf50   :  { %v1656_v62 = vmul.f32 %v5650_v49, %v6778_v5  ;;  %v1671_v8 = vadd.f32 %v4624_v0, %v1663_v63  ;;  %v5449_v5 = vld [vmem:[#allocation11 + $0x18] sm:$0xff]  }
 0xf52   :  { %v1664_v7 = vmul.f32 %v4623_v61, %v1656_v62 }
 0xf54   :  { %v1672_v10 = vadd.f32 %v4624_v0, %v1664_v7 }
 0xf56   :  { %v1673_v3 = vpack.c.bf16 %v1672_v10, %v1671_v8 }
 0xf58   :  { %1921 = vmatmul.mubr.bf16.vlgmr.msra.gmra.mrb[36].mxu1 %v1673_v3  ;;  %1964 = vmatmul.mubr.bf16.vlgmr.msra.gmra.mrb[40].mxu0 %v1673_v3 }
 0xf59   :  { %4877 = vmatpush3.bf16.msra.mxu1 %v5437_v13  ;;  %4899 = vmatpush3.bf16.msra.mxu0 %v5438_v14 }
 0xf5a   :  { %4878 = vmatprep.subr.bf16.mxu1 %v5439_v15  ;;  %4900 = vmatprep.subr.bf16.mxu0 %v5440_v16 }
 0xf5d   :  { %4879 = vmatpush3.bf16.msra.mxu1 %v5441_v43  ;;  %4901 = vmatpush3.bf16.msra.mxu0 %v5442_v47 }
 0xf5e   :  { %4880 = vmatprep.subr.bf16.mxu1 %v5443_v48  ;;  %4902 = vmatprep.subr.bf16.mxu0 %v5444_v17 }
 0xf61   :  { %4881 = vmatpush3.bf16.msra.mxu1 %v5445_v18  ;;  %4903 = vmatpush3.bf16.msra.mxu0 %v5446_v55 }
 0xf62   :  { %4882 = vmatprep.subr.bf16.mxu1 %v5447_v60  ;;  %4904 = vmatprep.subr.bf16.mxu0 %v5448_v19  ;;  %v4657_v19 = vld [vmem:[#allocation13] ss:$0 sm:$0xff] }
 0xf65   :  { %4883 = vmatpush3.bf16.msra.mxu1 %v5449_v5  ;;  %4905 = vmatpush3.bf16.msra.mxu0 %v5450_v20 }
 0xf66   :  { %4884 = vmatprep.subr.bf16.mxu1 %v5451_v1  ;;  %4906 = vmatprep.subr.bf16.mxu0 %v5452_v21 }
 0xf69   :  { %4885 = vmatpush3.bf16.msra.mxu1 %v5453_v22  ;;  %4907 = vmatpush3.bf16.msra.mxu0 %v5454_v23 }
 0xf6a   :  { %4886 = vmatprep.subr.bf16.mxu1 %v5455_v24  ;;  %4908 = vmatprep.subr.bf16.mxu0 %v5456_v25 }
 0xf6d   :  { %4887 = vmatpush3.bf16.msra.mxu1 %v5457_v26  ;;  %4909 = vmatpush3.bf16.msra.mxu0 %v5458_v27 }
 0xf6e   :  { %4888 = vmatprep.subr.bf16.mxu1 %v5459_v28  ;;  %4910 = vmatprep.subr.bf16.mxu0 %v5460_v29 }
 0xf71   :  { %4889 = vmatpush3.bf16.msra.mxu1 %v5461_v31  ;;  %4911 = vmatpush3.bf16.msra.mxu0 %v5462_v2 }
 0xf72   :  { %4890 = vmatprep.subr.bf16.mxu1 %v5463_v32  ;;  %4912 = vmatprep.subr.bf16.mxu0 %v5464_v33 }
 0xf75   :  { %4891 = vmatpush3.bf16.msra.mxu1 %v5465_v34  ;;  %4913 = vmatpush3.bf16.msra.mxu0 %v5466_v35  ;;  %v5467_v34 = vld [vmem:[#allocation17] ss:$12 sps:$4 sm:$0xff]   ;;  %v5469_v35 = vld [vmem:[#allocation17 + $0x4] ss:$12 sps:$4 sm:$0xff]  }
 0xf76   :  { %5150 = vmatprep.subr.bf16.mxu0 %v6138_v4  ;;  %2534 = vmatprep.subr.bf16.mxu1 %v5469_v35 }
0x102b   :  { %v1922_v46 = vpop.f32.mrb[36].mxu1  ;;  %v1965_v50 = vpop.f32.mrb[40].mxu0 }
0x102c   :  { %v1923_v51 = vadd.f32 %v1922_v46, %v1711_v41  ;;  %v1966_v53 = vadd.f32 %v1965_v50, %v1719_v42  ;;  %v1924_v54 = vpop.f32.mrb[37].mxu1  ;;  %v1967_v56 = vpop.f32.mrb[41].mxu0 }
0x102d   :  { %v1925_v57 = vadd.f32 %v1924_v54, %v1715_v44  ;;  %v1968_v58 = vadd.f32 %v1967_v56, %v1723_v45  ;;  %v1926_v59 = vpop.f32.mrb[38].mxu1  ;;  %v1969_v52 = vpop.f32.mrb[42].mxu0  ;;  %v5477_v56 = vld [vmem:[#allocation17 + $0x34] ss:$12 sps:$4 sm:$0xff]  }
0x102e   :  { %v1927_v61 = vadd.f32 %v1926_v59, %v1711_v41  ;;  %v1970_v49 = vadd.f32 %v1969_v52, %v1719_v42  ;;  %v1928_v62 = vpop.f32.mrb[39].mxu1  ;;  %v1971_v63 = vpop.f32.mrb[43].mxu0  ;;  %v1974_v8 = vmax.f32 %v1923_v51, 0.0  ;;  %v1976_v10 = vmax.f32 %v1966_v53, 0.0  ;;  %v5473_v41 = vld [vmem:[#allocation17 + $0x1c] ss:$12 sps:$4 sm:$0xff]  }
0x102f   :  { %v1929_v0 = vadd.f32 %v1928_v62, %v1715_v44  ;;  %v1972_v7 = vadd.f32 %v1971_v63, %v1723_v45  ;;  %v1975_v3 = vmax.f32 %v1925_v57, 0.0  ;;  %v1977_v15 = vmax.f32 %v1968_v58, 0.0  ;;  %v5474_v42 = vld [vmem:[#allocation17 + $0x20] ss:$12 sps:$4 sm:$0xff]   ;;  %v5471_v44 = vld [vmem:[#allocation17 + $0x18] ss:$12 sps:$4 sm:$0xff]  }
0x1030   :  { %v1978_v13 = vmax.f32 %v1927_v61, 0.0  ;;  %v1980_v14 = vmax.f32 %v1970_v49, 0.0  ;;  %v5475_v57 = vld [vmem:[#allocation17 + $0x30] ss:$12 sps:$4 sm:$0xff]   ;;  %v5478_v58 = vld [vmem:[#allocation17 + $0x38] ss:$12 sps:$4 sm:$0xff]  }
0x1031   :  { %v1979_v16 = vmax.f32 %v1929_v0, 0.0  ;;  %v1981_v43 = vmax.f32 %v1972_v7, 0.0  ;;  %v5481_v59 = vld [vmem:[#allocation17 + $0x4c] ss:$12 sps:$4 sm:$0xff]   ;;  %v5479_v52 = vld [vmem:[#allocation17 + $0x48] ss:$12 sps:$4 sm:$0xff]  }
0x1032   :  { %v1982_v47 = vpack.c.bf16 %v1978_v13, %v1974_v8  ;;  %v1984_v48 = vpack.c.bf16 %v1980_v14, %v1976_v10  ;;  %v5482_v61 = vld [vmem:[#allocation17 + $0x50] ss:$12 sps:$4 sm:$0xff]   ;;  %v5483_v62 = vld [vmem:[#allocation17 + $0x60] ss:$12 sps:$4 sm:$0xff]   ;;  %v5486_v63 = vld [vmem:[#allocation17 + $0x68] ss:$12 sps:$4 sm:$0xff]  }
0x1033   :  { %v1983_v17 = vpack.c.bf16 %v1979_v16, %v1975_v3  ;;  %v1985_v18 = vpack.c.bf16 %v1981_v43, %v1977_v15  ;;  %v5485_v49 = vld [vmem:[#allocation17 + $0x64] ss:$12 sps:$4 sm:$0xff]   ;;  %v5489_v0 = vld [vmem:[#allocation17 + $0x7c] ss:$12 sps:$4 sm:$0xff]   ;;  %v5490_v8 = vld [vmem:[#allocation17 + $0x80] ss:$12 sps:$4 sm:$0xff]  }
0x1034   :  { %v5487_v7 = vld [vmem:[#allocation17 + $0x78] ss:$12 sps:$4 sm:$0xff]   ;;  %v5493_v10 = vld [vmem:[#allocation17 + $0x94] ss:$12 sps:$4 sm:$0xff]   ;;  %v5491_v13 = vld [vmem:[#allocation17 + $0x90] ss:$12 sps:$4 sm:$0xff]  }
0x1035   :  { %2281 = vmatprep.mubr.bf16.mxu1 %v1983_v17  ;;  %2322 = vmatprep.mubr.bf16.mxu0 %v1985_v18  ;;  %v5494_v14 = vld [vmem:[#allocation17 + $0x98] ss:$12 sps:$4 sm:$0xff]   ;;  %v5495_v15 = vld [vmem:[#allocation17 + $0xa8] ss:$12 sps:$4 sm:$0xff]   ;;  %v5498_v16 = vld [vmem:[#allocation17 + $0xb0] ss:$12 sps:$4 sm:$0xff]  }
0x1036   :  { %2282 = vmatmul.mubr.bf16.vlgmr.msra.gmra.mrb[40].mxu1 %v1982_v47  ;;  %2323 = vmatmul.mubr.bf16.vlgmr.msra.gmra.mrb[44].mxu0 %v1984_v48  ;;  %v5497_v3 = vld [vmem:[#allocation17 + $0xac] ss:$12 sps:$4 sm:$0xff]  }
0x1037   :  { %2566 = vmatprep.mubr.bf16.mxu1 %v6139_v30  ;;  %5166 = vmatprep.mubr.msk.bf16.mxu0 %vm6140_vm0, %v6138_v4 }
0x1038   :  { %5151 = vmatpush3.bf16.msra.mxu0 %v5470_v38  ;;  %2535 = vmatpush1.bf16.msra.mxu1 %v5467_v34 }
0x1039   :  { %5152 = vmatprep.subr.bf16.mxu0 %v6138_v4  ;;  %2536 = vmatprep.subr.bf16.mxu1 %v5473_v41 }
0x103c   :  { %5153 = vmatpush3.bf16.msra.mxu0 %v5474_v42  ;;  %2537 = vmatpush1.bf16.msra.mxu1 %v5471_v44 }
0x103d   :  { %5154 = vmatprep.subr.bf16.mxu0 %v6138_v4  ;;  %2538 = vmatprep.subr.bf16.mxu1 %v5477_v56 }
0x1040   :  { %2539 = vmatpush1.bf16.msra.mxu1 %v5475_v57  ;;  %5155 = vmatpush3.bf16.msra.mxu0 %v5478_v58 }
0x1041   :  { %5156 = vmatprep.subr.bf16.mxu0 %v6138_v4  ;;  %2540 = vmatprep.subr.bf16.mxu1 %v5481_v59 }
0x1044   :  { %2541 = vmatpush1.bf16.msra.mxu1 %v5479_v52  ;;  %5157 = vmatpush3.bf16.msra.mxu0 %v5482_v61 }
0x1045   :  { %5158 = vmatprep.subr.bf16.mxu0 %v6138_v4  ;;  %2542 = vmatprep.subr.bf16.mxu1 %v5485_v49 }
0x1048   :  { %2543 = vmatpush1.bf16.msra.mxu1 %v5483_v62  ;;  %5159 = vmatpush3.bf16.msra.mxu0 %v5486_v63 }
0x1049   :  { %5160 = vmatprep.subr.bf16.mxu0 %v6138_v4  ;;  %2544 = vmatprep.subr.bf16.mxu1 %v5489_v0 }
0x104c   :  { %2545 = vmatpush1.bf16.msra.mxu1 %v5487_v7  ;;  %5161 = vmatpush3.bf16.msra.mxu0 %v5490_v8 }
0x104d   :  { %5162 = vmatprep.subr.bf16.mxu0 %v6138_v4  ;;  %2546 = vmatprep.subr.bf16.mxu1 %v5493_v10 }
0x1050   :  { %2547 = vmatpush1.bf16.msra.mxu1 %v5491_v13  ;;  %5163 = vmatpush3.bf16.msra.mxu0 %v5494_v14 }
0x1051   :  { %2548 = vmatprep.subr.bf16.mxu1 %v5497_v3  ;;  %5164 = vmatprep.subr.bf16.mxu0 %v6138_v4 }
0x1054   :  { %2549 = vmatpush1.bf16.msra.mxu1 %v5495_v15  ;;  %5165 = vmatpush3.bf16.msra.mxu0 %v5498_v16 }
0x1055   :  { %5170 = vmatprep.subr.bf16.mxu1 %v6138_v4  ;;  %5194 = vmatprep.subr.bf16.mxu0 %v6138_v4 }
0x1109   :  { %v4892_v55 = vpop.f32.mrb[40].mxu1  ;;  %v4914_v60 = vpop.f32.mrb[44].mxu0 }
0x110a   :  { %v4893_v5 = vpop.f32.mrb[41].mxu1  ;;  %v4915_v20 = vpop.f32.mrb[45].mxu0 }
0x110b   :  { %v4894_v1 = vadd.f32 %v4893_v5, %v4892_v55  ;;  %v4916_v21 = vadd.f32 %v4915_v20, %v4914_v60  ;;  %v4895_v22 = vpop.f32.mrb[42].mxu1  ;;  %v4917_v23 = vpop.f32.mrb[46].mxu0 }
0x110c   :  { %v4896_v24 = vpop.f32.mrb[43].mxu1  ;;  %v4918_v25 = vpop.f32.mrb[47].mxu0 }
0x110d   :  { %v2284_v26 = vadd.f32 %v4894_v1, %v4657_v19  ;;  %v4897_v27 = vadd.f32 %v4896_v24, %v4895_v22  ;;  %v4919_v28 = vadd.f32 %v4918_v25, %v4917_v23  ;;  %v4691_v22 = vld [vmem:[#allocation16] ss:$0 sm:$0xff] }
0x110f   :  { %v2325_v29 = vadd.f32 %v4916_v21, %v2284_v26  ;;  %v2287_v31 = vadd.f32 %v4897_v27, %v4657_v19  ;;  %v4690_v19 = vld [vmem:[#allocation14] ss:$0 sm:$0xff] }
0x1111   :  { %v2328_v2 = vadd.f32 %v4919_v28, %v2287_v31  ;;  %v6808_v32 = vadd.f32 %v2325_v29, %v6765_v6 }
0x1113   :  { %2335 = vadd.xlane.f32.xlu1 %v6808_v32  ;;  %v6812_v33 = vadd.f32 %v2328_v2, %v6770_v12 }
0x1115   :  { %2337 = vadd.xlane.f32.xlu0 %v6812_v33 }
0x11a0   :  { %v2336_v6 = vpop.xlane.xlu1 %2335 }
0x11a1   :  { %v2339_v12 = vmul.f32 0.0078125, %v2336_v6 }
0x11a2   :  { %v2338_v45 = vpop.xlane.xlu0 %2337 }
0x11a3   :  { %v2341_v46 = vsub.f32 %v6808_v32, %v2339_v12  ;;  %v2340_v50 = vmul.f32 0.0078125, %v2338_v45 }
0x11a5   :  { %v2342_v51 = vsub.f32 %v6812_v33, %v2340_v50  ;;  %v2343_v53 = vmul.f32 %v2341_v46, %v2341_v46 }
0x11a7   :  { %2345 = vadd.xlane.f32.xlu1 %v2343_v53  ;;  %v2344_v54 = vmul.f32 %v2342_v51, %v2342_v51 }
0x11a9   :  { %2347 = vadd.xlane.f32.xlu0 %v2344_v54 }
0x1234   :  { %v2346_v43 = vpop.xlane.xlu1 %2345 }
0x1235   :  { %v2349_v47 = vmul.f32 0.0078125, %v2346_v43 }
0x1236   :  { %v2348_v48 = vpop.xlane.xlu0 %2347 }
0x1237   :  { %v2351_v17 = vadd.f32 1e-05, %v2349_v47  ;;  %v2350_v18 = vmul.f32 0.0078125, %v2348_v48 }
0x1239   :  { %5651 = vrsqrt.f32 %v2351_v17  ;;  %v2352_v55 = vadd.f32 1e-05, %v2350_v18 }
0x123b   :  { %5653 = vrsqrt.f32 %v2352_v55 }
0x1243   :  { %v5652_v60 = vpop.eup %5651 }
0x1244   :  { %v2355_v5 = vmul.f32 %v5652_v60, %v2341_v46 }
0x1245   :  { %v5654_v20 = vpop.eup %5653 }
0x1246   :  { %v2356_v1 = vmul.f32 %v5654_v20, %v2342_v51  ;;  %v2363_v21 = vmul.f32 %v4690_v19, %v2355_v5 }
0x1248   :  { %v2364_v23 = vmul.f32 %v4690_v19, %v2356_v1  ;;  %v2371_v24 = vadd.f32 %v4691_v22, %v2363_v21 }
0x124a   :  { %v2372_v25 = vadd.f32 %v4691_v22, %v2364_v23 }
0x124c   :  { %v2373_v26 = vpack.c.bf16 %v2372_v25, %v2371_v24 }
0x124e   :  { %2567 = vmatmul.mubr.bf16.vlgmr.msra.gmra.mrb[44].mxu1 %v2373_v26  ;;  %5167 = vmatmul.mubr.bf16.vlgmr.msra.gmra.mrb[48].mxu0 %v2373_v26 }
0x124f   :  { %5172 = vmatprep.mubr.msk.bf16.mxu1 %vm6140_vm0, %v6138_v4  ;;  %5196 = vmatprep.mubr.msk.bf16.mxu0 %vm6140_vm0, %v6138_v4 }
0x1321   :  { %v2568_v27 = vpop.f32.mrb[44].mxu1  ;;  %v2611_v28 = vpop.f32.mrb[48].mxu0 }
0x1322   :  { %v6830_v29 = vpack.c.bf16 %v2568_v27, %v2568_v27  ;;  %v2570_v31 = vpop.f32.mrb[45].mxu1  ;;  %v5168_v2 = vpop.f32.mrb[49].mxu0  ;;  %v6846_v45 = vpack.c.bf16 %v2611_v28, %v2611_v28 }
0x1323   :  { %v2572_v34 = vpop.f32.mrb[46].mxu1  ;;  %v2614_v35 = vpop.f32.mrb[50].mxu0  ;;  %v6837_v6 = vpack.c.bf16 %v2570_v31, %v2570_v31 }
0x1324   :  { %v2574_v38 = vpop.f32.mrb[47].mxu1  ;;  %v5169_v41 = vpop.f32.mrb[51].mxu0  ;;  %v2628_v42 = vsel %vm599_vm1, %v6830_v29, 0  ;;  %v6835_v44 = vpack.c.bf16 %v2572_v34, %v2572_v34  ;;  %v2746_v50 = vsel %vm724_vm2, %v6846_v45, 0  ;;  %v6875_v60 = vpack.c.bf16 %v2614_v35, %v2614_v35 }
0x1325   :  { %5171 = vmatpush3.bf16.xpose.msra.mxu1 %v2628_v42  ;;  %v6848_v46 = vpack.c.bf16 %v2574_v38, %v2574_v38 }
0x1326   :  { %5176 = vmatprep.subr.bf16.mxu1 %v6138_v4  ;;  %v2674_v12 = vsel %vm599_vm1, %v6835_v44, 0  ;;  %v2792_v1 = vsel %vm724_vm2, %v6875_v60, 0 }
0x132c   :  { %5173 = vmatmul.mubr.msk.bf16.vlgmr.msra.gmra.mrb[48].mxu1 %vm599_vm1, %v6837_v6 }
0x132d   :  { %5177 = vmatpush3.bf16.xpose.msra.mxu1 %v2674_v12  ;;  %5178 = vmatprep.mubr.msk.bf16.mxu1 %vm6140_vm0, %v6138_v4 }
0x132e   :  { %5182 = vmatprep.subr.bf16.mxu1 %v6138_v4 }
0x1334   :  { %5179 = vmatmul.mubr.msk.bf16.vlgmr.msra.gmra.mrb[52].mxu1 %vm599_vm1, %v6848_v46 }
0x1335   :  { %5183 = vmatpush3.bf16.msra.mxu1 %v2746_v50  ;;  %5184 = vmatprep.mubr.msk.bf16.mxu1 %vm6140_vm0, %v6138_v4 }
0x1336   :  { %5188 = vmatprep.subr.bf16.mxu1 %v6138_v4 }
0x13ff   :  { %v2664_v51 = vpop.f32.mrb[48].mxu1 }
0x1400   :  { %v2716_v53 = vsel %vm6591_vm3, %v2664_v51, -inf  ;;  %v5174_v54 = vpop.f32.mrb[49].mxu1 }
0x1401   :  { %v2667_v56 = vpop.f32.mrb[50].mxu1  ;;  %v2718_v57 = vsel %vm696_vm4, %v2716_v53, -inf }
0x1402   :  { %2719 = vmax.xlane.f32.xlu1 %v2718_v57  ;;  %v5175_v58 = vpop.f32.mrb[51].mxu1 }
0x1407   :  { %v2710_v59 = vpop.f32.mrb[52].mxu1 }
0x1408   :  { %v2717_v52 = vsel %vm6591_vm3, %v2710_v59, -inf  ;;  %v5180_v61 = vpop.f32.mrb[53].mxu1 }
0x1409   :  { %v2713_v49 = vpop.f32.mrb[54].mxu1  ;;  %v2721_v62 = vsel %vm696_vm4, %v2717_v52, -inf }
0x140a   :  { %2722 = vmax.xlane.f32.xlu0 %v2721_v62  ;;  %v5181_v63 = vpop.f32.mrb[55].mxu1 }
0x148f   :  { %v2720_v0 = vpop.xlane.xlu1 %2719 }
0x1490   :  { %v2724_v7 = vsub.f32 %v2716_v53, %v2720_v0 }
0x1492   :  { %v2726_v8 = vmul.f32 1.442695, %v2724_v7 }
0x1494   :  { %5655 = vpow2.f32 %v2726_v8 }
0x1497   :  { %v2723_v10 = vpop.xlane.xlu0 %2722 }
0x1498   :  { %v2725_v13 = vsub.f32 %v2717_v52, %v2723_v10 }
0x149a   :  { %v2728_v14 = vmul.f32 1.442695, %v2725_v13 }
0x149c   :  { %5657 = vpow2.f32 %v2728_v14 }
0x149e   :  { %v5656_v3 = vpop.eup %5655 }
0x149f   :  { %v2730_v15 = vsel %vm696_vm4, %v5656_v3, 0.0 }
0x14a0   :  { %2731 = vadd.xlane.f32.xlu1 %v2730_v15 }
0x14a6   :  { %v5658_v16 = vpop.eup %5657 }
0x14a7   :  { %v2733_v43 = vsel %vm696_vm4, %v5658_v16, 0.0 }
0x14a8   :  { %2734 = vadd.xlane.f32.xlu0 %v2733_v43 }
0x14b1   :  { %2838 = vrot.lane.b32.xlu1 %v6830_v29, %s6141_s8 }
0x14b5   :  { %2835 = vrot.lane.b32.xlu1 %v6837_v6, %s6141_s8 }
0x14b9   :  { %2887 = vrot.lane.b32.xlu1 %v6848_v46, %s6141_s8 }
0x14be   :  { %2890 = vrot.lane.b32.xlu0 %v6835_v44, %s6141_s8 }
0x152d   :  { %v2732_v47 = vpop.xlane.xlu1 %2731 }
0x152e   :  { %5659 = vrcp.f32 %v2732_v47 }
0x1531   :  { %v2839_v48 = vpop.permute.xlu1 %2838 }
0x1532   :  { %v2844_v17 = vsel %vm599_vm1, %v2839_v48, 0 }
0x1533   :  { %5195 = vmatpush3.bf16.xpose.msra.mxu0 %v2844_v17 }
0x1534   :  { %5206 = vmatprep.subr.bf16.mxu0 %v6138_v4 }
0x1535   :  { %v2735_v18 = vpop.xlane.xlu0 %2734  ;;  %v2836_v5 = vpop.permute.xlu1 %2835 }
0x1536   :  { %5661 = vrcp.f32 %v2735_v18 }
0x1538   :  { %v5660_v55 = vpop.eup %5659 }
0x1539   :  { %v2738_v19 = vmul.f32 %v5660_v55, %v5656_v3  ;;  %v2891_v23 = vpop.permute.xlu0 %2890  ;;  %v2888_v26 = vpop.permute.xlu1 %2887 }
0x153a   :  { %5197 = vmatmul.mubr.msk.bf16.vlgmr.msra.gmra.mrb[52].mxu0 %vm599_vm1, %v2836_v5  ;;  %v2896_v25 = vsel %vm599_vm1, %v2891_v23, 0 }
0x153b   :  { %v2740_v20 = vpack.c.bf16 %v2738_v19, %v2738_v19  ;;  %5208 = vmatprep.mubr.msk.bf16.mxu0 %vm6140_vm0, %v6138_v4 }
0x153d   :  { %5185 = vmatmul.mubr.msk.bf16.vlgmr.msra.gmra.mrb[56].mxu1 %vm696_vm4, %v2740_v20 }
0x153e   :  { %5189 = vmatpush3.bf16.msra.mxu1 %v2792_v1  ;;  %5190 = vmatprep.mubr.msk.bf16.mxu1 %vm6140_vm0, %v6138_v4 }
0x153f   :  { %5200 = vmatprep.subr.bf16.mxu1 %v6138_v4 }
0x1540   :  { %v5662_v21 = vpop.eup %5661 }
0x1541   :  { %v2739_v22 = vmul.f32 %v5662_v21, %v5658_v16 }
0x1543   :  { %v2741_v24 = vpack.c.bf16 %v2739_v22, %v2739_v22 }
0x1545   :  { %5191 = vmatmul.mubr.msk.bf16.vlgmr.msra.gmra.mrb[60].mxu1 %vm696_vm4, %v2741_v24 }
0x1546   :  { %5202 = vmatprep.mubr.msk.bf16.mxu1 %vm6140_vm0, %v6138_v4 }
0x1547   :  { %5201 = vmatpush3.bf16.xpose.msra.mxu1 %v2896_v25 }
0x1548   :  { %5212 = vmatprep.subr.bf16.mxu1 %v6138_v4 }
0x154e   :  { %5203 = vmatmul.mubr.msk.bf16.vlgmr.msra.gmra.mrb[64].mxu1 %vm599_vm1, %v2888_v26 }
0x154f   :  { %5214 = vmatprep.mubr.msk.bf16.mxu1 %vm6140_vm0, %v6138_v4 }
0x160d   :  { %v2880_v27 = vpop.f32.mrb[52].mxu0 }
0x160e   :  { %v2938_v28 = vsel %vm6591_vm3, %v2880_v27, -inf  ;;  %v5198_v31 = vpop.f32.mrb[53].mxu0 }
0x160f   :  { %v2883_v2 = vpop.f32.mrb[54].mxu0  ;;  %v2940_v34 = vsel %vm696_vm4, %v2938_v28, -inf }
0x1610   :  { %v5199_v35 = vpop.f32.mrb[55].mxu0  ;;  %2941 = vmax.xlane.f32.xlu1 %v2940_v34  ;;  %v6897_v38 = vpop.f32.mrb[56].mxu1 }
0x1611   :  { %v5186_v41 = vpop.f32.mrb[57].mxu1 }
0x1612   :  { %v2785_v42 = vpop.f32.mrb[58].mxu1 }
0x1613   :  { %v5187_v12 = vpop.f32.mrb[59].mxu1 }
0x1618   :  { %v6899_v50 = vpop.f32.mrb[60].mxu1 }
0x1619   :  { %v5192_v51 = vpop.f32.mrb[61].mxu1 }
0x161a   :  { %v2831_v53 = vpop.f32.mrb[62].mxu1 }
0x161b   :  { %v5193_v54 = vpop.f32.mrb[63].mxu1 }
0x1621   :  { %v2932_v56 = vpop.f32.mrb[64].mxu1  ;;  %2965 = vrot.lane.b32.xlu1 %v6846_v45, %s6141_s8 }
0x1622   :  { %v2939_v57 = vsel %vm6591_vm3, %v2932_v56, -inf  ;;  %v5204_v58 = vpop.f32.mrb[65].mxu1 }
0x1623   :  { %v2935_v59 = vpop.f32.mrb[66].mxu1  ;;  %v2943_v52 = vsel %vm696_vm4, %v2939_v57, -inf }
0x1624   :  { %2944 = vmax.xlane.f32.xlu0 %v2943_v52  ;;  %v5205_v61 = vpop.f32.mrb[67].mxu1 }
0x1625   :  { %3064 = vrot.lane.b32.xlu1 %v6830_v29, %s6114_s6 }
0x1629   :  { %3114 = vrot.lane.b32.xlu1 %v6835_v44, %s6114_s6 }
0x162d   :  { %3062 = vrot.lane.b32.xlu1 %v6837_v6, %s6114_s6 }
0x169d   :  { %v2942_v49 = vpop.xlane.xlu1 %2941 }
0x169e   :  { %v2946_v62 = vsub.f32 %v2938_v28, %v2942_v49 }
0x16a0   :  { %v2948_v63 = vmul.f32 1.442695, %v2946_v62 }
0x16a1   :  { %v2966_v0 = vpop.permute.xlu1 %2965 }
0x16a2   :  { %5663 = vpow2.f32 %v2948_v63  ;;  %v2971_v7 = vsel %vm724_vm2, %v2966_v0, 0 }
0x16a3   :  { %5207 = vmatpush3.bf16.msra.mxu0 %v2971_v7 }
0x16a4   :  { %5218 = vmatprep.subr.bf16.mxu0 %v6138_v4 }
0x16a5   :  { %v3065_v48 = vpop.permute.xlu1 %3064 }
0x16a6   :  { %v3070_v55 = vsel %vm599_vm1, %v3065_v48, 0 }
0x16a9   :  { %v3115_v19 = vpop.permute.xlu1 %3114 }
0x16aa   :  { %v3120_v25 = vsel %vm599_vm1, %v3115_v19, 0 }
0x16ac   :  { %v5664_v8 = vpop.eup %5663 }
0x16ad   :  { %v2952_v10 = vsel %vm696_vm4, %v5664_v8, 0.0  ;;  %v3063_v20 = vpop.permute.xlu1 %3062 }
0x16ae   :  { %2953 = vadd.xlane.f32.xlu0 %v2952_v10 }
0x16b1   :  { %v2945_v13 = vpop.xlane.xlu0 %2944 }
0x16b2   :  { %v2947_v14 = vsub.f32 %v2939_v57, %v2945_v13 }
0x16b4   :  { %v2950_v3 = vmul.f32 1.442695, %v2947_v14 }
0x16b6   :  { %5665 = vpow2.f32 %v2950_v3 }
0x16c0   :  { %v5666_v15 = vpop.eup %5665 }
0x16c1   :  { %v2955_v16 = vsel %vm696_vm4, %v5666_v15, 0.0 }
0x16c2   :  { %2956 = vadd.xlane.f32.xlu0 %v2955_v16 }
0x16d8   :  { %3014 = vrot.lane.b32.xlu0 %v6875_v60, %s6141_s8 }
0x16dc   :  { %3112 = vrot.lane.b32.xlu0 %v6848_v46, %s6114_s6 }
0x173b   :  { %v2954_v43 = vpop.xlane.xlu0 %2953 }
0x173c   :  { %5667 = vrcp.f32 %v2954_v43 }
0x1746   :  { %v5668_v47 = vpop.eup %5667 }
0x1747   :  { %v2960_v17 = vmul.f32 %v5668_v47, %v5664_v8 }
0x1749   :  { %v2962_v18 = vpack.c.bf16 %v2960_v17, %v2960_v17 }
0x174b   :  { %5209 = vmatmul.mubr.msk.bf16.vlgmr.msra.gmra.mrb[56].mxu0 %vm696_vm4, %v2962_v18 }
0x174c   :  { %5219 = vmatpush3.bf16.xpose.msra.mxu0 %v3070_v55  ;;  %5220 = vmatprep.mubr.msk.bf16.mxu0 %vm6140_vm0, %v6138_v4 }
0x174d   :  { %5230 = vmatprep.subr.bf16.mxu0 %v6138_v4 }
0x174f   :  { %v2957_v5 = vpop.xlane.xlu0 %2956 }
0x1750   :  { %5669 = vrcp.f32 %v2957_v5 }
0x1753   :  { %v3015_v1 = vpop.permute.xlu0 %3014  ;;  %5221 = vmatmul.mubr.msk.bf16.vlgmr.msra.gmra.mrb[60].mxu0 %vm599_vm1, %v3063_v20 }
0x1754   :  { %v3020_v21 = vsel %vm724_vm2, %v3015_v1, 0  ;;  %5232 = vmatprep.mubr.msk.bf16.mxu0 %vm6140_vm0, %v6138_v4 }
0x1755   :  { %5213 = vmatpush3.bf16.msra.mxu1 %v3020_v21 }
0x1756   :  { %5224 = vmatprep.subr.bf16.mxu1 %v6138_v4 }
0x1757   :  { %v3113_v26 = vpop.permute.xlu0 %3112 }
0x175a   :  { %v5670_v22 = vpop.eup %5669 }
0x175b   :  { %v2961_v23 = vmul.f32 %v5670_v22, %v5666_v15 }
0x175d   :  { %v2963_v24 = vpack.c.bf16 %v2961_v23, %v2961_v23 }
0x175f   :  { %5215 = vmatmul.mubr.msk.bf16.vlgmr.msra.gmra.mrb[68].mxu1 %vm696_vm4, %v2963_v24 }
0x1760   :  { %5225 = vmatpush3.bf16.xpose.msra.mxu1 %v3120_v25  ;;  %5226 = vmatprep.mubr.msk.bf16.mxu1 %vm6140_vm0, %v6138_v4 }
0x1761   :  { %5236 = vmatprep.subr.bf16.mxu1 %v6138_v4 }
0x1767   :  { %5227 = vmatmul.mubr.msk.bf16.vlgmr.msra.gmra.mrb[72].mxu1 %vm599_vm1, %v3113_v26 }
0x1768   :  { %5238 = vmatprep.mubr.msk.bf16.mxu1 %vm6140_vm0, %v6138_v4 }
0x181e   :  { %v6938_v27 = vpop.f32.mrb[56].mxu0 }
0x181f   :  { %v5210_v28 = vpop.f32.mrb[57].mxu0 }
0x1820   :  { %v3010_v31 = vpop.f32.mrb[58].mxu0 }
0x1821   :  { %v5211_v2 = vpop.f32.mrb[59].mxu0 }
0x1826   :  { %v3106_v34 = vpop.f32.mrb[60].mxu0 }
0x1827   :  { %v3162_v35 = vsel %vm6591_vm3, %v3106_v34, -inf  ;;  %v5222_v41 = vpop.f32.mrb[61].mxu0 }
0x1828   :  { %v3109_v42 = vpop.f32.mrb[62].mxu0  ;;  %v3164_v12 = vsel %vm696_vm4, %v3162_v35, -inf }
0x1829   :  { %3165 = vmax.xlane.f32.xlu1 %v3164_v12  ;;  %v5223_v51 = vpop.f32.mrb[63].mxu0 }
0x1832   :  { %v6943_v53 = vpop.f32.mrb[68].mxu1 }
0x1833   :  { %v5332_v54 = vpack.i.bf16 %v6943_v53, %v6938_v27  ;;  %v5216_v56 = vpop.f32.mrb[69].mxu1 }
0x1834   :  { %v3059_v57 = vpop.f32.mrb[70].mxu1 }
0x1835   :  { %v5217_v58 = vpop.f32.mrb[71].mxu1 }
0x183a   :  { %v3156_v59 = vpop.f32.mrb[72].mxu1  ;;  %3188 = vrot.lane.b32.xlu1 %v6846_v45, %s6114_s6 }
0x183b   :  { %v3163_v52 = vsel %vm6591_vm3, %v3156_v59, -inf  ;;  %v5228_v61 = vpop.f32.mrb[73].mxu1 }
0x183c   :  { %v3159_v49 = vpop.f32.mrb[74].mxu1  ;;  %v3167_v62 = vsel %vm696_vm4, %v3163_v52, -inf }
0x183d   :  { %3168 = vmax.xlane.f32.xlu0 %v3167_v62  ;;  %v5229_v63 = vpop.f32.mrb[75].mxu1 }
0x183e   :  { %3286 = vrot.lane.b32.xlu1 %v6830_v29, %s6142_s5 }
0x1842   :  { %3336 = vrot.lane.b32.xlu1 %v6835_v44, %s6142_s5 }
0x1846   :  { %3284 = vrot.lane.b32.xlu1 %v6837_v6, %s6142_s5 }
0x18b6   :  { %v3166_v0 = vpop.xlane.xlu1 %3165 }
0x18b7   :  { %v3170_v7 = vsub.f32 %v3162_v35, %v3166_v0 }
0x18b9   :  { %v3172_v8 = vmul.f32 1.442695, %v3170_v7 }
0x18ba   :  { %v3189_v10 = vpop.permute.xlu1 %3188 }
0x18bb   :  { %5671 = vpow2.f32 %v3172_v8  ;;  %v3194_v13 = vsel %vm724_vm2, %v3189_v10, 0 }
0x18bc   :  { %5231 = vmatpush3.bf16.msra.mxu0 %v3194_v13 }
0x18bd   :  { %5242 = vmatprep.subr.bf16.mxu0 %v6138_v4 }
0x18be   :  { %v3287_v48 = vpop.permute.xlu1 %3286 }
0x18bf   :  { %v3292_v55 = vsel %vm599_vm1, %v3287_v48, 0 }
0x18c2   :  { %v3337_v19 = vpop.permute.xlu1 %3336 }
0x18c3   :  { %v3342_v24 = vsel %vm599_vm1, %v3337_v19, 0 }
0x18c5   :  { %v5672_v14 = vpop.eup %5671 }
0x18c6   :  { %v3176_v3 = vsel %vm696_vm4, %v5672_v14, 0.0 }
0x18c7   :  { %3177 = vadd.xlane.f32.xlu0 %v3176_v3 }
0x18ca   :  { %v3169_v29 = vpop.xlane.xlu0 %3168 }
0x18cb   :  { %v3171_v15 = vsub.f32 %v3163_v52, %v3169_v29 }
0x18cd   :  { %v3174_v44 = vmul.f32 1.442695, %v3171_v15 }
0x18cf   :  { %5673 = vpow2.f32 %v3174_v44 }
0x18d9   :  { %v5674_v16 = vpop.eup %5673 }
0x18da   :  { %v3179_v6 = vsel %vm696_vm4, %v5674_v16, 0.0 }
0x18db   :  { %3180 = vadd.xlane.f32.xlu0 %v3179_v6 }
0x18f1   :  { %3236 = vrot.lane.b32.xlu0 %v6875_v60, %s6114_s6 }
0x18f5   :  { %3334 = vrot.lane.b32.xlu0 %v6848_v46, %s6142_s5  ;;  %v3285_v46 = vpop.permute.xlu1 %3284 }
0x1954   :  { %v3178_v43 = vpop.xlane.xlu0 %3177 }
0x1955   :  { %5675 = vrcp.f32 %v3178_v43 }
0x195f   :  { %v5676_v47 = vpop.eup %5675 }
0x1960   :  { %v3184_v17 = vmul.f32 %v5676_v47, %v5672_v14 }
0x1962   :  { %v3186_v18 = vpack.c.bf16 %v3184_v17, %v3184_v17 }
0x1964   :  { %5233 = vmatmul.mubr.msk.bf16.vlgmr.msra.gmra.mrb[64].mxu0 %vm696_vm4, %v3186_v18 }
0x1965   :  { %5243 = vmatpush3.bf16.xpose.msra.mxu0 %v3292_v55  ;;  %5244 = vmatprep.mubr.msk.bf16.mxu0 %vm6140_vm0, %v6138_v4 }
0x1966   :  { %5254 = vmatprep.subr.bf16.mxu0 %v6138_v4 }
0x1968   :  { %v3181_v5 = vpop.xlane.xlu0 %3180 }
0x1969   :  { %5677 = vrcp.f32 %v3181_v5  ;;  %v5500_v5 = vld [vmem:[#allocation19 + $0x8] sm:$0xff]  }
0x196c   :  { %v3237_v20 = vpop.permute.xlu0 %3236  ;;  %5245 = vmatmul.mubr.msk.bf16.vlgmr.msra.gmra.mrb[68].mxu0 %vm599_vm1, %v3285_v46  ;;  %v5501_v46 = vld [vmem:[#allocation19 + $0x10] sm:$0xff]  }
0x196d   :  { %v3242_v1 = vsel %vm724_vm2, %v3237_v20, 0  ;;  %5256 = vmatprep.mubr.msk.bf16.mxu0 %vm6140_vm0, %v6138_v4  ;;  %v5502_v20 = vld [vmem:[#allocation19 + $0x18] sm:$0xff]  }
0x196e   :  { %5237 = vmatpush3.bf16.msra.mxu1 %v3242_v1  ;;  %v5503_v1 = vld [vmem:[#allocation19 + $0x20] sm:$0xff]  }
0x196f   :  { %5248 = vmatprep.subr.bf16.mxu1 %v6138_v4 }
0x1970   :  { %v3335_v25 = vpop.permute.xlu0 %3334 }
0x1973   :  { %v5678_v21 = vpop.eup %5677 }
0x1974   :  { %v3185_v22 = vmul.f32 %v5678_v21, %v5674_v16  ;;  %v5504_v21 = vld [vmem:[#allocation19 + $0x28] sm:$0xff]  }
0x1976   :  { %v3187_v23 = vpack.c.bf16 %v3185_v22, %v3185_v22  ;;  %v5505_v22 = vld [vmem:[#allocation19 + $0x30] sm:$0xff]  }
0x1978   :  { %5239 = vmatmul.mubr.msk.bf16.vlgmr.msra.gmra.mrb[76].mxu1 %vm696_vm4, %v3187_v23 }
0x1979   :  { %5249 = vmatpush3.bf16.xpose.msra.mxu1 %v3342_v24  ;;  %5250 = vmatprep.mubr.msk.bf16.mxu1 %vm6140_vm0, %v6138_v4 }
0x197a   :  { %5260 = vmatprep.subr.bf16.mxu1 %v6138_v4 }
0x1980   :  { %5251 = vmatmul.mubr.msk.bf16.vlgmr.msra.gmra.mrb[80].mxu1 %vm599_vm1, %v3335_v25 }
0x1981   :  { %5262 = vmatprep.mubr.msk.bf16.mxu1 %vm6140_vm0, %v6138_v4 }
0x1a37   :  { %v3230_v26 = vpop.f32.mrb[64].mxu0 }
0x1a38   :  { %v5234_v28 = vpop.f32.mrb[65].mxu0 }
0x1a39   :  { %v3233_v31 = vpop.f32.mrb[66].mxu0  ;;  %v5506_v28 = vld [vmem:[#allocation19 + $0x38] sm:$0xff]  }
0x1a3a   :  { %v5235_v2 = vpop.f32.mrb[67].mxu0 }
0x1a3f   :  { %v3328_v34 = vpop.f32.mrb[68].mxu0 }
0x1a40   :  { %v3384_v35 = vsel %vm6591_vm3, %v3328_v34, -inf  ;;  %v5246_v41 = vpop.f32.mrb[69].mxu0 }
0x1a41   :  { %v3331_v42 = vpop.f32.mrb[70].mxu0  ;;  %v3386_v12 = vsel %vm696_vm4, %v3384_v35, -inf }
0x1a42   :  { %3387 = vmax.xlane.f32.xlu1 %v3386_v12  ;;  %v5247_v51 = vpop.f32.mrb[71].mxu0 }
0x1a4b   :  { %v3278_v56 = vpop.f32.mrb[76].mxu1 }
0x1a4c   :  { %v5337_v57 = vpack.i.bf16 %v3278_v56, %v3230_v26  ;;  %v5240_v58 = vpop.f32.mrb[77].mxu1 }
0x1a4d   :  { %v3281_v59 = vpop.f32.mrb[78].mxu1 }
0x1a4e   :  { %v5241_v52 = vpop.f32.mrb[79].mxu1 }
0x1a53   :  { %v3378_v61 = vpop.f32.mrb[80].mxu1  ;;  %3410 = vrot.lane.b32.xlu1 %v6846_v45, %s6142_s5 }
0x1a54   :  { %v3385_v49 = vsel %vm6591_vm3, %v3378_v61, -inf  ;;  %v5252_v62 = vpop.f32.mrb[81].mxu1 }
0x1a55   :  { %v3381_v63 = vpop.f32.mrb[82].mxu1  ;;  %v3389_v0 = vsel %vm696_vm4, %v3385_v49, -inf }
0x1a56   :  { %3390 = vmax.xlane.f32.xlu0 %v3389_v0  ;;  %v5253_v7 = vpop.f32.mrb[83].mxu1 }
0x1a57   :  { %5333 = vrot.lane.b32.xlu1 %v5332_v54, %s6142_s5 }
0x1a5b   :  { %5338 = vrot.lane.b32.xlu1 %v5337_v57, %s6114_s6 }
0x1acf   :  { %v3388_v8 = vpop.xlane.xlu1 %3387 }
0x1ad0   :  { %v3392_v10 = vsub.f32 %v3384_v35, %v3388_v8 }
0x1ad2   :  { %v3394_v13 = vmul.f32 1.442695, %v3392_v10  ;;  %v4732_v10 = vld [vmem:[#allocation20] ss:$0 sm:$0xff] }
0x1ad3   :  { %v3411_v45 = vpop.permute.xlu1 %3410 }
0x1ad4   :  { %5679 = vpow2.f32 %v3394_v13  ;;  %v3416_v11 = vsel %vm724_vm2, %v3411_v45, 0 }
0x1ad5   :  { %5255 = vmatpush3.bf16.msra.mxu0 %v3416_v11 }
0x1ad6   :  { %5266 = vmatprep.subr.bf16.mxu0 %v6138_v4 }
0x1ad7   :  { %v5334_v42 = vpop.permute.xlu1 %5333 }
0x1ad8   :  { %v5336_v51 = vunpack.i.h.bf16 %v5334_v42  ;;  %v5335_v56 = vunpack.i.l.bf16 %v5334_v42  ;;  %v5548_v42 = vld [vmem:[%s7199_s19 + $0xcc] ss:$16 sps:$4 sm:$0xff]  }
0x1ada   :  { %v3531_v59 = vsel %vm599_vm1, %v6899_v50, %v5336_v51  ;;  %v3530_v52 = vsel %vm599_vm1, %v6897_v38, %v5335_v56  ;;  %v5546_v51 = vld [vmem:[%s7199_s19 + $0xc8] ss:$16 sps:$4 sm:$0xff]   ;;  %v5551_v56 = vld [vmem:[%s7199_s19 + $0xe4] ss:$16 sps:$4 sm:$0xff]  }
0x1adb   :  { %v5339_v12 = vpop.permute.xlu1 %5338 }
0x1adc   :  { %v5341_v57 = vunpack.i.h.bf16 %v5339_v12  ;;  %v5340_v58 = vunpack.i.l.bf16 %v5339_v12  ;;  %v5543_v12 = vld [vmem:[%s7199_s19 + $0xc0] ss:$16 sps:$4 sm:$0xff]  }
0x1ade   :  { %v5680_v14 = vpop.eup %5679  ;;  %v3533_v62 = vsel %vm1512_vm5, %v3531_v59, %v5341_v57  ;;  %v3532_v63 = vsel %vm1512_vm5, %v3530_v52, %v5340_v58  ;;  %v5554_v57 = vld [vmem:[%s7199_s19 + $0xec] ss:$16 sps:$4 sm:$0xff]   ;;  %v5549_v58 = vld [vmem:[%s7199_s19 + $0xe0] ss:$16 sps:$4 sm:$0xff]  }
0x1adf   :  { %v3398_v3 = vsel %vm696_vm4, %v5680_v14, 0.0  ;;  %v5555_v59 = vld [vmem:[#allocation25 + $0x40] sm:$0xff]  }
0x1ae0   :  { %3399 = vadd.xlane.f32.xlu0 %v3398_v3  ;;  %v5556_v52 = vld [vmem:[#allocation25 + $0xc0] sm:$0xff]  }
0x1ae3   :  { %v3391_v29 = vpop.xlane.xlu0 %3390 }
0x1ae4   :  { %v3393_v15 = vsub.f32 %v3385_v49, %v3391_v29 }
0x1ae6   :  { %v3396_v27 = vmul.f32 1.442695, %v3393_v15  ;;  %v5507_v15 = vld [vmem:[%s7199_s19] ss:$16 sps:$4 sm:$0xff]  }
0x1ae8   :  { %5681 = vpow2.f32 %v3396_v27  ;;  %v5509_v27 = vld [vmem:[%s7199_s19 + $0x4] ss:$16 sps:$4 sm:$0xff]  }
0x1af2   :  { %v5682_v53 = vpop.eup %5681 }
0x1af3   :  { %v3401_v54 = vsel %vm696_vm4, %v5682_v53, 0.0 }
0x1af4   :  { %3402 = vadd.xlane.f32.xlu0 %v3401_v54  ;;  %v5518_v54 = vld [vmem:[%s7199_s19 + $0x2c] ss:$16 sps:$4 sm:$0xff]  }
0x1b0a   :  { %3458 = vrot.lane.b32.xlu0 %v6875_v60, %s6142_s5  ;;  %v5499_v60 = vld [vmem:[#allocation19] sm:$0xff]  }
0x1b6d   :  { %v3400_v44 = vpop.xlane.xlu0 %3399 }
0x1b6e   :  { %5683 = vrcp.f32 %v3400_v44  ;;  %v5513_v44 = vld [vmem:[%s7199_s19 + $0x20] ss:$16 sps:$4 sm:$0xff]  }
0x1b78   :  { %v5684_v16 = vpop.eup %5683 }
0x1b79   :  { %v3406_v6 = vmul.f32 %v5684_v16, %v5680_v14  ;;  %v5516_v16 = vld [vmem:[%s7199_s19 + $0x28] ss:$16 sps:$4 sm:$0xff]  }
0x1b7b   :  { %v3408_v43 = vpack.c.bf16 %v3406_v6, %v3406_v6 }
0x1b7d   :  { %5257 = vmatmul.mubr.msk.bf16.vlgmr.msra.gmra.mrb[72].mxu0 %vm696_vm4, %v3408_v43 }
0x1b7e   :  { %5282 = vmatprep.mubr.msk.bf16.mxu0 %vm6140_vm0, %v6138_v4  ;;  %5267 = vmatpush3.bf16.msra.mxu0 %v5499_v60  ;;  %v5521_v60 = vld [vmem:[%s7199_s19 + $0x44] ss:$16 sps:$4 sm:$0xff]  }
0x1b7f   :  { %5268 = vmatprep.subr.bf16.mxu0 %v6138_v4 }
0x1b81   :  { %v3403_v47 = vpop.xlane.xlu0 %3402 }
0x1b82   :  { %5685 = vrcp.f32 %v3403_v47  ;;  %5269 = vmatpush3.bf16.msra.mxu0 %v5500_v5  ;;  %v5524_v5 = vld [vmem:[%s7199_s19 + $0x4c] ss:$16 sps:$4 sm:$0xff]  }
0x1b83   :  { %5270 = vmatprep.subr.bf16.mxu0 %v6138_v4 }
0x1b85   :  { %v3459_v48 = vpop.permute.xlu0 %3458 }
0x1b86   :  { %v3464_v17 = vsel %vm724_vm2, %v3459_v48, 0  ;;  %5271 = vmatpush3.bf16.msra.mxu0 %v5501_v46  ;;  %v5519_v46 = vld [vmem:[%s7199_s19 + $0x40] ss:$16 sps:$4 sm:$0xff]  }
0x1b87   :  { %5261 = vmatpush3.bf16.msra.mxu1 %v3464_v17  ;;  %5272 = vmatprep.subr.bf16.mxu0 %v6138_v4 }
0x1b88   :  { %3906 = vmatprep.subr.bf16.mxu1 %v5509_v27 }
0x1b8a   :  { %5273 = vmatpush3.bf16.msra.mxu0 %v5502_v20  ;;  %v5522_v20 = vld [vmem:[%s7199_s19 + $0x48] ss:$16 sps:$4 sm:$0xff]  }
0x1b8b   :  { %5274 = vmatprep.subr.bf16.mxu0 %v6138_v4 }
0x1b8c   :  { %v5686_v18 = vpop.eup %5685 }
0x1b8d   :  { %v3407_v55 = vmul.f32 %v5686_v18, %v5682_v53  ;;  %v5515_v53 = vld [vmem:[%s7199_s19 + $0x24] ss:$16 sps:$4 sm:$0xff]  }
0x1b8e   :  { %5275 = vmatpush3.bf16.msra.mxu0 %v5503_v1  ;;  %v5527_v1 = vld [vmem:[%s7199_s19 + $0x64] ss:$16 sps:$4 sm:$0xff]  }
0x1b8f   :  { %v3409_v19 = vpack.c.bf16 %v3407_v55, %v3407_v55  ;;  %5276 = vmatprep.subr.bf16.mxu0 %v6138_v4 }
0x1b91   :  { %5263 = vmatmul.mubr.msk.bf16.vlgmr.msra.gmra.mrb[84].mxu1 %vm696_vm4, %v3409_v19 }
0x1b92   :  { %3938 = vmatprep.mubr.bf16.mxu1 %v6139_v30  ;;  %5277 = vmatpush3.bf16.msra.mxu0 %v5504_v21  ;;  %v5530_v21 = vld [vmem:[%s7199_s19 + $0x6c] ss:$16 sps:$4 sm:$0xff]  }
0x1b93   :  { %5278 = vmatprep.subr.bf16.mxu0 %v6138_v4  ;;  %3907 = vmatpush1.bf16.msra.mxu1 %v5507_v15 }
0x1b94   :  { %3908 = vmatprep.subr.bf16.mxu1 %v5515_v53 }
0x1b96   :  { %5279 = vmatpush3.bf16.msra.mxu0 %v5505_v22  ;;  %v5525_v22 = vld [vmem:[%s7199_s19 + $0x60] ss:$16 sps:$4 sm:$0xff]  }
0x1b97   :  { %5280 = vmatprep.subr.bf16.mxu0 %v6138_v4  ;;  %3909 = vmatpush1.bf16.msra.mxu1 %v5513_v44  ;;  %v5560_v44 = vld [vmem:[#allocation25 + $0xc8] sm:$0xff]  }
0x1b98   :  { %3910 = vmatprep.subr.bf16.mxu1 %v5521_v60  ;;  %v5570_v60 = vld [vmem:[#allocation25 + $0x98] sm:$0xff]  }
0x1b9a   :  { %5281 = vmatpush3.bf16.msra.mxu0 %v5506_v28  ;;  %v5534_v28 = vld [vmem:[%s7199_s19 + $0x88] ss:$16 sps:$4 sm:$0xff]  }
0x1b9b   :  { %3911 = vmatpush1.bf16.msra.mxu1 %v5519_v46  ;;  %v5572_v46 = vld [vmem:[#allocation25 + $0xe0] sm:$0xff]  }
0x1b9c   :  { %3912 = vmatprep.subr.bf16.mxu1 %v5527_v1  ;;  %v5574_v1 = vld [vmem:[#allocation25 + $0xa0] sm:$0xff]  }
0x1b9f   :  { %3913 = vmatpush1.bf16.msra.mxu1 %v5525_v22  ;;  %v5576_v22 = vld [vmem:[#allocation25 + $0xe8] sm:$0xff]  }
0x1c50   :  { %v3452_v23 = vpop.f32.mrb[72].mxu0 }
0x1c51   :  { %v5258_v24 = vpop.f32.mrb[73].mxu0 }
0x1c52   :  { %v3455_v25 = vpop.f32.mrb[74].mxu0  ;;  %v5533_v24 = vld [vmem:[%s7199_s19 + $0x84] ss:$16 sps:$4 sm:$0xff]  }
0x1c53   :  { %v5259_v26 = vpop.f32.mrb[75].mxu0  ;;  %v5536_v25 = vld [vmem:[%s7199_s19 + $0x8c] ss:$16 sps:$4 sm:$0xff]   ;;  %3914 = vmatprep.subr.bf16.mxu1 %v5533_v24 }
0x1c54   :  { %v5531_v26 = vld [vmem:[%s7199_s19 + $0x80] ss:$16 sps:$4 sm:$0xff]   ;;  %v5578_v24 = vld [vmem:[#allocation25 + $0xa8] sm:$0xff]  }
0x1c55   :  { %3915 = vmatpush1.bf16.msra.mxu1 %v5531_v26  ;;  %v5580_v26 = vld [vmem:[#allocation25 + $0xf0] sm:$0xff]  }
0x1c64   :  { %v3500_v31 = vpop.f32.mrb[84].mxu1 }
0x1c65   :  { %v5342_v2 = vpack.i.bf16 %v3500_v31, %v3452_v23  ;;  %v5264_v34 = vpop.f32.mrb[85].mxu1  ;;  %v5528_v23 = vld [vmem:[%s7199_s19 + $0x68] ss:$16 sps:$4 sm:$0xff]   ;;  %v5539_v31 = vld [vmem:[%s7199_s19 + $0xa4] ss:$16 sps:$4 sm:$0xff]  }
0x1c66   :  { %v3503_v35 = vpop.f32.mrb[86].mxu1  ;;  %v5537_v34 = vld [vmem:[%s7199_s19 + $0xa0] ss:$16 sps:$4 sm:$0xff]   ;;  %3916 = vmatprep.subr.bf16.mxu1 %v5539_v31 }
0x1c67   :  { %5343 = vrot.lane.b32.xlu1 %v5342_v2, %s6141_s8  ;;  %v5265_v41 = vpop.f32.mrb[87].mxu1  ;;  %v5542_v2 = vld [vmem:[%s7199_s19 + $0xac] ss:$16 sps:$4 sm:$0xff]   ;;  %v5540_v35 = vld [vmem:[%s7199_s19 + $0xa8] ss:$16 sps:$4 sm:$0xff]   ;;  %3917 = vmatpush1.bf16.msra.mxu1 %v5537_v34  ;;  %v5582_v31 = vld [vmem:[#allocation25 + $0xb0] sm:$0xff]  }
0x1c68   :  { %v5545_v41 = vld [vmem:[%s7199_s19 + $0xc4] ss:$16 sps:$4 sm:$0xff]   ;;  %v5584_v34 = vld [vmem:[#allocation25 + $0xf8] sm:$0xff]  }
0x1c69   :  { %3918 = vmatprep.subr.bf16.mxu1 %v5545_v41  ;;  %v5586_v41 = vld [vmem:[#allocation25 + $0xb8] sm:$0xff]  }
0x1c6b   :  { %3919 = vmatpush1.bf16.msra.mxu1 %v5543_v12 }
0x1c6c   :  { %3920 = vmatprep.subr.bf16.mxu1 %v5551_v56 }
0x1c6f   :  { %3921 = vmatpush1.bf16.msra.mxu1 %v5549_v58 }
0x1c70   :  { %4970 = vmatprep.subr.bf16.mxu1 %v5555_v59 }
0x1cd9   :  { %v5344_v4 = vpop.permute.xlu1 %5343 }
0x1cda   :  { %v5346_v61 = vunpack.i.h.bf16 %v5344_v4  ;;  %v5345_v49 = vunpack.i.l.bf16 %v5344_v4  ;;  %v5552_v4 = vld [vmem:[%s7199_s19 + $0xe8] ss:$16 sps:$4 sm:$0xff]  }
0x1cdc   :  { %v3535_v0 = vsel %vm1515_vm6, %v3533_v62, %v5346_v61  ;;  %v3534_v7 = vsel %vm1515_vm6, %v3532_v63, %v5345_v49 }
0x1cdd   :  { %v3536_v8 = vpack.c.bf16 %v3535_v0, %v3534_v7 }
0x1cdf   :  { %5283 = vmatmul.mubr.bf16.vlgmr.msra.gmra.mrb[76].mxu0 %v3536_v8 }
0x1ce0   :  { %3981 = vmatprep.mubr.bf16.mxu0 %v6139_v30 }
0x1db2   :  { %v3642_v13 = vpop.f32.mrb[76].mxu0 }
0x1db3   :  { %v3643_v50 = vadd.f32 %v4732_v10, %v3642_v13  ;;  %v5284_v45 = vpop.f32.mrb[77].mxu0  ;;  %v4741_v13 = vld [vmem:[#allocation22] ss:$0 sm:$0xff] }
0x1db4   :  { %v3645_v11 = vpop.f32.mrb[78].mxu0 }
0x1db5   :  { %v7027_v38 = vadd.f32 %v3643_v50, %v6808_v32  ;;  %v3646_v14 = vadd.f32 %v4732_v10, %v3645_v11  ;;  %v5285_v3 = vpop.f32.mrb[79].mxu0  ;;  %v5510_v32 = vld [vmem:[%s7199_s19 + $0x8] ss:$16 sps:$4 sm:$0xff]  }
0x1db7   :  { %v7030_v29 = vadd.f32 %v3646_v14, %v6812_v33  ;;  %3653 = vadd.xlane.f32.xlu0 %v7027_v38  ;;  %v5512_v33 = vld [vmem:[%s7199_s19 + $0xc] ss:$16 sps:$4 sm:$0xff]  }
0x1db8   :  { %3949 = vmatprep.subr.bf16.mxu0 %v5512_v33  ;;  %v4742_v14 = vld [vmem:[#allocation23] ss:$0 sm:$0xff]  ;;  %v5558_v33 = vld [vmem:[#allocation25 + $0x80] sm:$0xff]  }
0x1db9   :  { %3655 = vadd.xlane.f32.xlu1 %v7030_v29  ;;  %3950 = vmatpush1.bf16.msra.mxu0 %v5510_v32  ;;  %v5557_v32 = vld [vmem:[#allocation25] sm:$0xff]  }
0x1dba   :  { %3951 = vmatprep.subr.bf16.mxu0 %v5518_v54  ;;  %v5559_v54 = vld [vmem:[#allocation25 + $0x48] sm:$0xff]  }
0x1dbd   :  { %3952 = vmatpush1.bf16.msra.mxu0 %v5516_v16  ;;  %v5561_v16 = vld [vmem:[#allocation25 + $0x8] sm:$0xff]  }
0x1dbe   :  { %3953 = vmatprep.subr.bf16.mxu0 %v5524_v5  ;;  %v5571_v5 = vld [vmem:[#allocation25 + $0x60] sm:$0xff]  }
0x1dc1   :  { %3954 = vmatpush1.bf16.msra.mxu0 %v5522_v20  ;;  %v5573_v20 = vld [vmem:[#allocation25 + $0x20] sm:$0xff]  }
0x1dc2   :  { %3955 = vmatprep.subr.bf16.mxu0 %v5530_v21  ;;  %v5575_v21 = vld [vmem:[#allocation25 + $0x68] sm:$0xff]  }
0x1dc5   :  { %3956 = vmatpush1.bf16.msra.mxu0 %v5528_v23  ;;  %v5577_v23 = vld [vmem:[#allocation25 + $0x28] sm:$0xff]  }
0x1dc6   :  { %3957 = vmatprep.subr.bf16.mxu0 %v5536_v25  ;;  %v5579_v25 = vld [vmem:[#allocation25 + $0x70] sm:$0xff]  }
0x1dc9   :  { %3958 = vmatpush1.bf16.msra.mxu0 %v5534_v28  ;;  %v5581_v28 = vld [vmem:[#allocation25 + $0x30] sm:$0xff]  }
0x1dca   :  { %3959 = vmatprep.subr.bf16.mxu0 %v5542_v2  ;;  %v5583_v2 = vld [vmem:[#allocation25 + $0x78] sm:$0xff]  }
0x1dcd   :  { %3960 = vmatpush1.bf16.msra.mxu0 %v5540_v35  ;;  %v5585_v35 = vld [vmem:[#allocation25 + $0x38] sm:$0xff]  }
0x1dce   :  { %3961 = vmatprep.subr.bf16.mxu0 %v5548_v42  ;;  %v3724_v42 = vld [vmem:[%s7200_s20] sm:$0xf] }
0x1dcf   :  { %v3729_v12 = vrot.slane %v3724_v42, %v6788_v36  ;;  %v3733_v56 = vrot.slane %v3724_v42, %v6795_v39 }
0x1dd1   :  { %3962 = vmatpush1.bf16.msra.mxu0 %v5546_v51  ;;  %v3737_v51 = vrot.slane %v3724_v42, %v1718_v37 }
0x1dd2   :  { %3963 = vmatprep.subr.bf16.mxu0 %v5554_v57  ;;  %v3741_v57 = vrot.slane %v3724_v42, %v1722_v40 }
0x1dd5   :  { %3964 = vmatpush1.bf16.msra.mxu0 %v5552_v4 }
0x1dd6   :  { %4992 = vmatprep.subr.bf16.mxu0 %v5556_v52 }
0x1e44   :  { %v3654_v6 = vpop.xlane.xlu0 %3653 }
0x1e45   :  { %v3657_v43 = vmul.f32 0.0078125, %v3654_v6  ;;  %v5562_v6 = vld [vmem:[#allocation25 + $0x88] sm:$0xff]  }
0x1e46   :  { %v3656_v47 = vpop.xlane.xlu1 %3655 }
0x1e47   :  { %v7059_v48 = vsub.f32 %v7027_v38, %v3657_v43  ;;  %v3658_v17 = vmul.f32 0.0078125, %v3656_v47  ;;  %v5563_v43 = vld [vmem:[#allocation25 + $0x50] sm:$0xff]  }
0x1e48   :  { %v5564_v47 = vld [vmem:[#allocation25 + $0xd0] sm:$0xff]  }
0x1e49   :  { %v7062_v18 = vsub.f32 %v7030_v29, %v3658_v17  ;;  %v3661_v55 = vmul.f32 %v7059_v48, %v7059_v48  ;;  %v5566_v17 = vld [vmem:[#allocation25 + $0x90] sm:$0xff]  }
0x1e4b   :  { %3663 = vadd.xlane.f32.xlu0 %v3661_v55  ;;  %v3662_v19 = vmul.f32 %v7062_v18, %v7062_v18  ;;  %v5568_v55 = vld [vmem:[#allocation25 + $0xd8] sm:$0xff]  }
0x1e4f   :  { %3665 = vadd.xlane.f32.xlu0 %v3662_v19  ;;  %v5569_v19 = vld [vmem:[#allocation25 + $0x18] sm:$0xff]  }
0x1ed8   :  { %v3664_v61 = vpop.xlane.xlu0 %3663 }
0x1ed9   :  { %v3667_v49 = vmul.f32 0.0078125, %v3664_v61 }
0x1edb   :  { %v3669_v62 = vadd.f32 1e-05, %v3667_v49 }
0x1edc   :  { %v3666_v63 = vpop.xlane.xlu0 %3665 }
0x1edd   :  { %5687 = vrsqrt.f32 %v3669_v62  ;;  %v3668_v0 = vmul.f32 0.0078125, %v3666_v63 }
0x1edf   :  { %v3670_v7 = vadd.f32 1e-05, %v3668_v0 }
0x1ee1   :  { %5689 = vrsqrt.f32 %v3670_v7 }
0x1ee7   :  { %v5688_v8 = vpop.eup %5687 }
0x1ee8   :  { %v3673_v10 = vmul.f32 %v5688_v8, %v7059_v48  ;;  %v5565_v48 = vld [vmem:[#allocation25 + $0x10] sm:$0xff]  }
0x1eea   :  { %v3681_v11 = vmul.f32 %v4741_v13, %v3673_v10 }
0x1eeb   :  { %v5690_v50 = vpop.eup %5689 }
0x1eec   :  { %v3674_v45 = vmul.f32 %v5690_v50, %v7062_v18  ;;  %v3689_v15 = vadd.f32 %v4742_v14, %v3681_v11  ;;  %v5567_v18 = vld [vmem:[#allocation25 + $0x58] sm:$0xff]  }
0x1eee   :  { %v3682_v3 = vmul.f32 %v4741_v13, %v3674_v45 }
0x1ef0   :  { %v3690_v27 = vadd.f32 %v4742_v14, %v3682_v3 }
0x1ef2   :  { %v3691_v53 = vpack.c.bf16 %v3690_v27, %v3689_v15 }
0x1ef4   :  { %3939 = vmatmul.mubr.bf16.vlgmr.msra.gmra.mrb[88].mxu1 %v3691_v53  ;;  %3982 = vmatmul.mubr.bf16.vlgmr.msra.gmra.mrb[80].mxu0 %v3691_v53 }
0x1ef5   :  { %4971 = vmatpush3.bf16.msra.mxu1 %v5557_v32  ;;  %4993 = vmatpush3.bf16.msra.mxu0 %v5558_v33 }
0x1ef6   :  { %4972 = vmatprep.subr.bf16.mxu1 %v5559_v54  ;;  %4994 = vmatprep.subr.bf16.mxu0 %v5560_v44 }
0x1ef9   :  { %4973 = vmatpush3.bf16.msra.mxu1 %v5561_v16  ;;  %4995 = vmatpush3.bf16.msra.mxu0 %v5562_v6 }
0x1efa   :  { %4974 = vmatprep.subr.bf16.mxu1 %v5563_v43  ;;  %4996 = vmatprep.subr.bf16.mxu0 %v5564_v47  ;;  %v4775_v43 = vld [vmem:[#allocation26] ss:$0 sm:$0xff] }
0x1efd   :  { %4975 = vmatpush3.bf16.msra.mxu1 %v5565_v48  ;;  %4997 = vmatpush3.bf16.msra.mxu0 %v5566_v17 }
0x1efe   :  { %4976 = vmatprep.subr.bf16.mxu1 %v5567_v18  ;;  %4998 = vmatprep.subr.bf16.mxu0 %v5568_v55 }
0x1f01   :  { %4977 = vmatpush3.bf16.msra.mxu1 %v5569_v19  ;;  %4999 = vmatpush3.bf16.msra.mxu0 %v5570_v60 }
0x1f02   :  { %4978 = vmatprep.subr.bf16.mxu1 %v5571_v5  ;;  %5000 = vmatprep.subr.bf16.mxu0 %v5572_v46 }
0x1f05   :  { %4979 = vmatpush3.bf16.msra.mxu1 %v5573_v20  ;;  %5001 = vmatpush3.bf16.msra.mxu0 %v5574_v1 }
0x1f06   :  { %4980 = vmatprep.subr.bf16.mxu1 %v5575_v21  ;;  %5002 = vmatprep.subr.bf16.mxu0 %v5576_v22 }
0x1f09   :  { %4981 = vmatpush3.bf16.msra.mxu1 %v5577_v23  ;;  %5003 = vmatpush3.bf16.msra.mxu0 %v5578_v24 }
0x1f0a   :  { %4982 = vmatprep.subr.bf16.mxu1 %v5579_v25  ;;  %5004 = vmatprep.subr.bf16.mxu0 %v5580_v26  ;;  %v5587_v25 = vld [vmem:[#allocation28] ss:$8 sps:$4 sm:$0xff]   ;;  %v5589_v26 = vld [vmem:[#allocation28 + $0x4] ss:$8 sps:$4 sm:$0xff]  }
0x1f0d   :  { %4983 = vmatpush3.bf16.msra.mxu1 %v5581_v28  ;;  %5005 = vmatpush3.bf16.msra.mxu0 %v5582_v31  ;;  %v5592_v28 = vld [vmem:[#allocation28 + $0x14] ss:$8 sps:$4 sm:$0xff]   ;;  %v5590_v31 = vld [vmem:[#allocation28 + $0x10] ss:$8 sps:$4 sm:$0xff]  }
0x1f0e   :  { %4984 = vmatprep.subr.bf16.mxu1 %v5583_v2  ;;  %5006 = vmatprep.subr.bf16.mxu0 %v5584_v34 }
0x1f11   :  { %4985 = vmatpush3.bf16.msra.mxu1 %v5585_v35  ;;  %5007 = vmatpush3.bf16.msra.mxu0 %v5586_v41 }
0x1f12   :  { %4500 = vmatprep.subr.bf16.mxu1 %v5589_v26 }
0x1fc7   :  { %v3940_v58 = vpop.f32.mrb[88].mxu1  ;;  %v3983_v4 = vpop.f32.mrb[80].mxu0 }
0x1fc8   :  { %v3941_v59 = vadd.f32 %v3940_v58, %v3729_v12  ;;  %v3984_v52 = vadd.f32 %v3983_v4, %v3737_v51  ;;  %v3942_v61 = vpop.f32.mrb[89].mxu1  ;;  %v3985_v49 = vpop.f32.mrb[81].mxu0  ;;  %v5596_v58 = vld [vmem:[#allocation28 + $0x30] ss:$8 sps:$4 sm:$0xff]   ;;  %v5601_v4 = vld [vmem:[#allocation28 + $0x44] ss:$8 sps:$4 sm:$0xff]  }
0x1fc9   :  { %v3943_v62 = vadd.f32 %v3942_v61, %v3733_v56  ;;  %v3986_v63 = vadd.f32 %v3985_v49, %v3741_v57  ;;  %v3944_v0 = vpop.f32.mrb[90].mxu1  ;;  %v3987_v7 = vpop.f32.mrb[82].mxu0  ;;  %v5602_v61 = vld [vmem:[#allocation28 + $0x50] ss:$8 sps:$4 sm:$0xff]   ;;  %v5607_v49 = vld [vmem:[#allocation28 + $0x64] ss:$8 sps:$4 sm:$0xff]  }
0x1fca   :  { %v3945_v8 = vadd.f32 %v3944_v0, %v3729_v12  ;;  %v3988_v10 = vadd.f32 %v3987_v7, %v3737_v51  ;;  %v3946_v13 = vpop.f32.mrb[91].mxu1  ;;  %v3989_v50 = vpop.f32.mrb[83].mxu0  ;;  %v3992_v11 = vmax.f32 %v3941_v59, 0.0  ;;  %v3994_v14 = vmax.f32 %v3984_v52, 0.0  ;;  %v5599_v59 = vld [vmem:[#allocation28 + $0x40] ss:$8 sps:$4 sm:$0xff]  }
0x1fcb   :  { %v3947_v37 = vadd.f32 %v3946_v13, %v3733_v56  ;;  %v3990_v45 = vadd.f32 %v3989_v50, %v3741_v57  ;;  %v3993_v3 = vmax.f32 %v3943_v62, 0.0  ;;  %v3995_v15 = vmax.f32 %v3986_v63, 0.0  ;;  %v5593_v56 = vld [vmem:[#allocation28 + $0x20] ss:$8 sps:$4 sm:$0xff]   ;;  %v5598_v57 = vld [vmem:[#allocation28 + $0x34] ss:$8 sps:$4 sm:$0xff]  }
0x1fcc   :  { %v3996_v9 = vmax.f32 %v3945_v8, 0.0  ;;  %v3998_v40 = vmax.f32 %v3988_v10, 0.0  ;;  %v5604_v52 = vld [vmem:[#allocation28 + $0x54] ss:$8 sps:$4 sm:$0xff]   ;;  %v5605_v62 = vld [vmem:[#allocation28 + $0x60] ss:$8 sps:$4 sm:$0xff]  }
0x1fcd   :  { %v3997_v27 = vmax.f32 %v3947_v37, 0.0  ;;  %v3999_v32 = vmax.f32 %v3990_v45, 0.0  ;;  %v5610_v63 = vld [vmem:[#allocation28 + $0x74] ss:$8 sps:$4 sm:$0xff]   ;;  %v5608_v0 = vld [vmem:[#allocation28 + $0x70] ss:$8 sps:$4 sm:$0xff]  }
0x1fce   :  { %v4000_v33 = vpack.c.bf16 %v3996_v9, %v3992_v11  ;;  %v4002_v53 = vpack.c.bf16 %v3998_v40, %v3994_v14  ;;  %v4808_v11 = vld [vmem:[%s7203_s23] ss:$0 sm:$0xff]  ;;  %s6143_s23 = smov [#allocation29]  }
0x1fcf   :  { %v4001_v54 = vpack.c.bf16 %v3997_v27, %v3993_v3  ;;  %v4003_v44 = vpack.c.bf16 %v3999_v32, %v3995_v15  ;;  %v4809_v15 = vld [vmem:[%s7246_s29] ss:$0 sm:$0xff]  ;;  %s4552_s10 = sshll.u32 %s6143_s23, 4  ;;  %s4553_s10 = int_to_ptr.vmem [resolvable:$true] %s4552_s10 }
0x1fd0   :  { %s6071_s1 = scalar_lea.vmem %s4553_s10, 512  ;;  %p6076_p11 = scmp.lt.s32.totalorder %s4553_s10, %s4553_s10 }
0x1fd1   :  { %4299 = vmatprep.mubr.bf16.mxu1 %v4001_v54  ;;  %4340 = vmatprep.mubr.bf16.mxu0 %v4003_v44  ;;  %v4408_v54 = vld [vmem:[%s7247_s22] sm:$0x3]  ;;  %p6072_p10 = scmp.ne.s32.totalorder %s4553_s10, %s6071_s1  ;;  %p6077_p12 = scmp.lt.s32.totalorder %s6071_s1, %s6071_s1 }
0x1fd2   :  { %4300 = vmatmul.mubr.bf16.vlgmr.msra.gmra.mrb[92].mxu1 %v4000_v33  ;;  %4341 = vmatmul.mubr.bf16.vlgmr.msra.gmra.mrb[84].mxu0 %v4002_v53  ;;  %v4413_v44 = vrot.slane %v4408_v54, %v6788_v36 }
0x1fd3   :  { %4532 = vmatprep.mubr.bf16.mxu1 %v6139_v30  ;;  %4501 = vmatpush1.bf16.msra.mxu1 %v5587_v25  ;;  %p6078_p13 = por %p6077_p12, %p6076_p11 }
0x1fd4   :  { %4502 = vmatprep.subr.bf16.mxu1 %v5592_v28 }
0x1fd5   :  { %p6079_p0 = pnand %p6078_p13, %p6072_p10 }
0x1fd7   :  { %4503 = vmatpush1.bf16.msra.mxu1 %v5590_v31 }
0x20a5   :  { %v4986_v16 = vpop.f32.mrb[92].mxu1  ;;  %v5008_v6 = vpop.f32.mrb[84].mxu0 }
0x20a6   :  { %v4987_v47 = vpop.f32.mrb[93].mxu1  ;;  %v5009_v48 = vpop.f32.mrb[85].mxu0 }
0x20a7   :  { %v4988_v17 = vadd.f32 %v4987_v47, %v4986_v16  ;;  %v5010_v18 = vadd.f32 %v5009_v48, %v5008_v6  ;;  %v4989_v55 = vpop.f32.mrb[94].mxu1  ;;  %v5011_v19 = vpop.f32.mrb[86].mxu0  ;;  %v4417_v16 = vrot.slane %v4408_v54, %v6795_v39 }
0x20a8   :  { %v4990_v60 = vpop.f32.mrb[95].mxu1  ;;  %v5012_v5 = vpop.f32.mrb[87].mxu0 }
0x20a9   :  { %v4302_v46 = vadd.f32 %v4988_v17, %v4775_v43  ;;  %v4991_v20 = vadd.f32 %v4990_v60, %v4989_v55  ;;  %v5013_v1 = vadd.f32 %v5012_v5, %v5011_v19 }
0x20ab   :  { %v4343_v21 = vadd.f32 %v5010_v18, %v4302_v46  ;;  %v4305_v22 = vadd.f32 %v4991_v20, %v4775_v43 }
0x20ad   :  { %v4346_v23 = vadd.f32 %v5013_v1, %v4305_v22  ;;  %v4349_v24 = vadd.f32 %v4343_v21, %v7027_v38 }
0x20af   :  { %4353 = vadd.xlane.f32.xlu0 %v4349_v24  ;;  %v4350_v30 = vadd.f32 %v4346_v23, %v7030_v29  ;;  %v5595_v29 = vld [vmem:[#allocation28 + $0x24] ss:$8 sps:$4 sm:$0xff]  }
0x20b0   :  { %4504 = vmatprep.subr.bf16.mxu1 %v5595_v29 }
0x20b1   :  { %4355 = vadd.xlane.f32.xlu1 %v4350_v30  ;;  %4505 = vmatpush1.bf16.msra.mxu1 %v5593_v56 }
0x20b2   :  { %4506 = vmatprep.subr.bf16.mxu1 %v5598_v57 }
0x20b5   :  { %4507 = vmatpush1.bf16.msra.mxu1 %v5596_v58 }
0x20b6   :  { %4508 = vmatprep.subr.bf16.mxu1 %v5601_v4 }
0x20b9   :  { %4509 = vmatpush1.bf16.msra.mxu1 %v5599_v59 }
0x20ba   :  { %4510 = vmatprep.subr.bf16.mxu1 %v5604_v52 }
0x20bd   :  { %4511 = vmatpush1.bf16.msra.mxu1 %v5602_v61 }
0x20be   :  { %4512 = vmatprep.subr.bf16.mxu1 %v5607_v49 }
0x20c1   :  { %4513 = vmatpush1.bf16.msra.mxu1 %v5605_v62 }
0x20c2   :  { %4514 = vmatprep.subr.bf16.mxu1 %v5610_v63 }
0x20c5   :  { %4515 = vmatpush1.bf16.msra.mxu1 %v5608_v0 }
0x213c   :  { %v4354_v2 = vpop.xlane.xlu0 %4353 }
0x213d   :  { %v4357_v34 = vmul.f32 0.0078125, %v4354_v2 }
0x213e   :  { %v4356_v35 = vpop.xlane.xlu1 %4355 }
0x213f   :  { %v4359_v41 = vsub.f32 %v4349_v24, %v4357_v34  ;;  %v4358_v42 = vmul.f32 0.0078125, %v4356_v35 }
0x2141   :  { %v4360_v12 = vsub.f32 %v4350_v30, %v4358_v42  ;;  %v4361_v51 = vmul.f32 %v4359_v41, %v4359_v41 }
0x2143   :  { %4363 = vadd.xlane.f32.xlu0 %v4361_v51  ;;  %v4362_v38 = vmul.f32 %v4360_v12, %v4360_v12 }
0x2145   :  { %4365 = vadd.xlane.f32.xlu1 %v4362_v38 }
0x21d0   :  { %v4364_v7 = vpop.xlane.xlu0 %4363 }
0x21d1   :  { %v4367_v8 = vmul.f32 0.0078125, %v4364_v7 }
0x21d2   :  { %v4366_v10 = vpop.xlane.xlu1 %4365 }
0x21d3   :  { %v4369_v13 = vadd.f32 1e-05, %v4367_v8  ;;  %v4368_v50 = vmul.f32 0.0078125, %v4366_v10 }
0x21d5   :  { %5691 = vrsqrt.f32 %v4369_v13  ;;  %v4370_v37 = vadd.f32 1e-05, %v4368_v50 }
0x21d7   :  { %5693 = vrsqrt.f32 %v4370_v37 }
0x21df   :  { %v5692_v45 = vpop.eup %5691 }
0x21e0   :  { %v4373_v14 = vmul.f32 %v5692_v45, %v4359_v41 }
0x21e1   :  { %v5694_v9 = vpop.eup %5693 }
0x21e2   :  { %v4374_v40 = vmul.f32 %v5694_v9, %v4360_v12  ;;  %v4381_v3 = vmul.f32 %v4808_v11, %v4373_v14 }
0x21e4   :  { %v4382_v27 = vmul.f32 %v4808_v11, %v4374_v40  ;;  %v4389_v32 = vadd.f32 %v4809_v15, %v4381_v3 }
0x21e6   :  { %v4390_v33 = vadd.f32 %v4809_v15, %v4382_v27 }
0x21e8   :  { %v4391_v53 = vpack.c.bf16 %v4390_v33, %v4389_v32 }
0x21ea   :  { %4533 = vmatmul.mubr.bf16.vlgmr.msra.gmra.mrb[96].mxu1 %v4391_v53 }
0x22bd   :  { %v4534_v6 = vpop.f32.mrb[96].mxu1 }
0x22be   :  { %v4535_v43 = vadd.f32 %v4534_v6, %v4413_v44  ;;  %v4536_v47 = vpop.f32.mrb[97].mxu1 }
0x22bf   :  { %v4537_v48 = vadd.f32 %v4536_v47, %v4417_v16  ;;  %v4538_v17 = vpop.f32.mrb[98].mxu1 }
0x22c0   :  { %4543 = vst [vmem:[#allocation29] sm:$0xff] %v4535_v43  ;;  %v4539_v18 = vadd.f32 %v4538_v17, %v4413_v44  ;;  %v4540_v55 = vpop.f32.mrb[99].mxu1 }
0x22c1   :  { %4544 = vst [vmem:[#allocation29 + $0x8] sm:$0xff] %v4537_v48  ;;  %v4541_v19 = vadd.f32 %v4540_v55, %v4417_v16 }
0x22c2   :  { %4545 = vst [vmem:[#allocation29 + $0x10] sm:$0xff] %v4539_v18 }
0x22c3   :  { %4546 = vst [vmem:[#allocation29 + $0x18] sm:$0xff] %v4541_v19 }
0x22c4   :  { %6082 = shalt.err (!%p6079_p0)
}
0x22c5   :  { %s7248_s21 = sld [smem:[#allocation54_spill]] }
0x22cb   :  { %s6083_s11 = scalar_lea.hbm %s7248_s21, 512 }
0x22cc   :  { %p6084_p1 = scmp.ne.s32.totalorder %s7248_s21, %s6083_s11  ;;  %p6087_p2 = scmp.lt.u32.totalorder %s6083_s11, %s7248_s21 }
0x22ce   :  { %p6089_p3 = pnand %p6087_p2, %p6084_p1 }
0x22d0   :  { %6092 = shalt.err (!%p6089_p3)
}
0x22d1   :  { %4558 = dma.vmem_to_hbm [thread:$0]  %s4553_s10, 512, %s7248_s21, [#allocation4], %s6128_s4, %s6128_s4, %s6129_s18  }
0x22d2   :  { %6111 = dma.done.wait [#allocation4], 512  }
0x22d3   :  { %6112 = vsyncadd [#allocation4], 4294966784 }
0x22d4   :  { %4562 = vsyncpa [#allocation3], 1 }
0x22d5   :  { %4563 = vsyncpa [#allocation6], 1 }
0x22d6   :  { %4564 = vsyncpa [#allocation9], 1 }
0x22d7   :  { %4565 = vsyncpa [#allocation12], 1 }
0x22d8   :  { %4566 = vsyncpa [#allocation15], 1 }
0x22d9   :  { %4567 = vsyncpa [#allocation18], 1 }
0x22da   :  { %4568 = vsyncpa [#allocation21], 1 }
0x22db   :  { %4569 = vsyncpa [#allocation24], 1 }
0x22dc   :  { %4570 = vsyncpa [#allocation27], 1 }
0x22dd   :  { %4571 = vsyncpa [#allocation4], 1 }

</bundles_post_ra>
